<compile_context>
chip_gen: v6e
topology: v6e:2x2x1
jax: 0.10.0
libtpu: 0.0.40
codegen_flags: <defaults>
</compile_context>

<pallas_src>
import jax
import jax.numpy as jnp
from jax import lax
from jax.experimental import pallas as pl
from jax.experimental.pallas import tpu as pltpu

EPS = 1e-5


def _fused_kernel(w_ref, x_ref, res_ref, gamma_ref, beta_ref, o_ref):
    # w_ref:     (TM, Cin)   block of conv weight
    # x_ref:     (Cin, P)    full input matrix (P = N*H*W), shared across grid steps
    # res_ref:   (TM, P)     residual block
    # gamma_ref: (TM, 1)     BN affine params
    # beta_ref:  (TM, 1)
    # o_ref:     (TM, P)     output block

    # 1x1 conv as MXU matmul with f32 accumulation.
    y = jnp.dot(w_ref[...], x_ref[...], preferred_element_type=jnp.float32)

    # BatchNorm2d (training-mode) batch statistics, single pass over y:
    # biased mean/var over N*H*W per output channel (row).
    inv_p = 1.0 / float(y.shape[1])
    s1 = jnp.sum(y, axis=1, keepdims=True)
    s2 = jnp.sum(y * y, axis=1, keepdims=True)
    mean = s1 * inv_p
    var = jnp.maximum(s2 * inv_p - mean * mean, 0.0)

    # Fold normalization + affine into one per-channel scale/shift (single FMA/elem).
    scale = gamma_ref[...] * lax.rsqrt(var + EPS)      # EUP rsqrt
    shift = beta_ref[...] - mean * scale

    o_ref[...] = (y * scale + shift + res_ref[...]).astype(o_ref.dtype)


def conv_bn_add(x216, x210, weight, gamma, beta, *, tm=256):
    """x216, x210: (N, C, H, W) float32; weight: (Cout, Cin); gamma/beta: (Cout,)."""
    N, Cin, H, W = x216.shape
    Cout = weight.shape[0]
    P = N * H * W
    assert Cout % tm == 0, "output-channel tile must divide Cout"

    # NCHW -> (C, N*H*W) channel-major matrices (free reshape for N=1).
    x_mat = jnp.transpose(x216, (1, 0, 2, 3)).reshape(Cin, P)
    r_mat = jnp.transpose(x210, (1, 0, 2, 3)).reshape(Cout, P)
    g_col = gamma.reshape(Cout, 1)
    b_col = beta.reshape(Cout, 1)

    grid = (Cout // tm,)

    out_mat = pl.pallas_call(
        _fused_kernel,
        out_shape=jax.ShapeDtypeStruct((Cout, P), jnp.float32),
        grid_spec=pltpu.PrefetchScalarGridSpec(
            num_scalar_prefetch=0,
            grid=grid,
            in_specs=[
                pl.BlockSpec((tm, Cin), lambda i: (i, 0)),   # weight tile
                pl.BlockSpec((Cin, P), lambda i: (0, 0)),    # full input (grid-invariant)
                pl.BlockSpec((tm, P), lambda i: (i, 0)),     # residual tile
                pl.BlockSpec((tm, 1), lambda i: (i, 0)),     # gamma tile
                pl.BlockSpec((tm, 1), lambda i: (i, 0)),     # beta tile
            ],
            out_specs=pl.BlockSpec((tm, P), lambda i: (i, 0)),
        ),
        compiler_params=pltpu.CompilerParams(
            dimension_semantics=("parallel",),   # >=2 parallel steps -> v7x megacore
        ),
    )(weight, x_mat, r_mat, g_col, b_col)

    # (Cout, N*H*W) -> (N, Cout, H, W)
    return jnp.transpose(out_mat.reshape(Cout, N, H, W), (1, 0, 2, 3))


def _reference(x216, x210, weight, gamma, beta):
    N, Cin, H, W = x216.shape
    Cout = weight.shape[0]
    x_mat = jnp.transpose(x216, (1, 0, 2, 3)).reshape(Cin, -1)
    y = weight @ x_mat
    mean = jnp.mean(y, axis=1, keepdims=True)
    var = jnp.mean(jnp.square(y - mean), axis=1, keepdims=True)
    bn = (y - mean) * lax.rsqrt(var + EPS) * gamma[:, None] + beta[:, None]
    out = bn + jnp.transpose(x210, (1, 0, 2, 3)).reshape(Cout, -1)
    return jnp.transpose(out.reshape(Cout, N, H, W), (1, 0, 2, 3))


if __name__ == "__main__":
    # Shapes implied by the module's forward: (1, 1024, 14, 14) inputs,
    # Conv2d(1024 -> 1024, kernel 1x1, no bias), BatchNorm2d(1024).
    N, C, H, W = 1, 1024, 14, 14

    key = jax.random.PRNGKey(0)
    k1, k2, k3, k4, k5 = jax.random.split(key, 5)

    x216 = jax.random.normal(k1, (N, C, H, W), dtype=jnp.float32)
    x210 = jax.random.normal(k2, (N, C, H, W), dtype=jnp.float32)

    # Deterministic parameter init (synthetic; not a checkpoint load).
    weight = jax.random.normal(k3, (C, C), dtype=jnp.float32) * (1.0 / jnp.sqrt(C))
    gamma = 1.0 + 0.1 * jax.random.normal(k4, (C,), dtype=jnp.float32)
    beta = 0.1 * jax.random.normal(k5, (C,), dtype=jnp.float32)

    out = conv_bn_add(x216, x210, weight, gamma, beta)
    out = jax.block_until_ready(out)

    ref = _reference(x216, x210, weight, gamma, beta)
    assert out.shape == (N, C, H, W)
    assert jnp.allclose(out, ref, atol=1e-3, rtol=1e-3)

    print("KERNEL_OK")
</pallas_src>

<mosaic_0001>
module attributes {stable_mosaic.version = 11 : i64} {
  func.func @_fused_kernel(%arg0: i32, %arg1: memref<256x1024xf32, #tpu.memory_space<vmem>>, %arg2: memref<1024x196xf32, #tpu.memory_space<vmem>>, %arg3: memref<256x196xf32, #tpu.memory_space<vmem>>, %arg4: memref<256x1xf32, #tpu.memory_space<vmem>>, %arg5: memref<256x1xf32, #tpu.memory_space<vmem>>, %arg6: memref<256x196xf32, #tpu.memory_space<vmem>>) attributes {dimension_semantics = [#tpu.dimension_semantics<parallel>], iteration_bounds = array<i64: 4>, scalar_prefetch = 0 : i64, scratch_operands = 0 : i64, tpu.core_type = #tpu.core_type<tc>, window_params = [{transform_indices = @transform_0, window_bounds = array<i64: 256, 1024>}, {pipeline_mode = #tpu.pipeline_mode<synchronous>, transform_indices = @transform_1, window_bounds = array<i64: 1024, 196>}, {transform_indices = @transform_2, window_bounds = array<i64: 256, 196>}, {transform_indices = @transform_3, window_bounds = array<i64: 256, 1>}, {transform_indices = @transform_4, window_bounds = array<i64: 256, 1>}, {transform_indices = @transform_5, window_bounds = array<i64: 256, 196>}]} {
    %c0 = arith.constant 0 : index
    %c0_0 = arith.constant 0 : index
    %0 = vector.load %arg1[%c0, %c0_0] : memref<256x1024xf32, #tpu.memory_space<vmem>>, vector<256x1024xf32>
    %c0_1 = arith.constant 0 : index
    %c0_2 = arith.constant 0 : index
    %1 = vector.load %arg2[%c0_1, %c0_2] : memref<1024x196xf32, #tpu.memory_space<vmem>>, vector<1024x196xf32>
    %cst = arith.constant dense<0.000000e+00> : vector<256x196xf32>
    %2 = tpu.matmul %0, %1, %cst {dimension_numbers = #tpu.dot_dimension_numbers<[1], [0], [0], [1], [0, 0, 1, 1], [], []>} : vector<256x1024xf32>, vector<1024x196xf32>, vector<256x196xf32> -> vector<256x196xf32>
    %cst_3 = arith.constant dense<0.000000e+00> : vector<256xf32>
    %3 = vector.multi_reduction <add>, %2, %cst_3 [1] : vector<256x196xf32> to vector<256xf32>
    %4 = vector.shape_cast %3 : vector<256xf32> to vector<256x1xf32>
    %5 = arith.mulf %2, %2 : vector<256x196xf32>
    %cst_4 = arith.constant dense<0.000000e+00> : vector<256xf32>
    %6 = vector.multi_reduction <add>, %5, %cst_4 [1] : vector<256x196xf32> to vector<256xf32>
    %7 = vector.shape_cast %6 : vector<256xf32> to vector<256x1xf32>
    %cst_5 = arith.constant 0.00510204071 : f32
    %8 = vector.broadcast %cst_5 : f32 to vector<256x1xf32>
    %9 = arith.mulf %4, %8 : vector<256x1xf32>
    %cst_6 = arith.constant 0.00510204071 : f32
    %10 = vector.broadcast %cst_6 : f32 to vector<256x1xf32>
    %11 = arith.mulf %7, %10 : vector<256x1xf32>
    %12 = arith.mulf %9, %9 : vector<256x1xf32>
    %13 = arith.subf %11, %12 : vector<256x1xf32>
    %cst_7 = arith.constant 0.000000e+00 : f32
    %14 = vector.broadcast %cst_7 : f32 to vector<256x1xf32>
    %15 = arith.maximumf %13, %14 : vector<256x1xf32>
    %c0_8 = arith.constant 0 : index
    %c0_9 = arith.constant 0 : index
    %16 = vector.load %arg4[%c0_8, %c0_9] : memref<256x1xf32, #tpu.memory_space<vmem>>, vector<256x1xf32>
    %cst_10 = arith.constant 9.99999974E-6 : f32
    %17 = vector.broadcast %cst_10 : f32 to vector<256x1xf32>
    %18 = arith.addf %15, %17 : vector<256x1xf32>
    %19 = math.rsqrt %18 : vector<256x1xf32>
    %20 = arith.mulf %16, %19 : vector<256x1xf32>
    %c0_11 = arith.constant 0 : index
    %c0_12 = arith.constant 0 : index
    %21 = vector.load %arg5[%c0_11, %c0_12] : memref<256x1xf32, #tpu.memory_space<vmem>>, vector<256x1xf32>
    %22 = arith.mulf %9, %20 : vector<256x1xf32>
    %23 = arith.subf %21, %22 : vector<256x1xf32>
    %24 = vector.broadcast %20 : vector<256x1xf32> to vector<256x196xf32>
    %25 = arith.mulf %2, %24 : vector<256x196xf32>
    %26 = vector.broadcast %23 : vector<256x1xf32> to vector<256x196xf32>
    %27 = arith.addf %25, %26 : vector<256x196xf32>
    %c0_13 = arith.constant 0 : index
    %c0_14 = arith.constant 0 : index
    %28 = vector.load %arg3[%c0_13, %c0_14] : memref<256x196xf32, #tpu.memory_space<vmem>>, vector<256x196xf32>
    %29 = arith.addf %27, %28 : vector<256x196xf32>
    %c0_15 = arith.constant 0 : index
    %c0_16 = arith.constant 0 : index
    %30 = vector.load %arg6[%c0_15, %c0_16] : memref<256x196xf32, #tpu.memory_space<vmem>>, vector<256x196xf32>
    tpu.vector_store %arg6[%c0_15, %c0_16], %29 {strides = array<i32>} : memref<256x196xf32, #tpu.memory_space<vmem>>, vector<256x196xf32>,
    return
  }
  func.func @transform_0(%arg0: i32) -> (i32, i32) {
    %c0_i32 = arith.constant 0 : i32
    %c0_i32_0 = arith.constant 0 : i32
    return %arg0, %c0_i32 : i32, i32
  }
  func.func @transform_1(%arg0: i32) -> (i32, i32) {
    %c0_i32 = arith.constant 0 : i32
    %c0_i32_0 = arith.constant 0 : i32
    %c0_i32_1 = arith.constant 0 : i32
    return %c0_i32, %c0_i32_0 : i32, i32
  }
  func.func @transform_2(%arg0: i32) -> (i32, i32) {
    %c0_i32 = arith.constant 0 : i32
    %c0_i32_0 = arith.constant 0 : i32
    return %arg0, %c0_i32 : i32, i32
  }
  func.func @transform_3(%arg0: i32) -> (i32, i32) {
    %c0_i32 = arith.constant 0 : i32
    %c0_i32_0 = arith.constant 0 : i32
    return %arg0, %c0_i32 : i32, i32
  }
  func.func @transform_4(%arg0: i32) -> (i32, i32) {
    %c0_i32 = arith.constant 0 : i32
    %c0_i32_0 = arith.constant 0 : i32
    return %arg0, %c0_i32 : i32, i32
  }
  func.func @transform_5(%arg0: i32) -> (i32, i32) {
    %c0_i32 = arith.constant 0 : i32
    %c0_i32_0 = arith.constant 0 : i32
    return %arg0, %c0_i32 : i32, i32
  }
}

</mosaic_0001>

<bundles_post_ra>
// kernel: tpu_custom_call.1
= control target key start
LH: loop header
LB: loop body
LE: loop exit
PB: predicated region body
PF: predicated region fallthrough
CT: control target
= control target key end

     0   :  { %s3418_s18 = smov 0   ;;  %s5523_s0 = inlined_call_operand.vmem [shape: f32[1024,1024], index: 0, kind: input, shape index: {}]   ;;  %s5524_s1 = inlined_call_operand.vmem [shape: f32[1024,196], index: 1, kind: input, shape index: {}]   ;;  %s5525_s2 = inlined_call_operand.vmem [shape: f32[1024,196], index: 2, kind: input, shape index: {}]   ;;  %s5526_s3 = inlined_call_operand.vmem [shape: f32[1024,1], index: 3, kind: input, shape index: {}]   ;;  %s5527_s4 = inlined_call_operand.vmem [shape: f32[1024,1], index: 4, kind: input, shape index: {}]   ;;  %s5528_s5 = inlined_call_operand.vmem [shape: f32[1024,196], index: 5, kind: output, shape index: {}]  }
   0x1 LB: > { %s3281_s19 = sadd.s32 4294967295, %s3385_s18   ;;  %p3285_p0 = scmp.ge.s32.totalorder %s3385_s18, 1  ;;  %s3385_s18 = sphi %s3418_s18, %s15_s18  }
   0x2   : > { %p223_p1 = scmp.lt.s32.totalorder %s3385_s18, 5 }
   0x4   : > { %p224_p2 = pnand %p3285_p0, %p223_p1 }
   0x6   : > { %227 = sbr.rel (%p224_p2) target bundleno = 844 (0x34c), region = 40 }
   0xb   : > { %v589_v0 = vld [vmem:[%s5524_s1 + $0xf8] sm:$0xff]  ;;  %v588_v2 = vld [vmem:[%s5524_s1 + $0xf0] sm:$0xff]  ;;  %v587_v4 = vld [vmem:[%s5524_s1 + $0xe8] sm:$0xff]  ;;  %s3710_s24 = sshll.u32 %s3281_s19, 5  ;;  %vm1842_vm0 = vcmask 556032  }
   0xc   : > { %v653_v1 = vld [vmem:[%s5524_s1 + $0x2f8] sm:$0xff]  ;;  %814 = vmatprep.subr.mxu0 %v589_v0  ;;  %v652_v3 = vld [vmem:[%s5524_s1 + $0x2f0] sm:$0xff]  ;;  %v651_v5 = vld [vmem:[%s5524_s1 + $0x2e8] sm:$0xff]  ;;  %p270_p3 = scmp.lt.s32.totalorder %s3710_s24, 127 }
   0xd   : > { %1071 = vmatprep.subr.mxu1 %v653_v1  ;;  %815 = vmatpush1.msra.mxu0 %v588_v2  ;;  %v586_v6 = vld [vmem:[%s5524_s1 + $0xe0] sm:$0xff]  ;;  %v585_v8 = vld [vmem:[%s5524_s1 + $0xd8] sm:$0xff]  ;;  %v584_v10 = vld [vmem:[%s5524_s1 + $0xd0] sm:$0xff] }
   0xe   : > { %1072 = vmatpush1.msra.mxu1 %v652_v3  ;;  %v650_v7 = vld [vmem:[%s5524_s1 + $0x2e0] sm:$0xff]  ;;  %816 = vmatprep.subr.mxu0 %v587_v4  ;;  %v649_v9 = vld [vmem:[%s5524_s1 + $0x2d8] sm:$0xff]  ;;  %v648_v11 = vld [vmem:[%s5524_s1 + $0x2d0] sm:$0xff]  ;;  %s5665_s24 = smov (!%p270_p3, %s3710_s24), 127 }
   0xf   : > { %1073 = vmatprep.subr.mxu1 %v651_v5  ;;  %817 = vmatpush1.msra.mxu0 %v586_v6  ;;  %v583_v12 = vld [vmem:[%s5524_s1 + $0xc8] sm:$0xff]  ;;  %v582_v14 = vld [vmem:[%s5524_s1 + $0xc0] sm:$0xff]  ;;  %v581_v16 = vld [vmem:[%s5524_s1 + $0xb8] sm:$0xff]  ;;  %s3301_s22 = sshll.u32 %s5665_s24, 6  ;;  %s3302_s26 = sshll.u32 %s5665_s24, 4 }
  0x10   : > { %1074 = vmatpush1.msra.mxu1 %v650_v7  ;;  %v647_v13 = vld [vmem:[%s5524_s1 + $0x2c8] sm:$0xff]  ;;  %818 = vmatprep.subr.mxu0 %v585_v8  ;;  %v646_v15 = vld [vmem:[%s5524_s1 + $0x2c0] sm:$0xff]  ;;  %v645_v17 = vld [vmem:[%s5524_s1 + $0x2b8] sm:$0xff]  ;;  %s3806_s12 = scalar_lea.vmem %s5523_s0, %s3301_s22  ;;  %s5285_s29 = scalar_lea.vmem %s5525_s2, %s3302_s26 }
  0x11   : > { %1075 = vmatprep.subr.mxu1 %v649_v9  ;;  %819 = vmatpush1.msra.mxu0 %v584_v10  ;;  %v580_v18 = vld [vmem:[%s5524_s1 + $0xb0] sm:$0xff]  ;;  %v579_v20 = vld [vmem:[%s5524_s1 + $0xa8] sm:$0xff]  ;;  %v578_v22 = vld [vmem:[%s5524_s1 + $0xa0] sm:$0xff]  ;;  %s5300_s19 = scalar_lea.vmem %s5528_s5, %s3302_s26 }
  0x12   : > { %1076 = vmatpush1.msra.mxu1 %v648_v11  ;;  %820 = vmatprep.subr.mxu0 %v583_v12  ;;  %v644_v19 = vld [vmem:[%s5524_s1 + $0x2b0] sm:$0xff]  ;;  %v643_v21 = vld [vmem:[%s5524_s1 + $0x2a8] sm:$0xff]  ;;  %v642_v23 = vld [vmem:[%s5524_s1 + $0x2a0] sm:$0xff] }
  0x13   : > { %1077 = vmatprep.subr.mxu1 %v647_v13  ;;  %821 = vmatpush1.msra.mxu0 %v582_v14  ;;  %v577_v24 = vld [vmem:[%s5524_s1 + $0x98] sm:$0xff]  ;;  %v576_v26 = vld [vmem:[%s5524_s1 + $0x90] sm:$0xff]  ;;  %v575_v28 = vld [vmem:[%s5524_s1 + $0x88] sm:$0xff] }
  0x14   : > { %1078 = vmatpush1.msra.mxu1 %v646_v15  ;;  %822 = vmatprep.subr.mxu0 %v581_v16  ;;  %v641_v25 = vld [vmem:[%s5524_s1 + $0x298] sm:$0xff]  ;;  %v640_v27 = vld [vmem:[%s5524_s1 + $0x290] sm:$0xff]  ;;  %v639_v29 = vld [vmem:[%s5524_s1 + $0x288] sm:$0xff] }
  0x15   : > { %1079 = vmatprep.subr.mxu1 %v645_v17  ;;  %823 = vmatpush1.msra.mxu0 %v580_v18  ;;  %v574_v30 = vld [vmem:[%s5524_s1 + $0x80] sm:$0xff]  ;;  %v573_v32 = vld [vmem:[%s5524_s1 + $0x78] sm:$0xff]  ;;  %v572_v34 = vld [vmem:[%s5524_s1 + $0x70] sm:$0xff] }
  0x16   : > { %1080 = vmatpush1.msra.mxu1 %v644_v19  ;;  %824 = vmatprep.subr.mxu0 %v579_v20  ;;  %v638_v31 = vld [vmem:[%s5524_s1 + $0x280] sm:$0xff]  ;;  %v637_v33 = vld [vmem:[%s5524_s1 + $0x278] sm:$0xff]  ;;  %v636_v35 = vld [vmem:[%s5524_s1 + $0x270] sm:$0xff] }
  0x17   : > { %1081 = vmatprep.subr.mxu1 %v643_v21  ;;  %825 = vmatpush1.msra.mxu0 %v578_v22  ;;  %v571_v36 = vld [vmem:[%s5524_s1 + $0x68] sm:$0xff]  ;;  %v570_v38 = vld [vmem:[%s5524_s1 + $0x60] sm:$0xff]  ;;  %v569_v40 = vld [vmem:[%s5524_s1 + $0x58] sm:$0xff] }
  0x18   : > { %1082 = vmatpush1.msra.mxu1 %v642_v23  ;;  %826 = vmatprep.subr.mxu0 %v577_v24  ;;  %v635_v37 = vld [vmem:[%s5524_s1 + $0x268] sm:$0xff]  ;;  %v634_v39 = vld [vmem:[%s5524_s1 + $0x260] sm:$0xff]  ;;  %v633_v41 = vld [vmem:[%s5524_s1 + $0x258] sm:$0xff] }
  0x19   : > { %1083 = vmatprep.subr.mxu1 %v641_v25  ;;  %827 = vmatpush1.msra.mxu0 %v576_v26  ;;  %v568_v42 = vld [vmem:[%s5524_s1 + $0x50] sm:$0xff]  ;;  %v567_v44 = vld [vmem:[%s5524_s1 + $0x48] sm:$0xff]  ;;  %v566_v46 = vld [vmem:[%s5524_s1 + $0x40] sm:$0xff] }
  0x1a   : > { %1084 = vmatpush1.msra.mxu1 %v640_v27  ;;  %828 = vmatprep.subr.mxu0 %v575_v28  ;;  %v632_v43 = vld [vmem:[%s5524_s1 + $0x250] sm:$0xff]  ;;  %v631_v45 = vld [vmem:[%s5524_s1 + $0x248] sm:$0xff]  ;;  %v630_v47 = vld [vmem:[%s5524_s1 + $0x240] sm:$0xff] }
  0x1b   : > { %1085 = vmatprep.subr.mxu1 %v639_v29  ;;  %829 = vmatpush1.msra.mxu0 %v574_v30  ;;  %v565_v48 = vld [vmem:[%s5524_s1 + $0x38] sm:$0xff]  ;;  %v564_v50 = vld [vmem:[%s5524_s1 + $0x30] sm:$0xff]  ;;  %v563_v52 = vld [vmem:[%s5524_s1 + $0x28] sm:$0xff] }
  0x1c   : > { %1086 = vmatpush1.msra.mxu1 %v638_v31  ;;  %830 = vmatprep.subr.mxu0 %v573_v32  ;;  %v629_v49 = vld [vmem:[%s5524_s1 + $0x238] sm:$0xff]  ;;  %v628_v51 = vld [vmem:[%s5524_s1 + $0x230] sm:$0xff]  ;;  %v627_v53 = vld [vmem:[%s5524_s1 + $0x228] sm:$0xff] }
  0x1d   : > { %1087 = vmatprep.subr.mxu1 %v637_v33  ;;  %831 = vmatpush1.msra.mxu0 %v572_v34  ;;  %v562_v54 = vld [vmem:[%s5524_s1 + $0x20] sm:$0xff]  ;;  %v561_v56 = vld [vmem:[%s5524_s1 + $0x18] sm:$0xff]  ;;  %v560_v58 = vld [vmem:[%s5524_s1 + $0x10] sm:$0xff] }
  0x1e   : > { %1088 = vmatpush1.msra.mxu1 %v636_v35  ;;  %832 = vmatprep.subr.mxu0 %v571_v36  ;;  %v626_v55 = vld [vmem:[%s5524_s1 + $0x220] sm:$0xff]  ;;  %v625_v57 = vld [vmem:[%s5524_s1 + $0x218] sm:$0xff]  ;;  %v624_v59 = vld [vmem:[%s5524_s1 + $0x210] sm:$0xff] }
  0x1f   : > { %1089 = vmatprep.subr.mxu1 %v635_v37  ;;  %833 = vmatpush1.msra.mxu0 %v570_v38  ;;  %v559_v60 = vld [vmem:[%s5524_s1 + $0x8] sm:$0xff]  ;;  %v558_v62 = vld [vmem:[%s5524_s1] sm:$0xff]  ;;  %v621_v0 = vld [vmem:[%s5524_s1 + $0x1f8] sm:$0xff] }
  0x20   : > { %1090 = vmatpush1.msra.mxu1 %v634_v39  ;;  %834 = vmatprep.subr.mxu0 %v569_v40  ;;  %v623_v61 = vld [vmem:[%s5524_s1 + $0x208] sm:$0xff]  ;;  %v622_v63 = vld [vmem:[%s5524_s1 + $0x200] sm:$0xff]  ;;  %v685_v1 = vld [vmem:[%s5524_s1 + $0x3f8] sm:$0xff] }
  0x21   : > { %1091 = vmatprep.subr.mxu1 %v633_v41  ;;  %835 = vmatpush1.msra.mxu0 %v568_v42  ;;  %v620_v2 = vld [vmem:[%s5524_s1 + $0x1f0] sm:$0xff]  ;;  %v619_v4 = vld [vmem:[%s5524_s1 + $0x1e8] sm:$0xff]  ;;  %v618_v6 = vld [vmem:[%s5524_s1 + $0x1e0] sm:$0xff] }
  0x22   : > { %1092 = vmatpush1.msra.mxu1 %v632_v43  ;;  %836 = vmatprep.subr.mxu0 %v567_v44  ;;  %v684_v3 = vld [vmem:[%s5524_s1 + $0x3f0] sm:$0xff]  ;;  %v683_v5 = vld [vmem:[%s5524_s1 + $0x3e8] sm:$0xff]  ;;  %v682_v7 = vld [vmem:[%s5524_s1 + $0x3e0] sm:$0xff] }
  0x23   : > { %1093 = vmatprep.subr.mxu1 %v631_v45  ;;  %837 = vmatpush1.msra.mxu0 %v566_v46  ;;  %v617_v8 = vld [vmem:[%s5524_s1 + $0x1d8] sm:$0xff]  ;;  %v616_v10 = vld [vmem:[%s5524_s1 + $0x1d0] sm:$0xff]  ;;  %v615_v12 = vld [vmem:[%s5524_s1 + $0x1c8] sm:$0xff] }
  0x24   : > { %1094 = vmatpush1.msra.mxu1 %v630_v47  ;;  %838 = vmatprep.subr.mxu0 %v565_v48  ;;  %v681_v9 = vld [vmem:[%s5524_s1 + $0x3d8] sm:$0xff]  ;;  %v680_v11 = vld [vmem:[%s5524_s1 + $0x3d0] sm:$0xff]  ;;  %v679_v13 = vld [vmem:[%s5524_s1 + $0x3c8] sm:$0xff] }
  0x25   : > { %1095 = vmatprep.subr.mxu1 %v629_v49  ;;  %839 = vmatpush1.msra.mxu0 %v564_v50  ;;  %v614_v14 = vld [vmem:[%s5524_s1 + $0x1c0] sm:$0xff]  ;;  %v613_v16 = vld [vmem:[%s5524_s1 + $0x1b8] sm:$0xff]  ;;  %v612_v18 = vld [vmem:[%s5524_s1 + $0x1b0] sm:$0xff] }
  0x26   : > { %1096 = vmatpush1.msra.mxu1 %v628_v51  ;;  %840 = vmatprep.subr.mxu0 %v563_v52  ;;  %v678_v15 = vld [vmem:[%s5524_s1 + $0x3c0] sm:$0xff]  ;;  %v677_v17 = vld [vmem:[%s5524_s1 + $0x3b8] sm:$0xff]  ;;  %v676_v19 = vld [vmem:[%s5524_s1 + $0x3b0] sm:$0xff] }
  0x27   : > { %1097 = vmatprep.subr.mxu1 %v627_v53  ;;  %841 = vmatpush1.msra.mxu0 %v562_v54  ;;  %v611_v20 = vld [vmem:[%s5524_s1 + $0x1a8] sm:$0xff]  ;;  %v610_v22 = vld [vmem:[%s5524_s1 + $0x1a0] sm:$0xff]  ;;  %v609_v24 = vld [vmem:[%s5524_s1 + $0x198] sm:$0xff] }
  0x28   : > { %1098 = vmatpush1.msra.mxu1 %v626_v55  ;;  %842 = vmatprep.subr.mxu0 %v561_v56  ;;  %v675_v21 = vld [vmem:[%s5524_s1 + $0x3a8] sm:$0xff]  ;;  %v674_v23 = vld [vmem:[%s5524_s1 + $0x3a0] sm:$0xff]  ;;  %v673_v25 = vld [vmem:[%s5524_s1 + $0x398] sm:$0xff] }
  0x29   : > { %1099 = vmatprep.subr.mxu1 %v625_v57  ;;  %843 = vmatpush1.msra.mxu0 %v560_v58  ;;  %v608_v26 = vld [vmem:[%s5524_s1 + $0x190] sm:$0xff]  ;;  %v607_v28 = vld [vmem:[%s5524_s1 + $0x188] sm:$0xff]  ;;  %v606_v30 = vld [vmem:[%s5524_s1 + $0x180] sm:$0xff] }
  0x2a   : > { %1100 = vmatpush1.msra.mxu1 %v624_v59  ;;  %844 = vmatprep.subr.mxu0 %v559_v60  ;;  %v672_v27 = vld [vmem:[%s5524_s1 + $0x390] sm:$0xff]  ;;  %v671_v29 = vld [vmem:[%s5524_s1 + $0x388] sm:$0xff]  ;;  %v670_v31 = vld [vmem:[%s5524_s1 + $0x380] sm:$0xff] }
  0x2b   : > { %1101 = vmatprep.subr.mxu1 %v623_v61  ;;  %845 = vmatpush1.msra.mxu0 %v558_v62  ;;  %v605_v32 = vld [vmem:[%s5524_s1 + $0x178] sm:$0xff]  ;;  %v604_v34 = vld [vmem:[%s5524_s1 + $0x170] sm:$0xff]  ;;  %v603_v36 = vld [vmem:[%s5524_s1 + $0x168] sm:$0xff] }
  0x2c   : > { %1102 = vmatpush1.msra.mxu1 %v622_v63  ;;  %846 = vmatprep.subr.mxu0 %v621_v0  ;;  %v669_v33 = vld [vmem:[%s5524_s1 + $0x378] sm:$0xff]  ;;  %v668_v35 = vld [vmem:[%s5524_s1 + $0x370] sm:$0xff]  ;;  %v667_v37 = vld [vmem:[%s5524_s1 + $0x368] sm:$0xff] }
  0x2d   : > { %1103 = vmatprep.subr.mxu1 %v685_v1  ;;  %847 = vmatpush2.msra.mxu0 %v620_v2  ;;  %v602_v38 = vld [vmem:[%s5524_s1 + $0x160] sm:$0xff]  ;;  %v601_v40 = vld [vmem:[%s5524_s1 + $0x158] sm:$0xff]  ;;  %v600_v42 = vld [vmem:[%s5524_s1 + $0x150] sm:$0xff] }
  0x2e   : > { %1104 = vmatpush2.msra.mxu1 %v684_v3  ;;  %848 = vmatprep.subr.mxu0 %v619_v4  ;;  %v666_v39 = vld [vmem:[%s5524_s1 + $0x360] sm:$0xff]  ;;  %v665_v41 = vld [vmem:[%s5524_s1 + $0x358] sm:$0xff]  ;;  %v664_v43 = vld [vmem:[%s5524_s1 + $0x350] sm:$0xff] }
  0x2f   : > { %1105 = vmatprep.subr.mxu1 %v683_v5  ;;  %849 = vmatpush2.msra.mxu0 %v618_v6  ;;  %v599_v44 = vld [vmem:[%s5524_s1 + $0x148] sm:$0xff]  ;;  %v598_v46 = vld [vmem:[%s5524_s1 + $0x140] sm:$0xff]  ;;  %v597_v48 = vld [vmem:[%s5524_s1 + $0x138] sm:$0xff] }
  0x30   : > { %1106 = vmatpush2.msra.mxu1 %v682_v7  ;;  %850 = vmatprep.subr.mxu0 %v617_v8  ;;  %v663_v45 = vld [vmem:[%s5524_s1 + $0x348] sm:$0xff]  ;;  %v662_v47 = vld [vmem:[%s5524_s1 + $0x340] sm:$0xff]  ;;  %v661_v49 = vld [vmem:[%s5524_s1 + $0x338] sm:$0xff] }
  0x31   : > { %1107 = vmatprep.subr.mxu1 %v681_v9  ;;  %851 = vmatpush2.msra.mxu0 %v616_v10  ;;  %v596_v50 = vld [vmem:[%s5524_s1 + $0x130] sm:$0xff]  ;;  %v595_v52 = vld [vmem:[%s5524_s1 + $0x128] sm:$0xff]  ;;  %v594_v54 = vld [vmem:[%s5524_s1 + $0x120] sm:$0xff] }
  0x32   : > { %1108 = vmatpush2.msra.mxu1 %v680_v11  ;;  %852 = vmatprep.subr.mxu0 %v615_v12  ;;  %v660_v51 = vld [vmem:[%s5524_s1 + $0x330] sm:$0xff]  ;;  %v659_v53 = vld [vmem:[%s5524_s1 + $0x328] sm:$0xff]  ;;  %v658_v55 = vld [vmem:[%s5524_s1 + $0x320] sm:$0xff] }
  0x33   : > { %1109 = vmatprep.subr.mxu1 %v679_v13  ;;  %853 = vmatpush2.msra.mxu0 %v614_v14  ;;  %v593_v56 = vld [vmem:[%s5524_s1 + $0x118] sm:$0xff]  ;;  %v592_v58 = vld [vmem:[%s5524_s1 + $0x110] sm:$0xff]  ;;  %v591_v60 = vld [vmem:[%s5524_s1 + $0x108] sm:$0xff] }
  0x34   : > { %1110 = vmatpush2.msra.mxu1 %v678_v15  ;;  %854 = vmatprep.subr.mxu0 %v613_v16  ;;  %v657_v57 = vld [vmem:[%s5524_s1 + $0x318] sm:$0xff]  ;;  %v656_v59 = vld [vmem:[%s5524_s1 + $0x310] sm:$0xff]  ;;  %v655_v61 = vld [vmem:[%s5524_s1 + $0x308] sm:$0xff] }
  0x35   : > { %1111 = vmatprep.subr.mxu1 %v677_v17  ;;  %855 = vmatpush2.msra.mxu0 %v612_v18  ;;  %v590_v62 = vld [vmem:[%s5524_s1 + $0x100] sm:$0xff]  ;;  %v303_v63 = vld [vmem:[%s3806_s12 + $0x8] sm:$0xff]  ;;  %v305_v1 = vld [vmem:[%s3806_s12 + $0x18] sm:$0xff] }
  0x36   : > { %1112 = vmatpush2.msra.mxu1 %v676_v19  ;;  %856 = vmatprep.subr.mxu0 %v611_v20  ;;  %v654_v0 = vld [vmem:[%s5524_s1 + $0x300] sm:$0xff]  ;;  %v304_v3 = vld [vmem:[%s3806_s12 + $0x10] sm:$0xff]  ;;  %v717_v4 = vld [vmem:[%s5524_s1 + $0x4f8] sm:$0xff] }
  0x37   : > { %1113 = vmatprep.subr.mxu1 %v675_v21  ;;  %857 = vmatpush2.msra.mxu0 %v610_v22  ;;  %v302_v2 = vld [vmem:[%s3806_s12] sm:$0xff]  ;;  %v781_v5 = vld [vmem:[%s5524_s1 + $0x6f8] sm:$0xff]  ;;  %v716_v6 = vld [vmem:[%s5524_s1 + $0x4f0] sm:$0xff] }
  0x38   : > { %1114 = vmatpush2.msra.mxu1 %v674_v23  ;;  %858 = vmatprep.subr.mxu0 %v609_v24  ;;  %v311_v7 = vld [vmem:[%s3806_s12 + $0x48] sm:$0xff]  ;;  %v313_v8 = vld [vmem:[%s3806_s12 + $0x58] sm:$0xff]  ;;  %v780_v9 = vld [vmem:[%s5524_s1 + $0x6f0] sm:$0xff] }
  0x39   : > { %1115 = vmatprep.subr.mxu1 %v673_v25  ;;  %859 = vmatpush2.msra.mxu0 %v608_v26  ;;  %v310_v10 = vld [vmem:[%s3806_s12 + $0x40] sm:$0xff]  ;;  %v312_v11 = vld [vmem:[%s3806_s12 + $0x50] sm:$0xff]  ;;  %v715_v12 = vld [vmem:[%s5524_s1 + $0x4e8] sm:$0xff] }
  0x3a   : > { %1116 = vmatpush2.msra.mxu1 %v672_v27  ;;  %860 = vmatprep.subr.mxu0 %v607_v28  ;;  %v779_v13 = vld [vmem:[%s5524_s1 + $0x6e8] sm:$0xff]  ;;  %v714_v14 = vld [vmem:[%s5524_s1 + $0x4e0] sm:$0xff]  ;;  %v321_v16 = vld [vmem:[%s3806_s12 + $0x98] sm:$0xff] }
  0x3b   : > { %1117 = vmatprep.subr.mxu1 %v671_v29  ;;  %861 = vmatpush2.msra.mxu0 %v606_v30  ;;  %v319_v15 = vld [vmem:[%s3806_s12 + $0x88] sm:$0xff]  ;;  %v778_v17 = vld [vmem:[%s5524_s1 + $0x6e0] sm:$0xff]  ;;  %v320_v19 = vld [vmem:[%s3806_s12 + $0x90] sm:$0xff] }
  0x3c   : > { %1118 = vmatpush2.msra.mxu1 %v670_v31  ;;  %862 = vmatprep.subr.mxu0 %v605_v32  ;;  %v318_v18 = vld [vmem:[%s3806_s12 + $0x80] sm:$0xff]  ;;  %v713_v20 = vld [vmem:[%s5524_s1 + $0x4d8] sm:$0xff]  ;;  %v712_v22 = vld [vmem:[%s5524_s1 + $0x4d0] sm:$0xff] }
  0x3d   : > { %1119 = vmatprep.subr.mxu1 %v669_v33  ;;  %863 = vmatpush2.msra.mxu0 %v604_v34  ;;  %v777_v21 = vld [vmem:[%s5524_s1 + $0x6d8] sm:$0xff]  ;;  %v327_v23 = vld [vmem:[%s3806_s12 + $0xc8] sm:$0xff]  ;;  %v776_v25 = vld [vmem:[%s5524_s1 + $0x6d0] sm:$0xff] }
  0x3e   : > { %1120 = vmatpush2.msra.mxu1 %v668_v35  ;;  %864 = vmatprep.subr.mxu0 %v603_v36  ;;  %v329_v24 = vld [vmem:[%s3806_s12 + $0xd8] sm:$0xff]  ;;  %v326_v26 = vld [vmem:[%s3806_s12 + $0xc0] sm:$0xff]  ;;  %v328_v27 = vld [vmem:[%s3806_s12 + $0xd0] sm:$0xff] }
  0x3f   : > { %1121 = vmatprep.subr.mxu1 %v667_v37  ;;  %865 = vmatpush2.msra.mxu0 %v602_v38  ;;  %v711_v28 = vld [vmem:[%s5524_s1 + $0x4c8] sm:$0xff]  ;;  %v710_v30 = vld [vmem:[%s5524_s1 + $0x4c0] sm:$0xff]  ;;  %v337_v32 = vld [vmem:[%s3806_s12 + $0x118] sm:$0xff] }
  0x40   : > { %1122 = vmatpush2.msra.mxu1 %v666_v39  ;;  %866 = vmatprep.subr.mxu0 %v601_v40  ;;  %v775_v29 = vld [vmem:[%s5524_s1 + $0x6c8] sm:$0xff]  ;;  %v774_v33 = vld [vmem:[%s5524_s1 + $0x6c0] sm:$0xff]  ;;  %v336_v35 = vld [vmem:[%s3806_s12 + $0x110] sm:$0xff] }
  0x41   : > { %1123 = vmatprep.subr.mxu1 %v665_v41  ;;  %867 = vmatpush2.msra.mxu0 %v600_v42  ;;  %v335_v31 = vld [vmem:[%s3806_s12 + $0x108] sm:$0xff]  ;;  %v334_v34 = vld [vmem:[%s3806_s12 + $0x100] sm:$0xff]  ;;  %v709_v36 = vld [vmem:[%s5524_s1 + $0x4b8] sm:$0xff] }
  0x42   : > { %1124 = vmatpush2.msra.mxu1 %v664_v43  ;;  %868 = vmatprep.subr.mxu0 %v599_v44  ;;  %v773_v37 = vld [vmem:[%s5524_s1 + $0x6b8] sm:$0xff]  ;;  %v708_v38 = vld [vmem:[%s5524_s1 + $0x4b0] sm:$0xff]  ;;  %v343_v39 = vld [vmem:[%s3806_s12 + $0x148] sm:$0xff] }
  0x43   : > { %1125 = vmatprep.subr.mxu1 %v663_v45  ;;  %869 = vmatpush2.msra.mxu0 %v598_v46  ;;  %v345_v40 = vld [vmem:[%s3806_s12 + $0x158] sm:$0xff]  ;;  %v772_v41 = vld [vmem:[%s5524_s1 + $0x6b0] sm:$0xff]  ;;  %v342_v42 = vld [vmem:[%s3806_s12 + $0x140] sm:$0xff] }
  0x44   : > { %1126 = vmatpush2.msra.mxu1 %v662_v47  ;;  %870 = vmatprep.subr.mxu0 %v597_v48  ;;  %v344_v43 = vld [vmem:[%s3806_s12 + $0x150] sm:$0xff]  ;;  %v707_v44 = vld [vmem:[%s5524_s1 + $0x4a8] sm:$0xff]  ;;  %v706_v46 = vld [vmem:[%s5524_s1 + $0x4a0] sm:$0xff] }
  0x45   : > { %1127 = vmatprep.subr.mxu1 %v661_v49  ;;  %871 = vmatpush2.msra.mxu0 %v596_v50  ;;  %v771_v45 = vld [vmem:[%s5524_s1 + $0x6a8] sm:$0xff]  ;;  %v353_v48 = vld [vmem:[%s3806_s12 + $0x198] sm:$0xff]  ;;  %v770_v49 = vld [vmem:[%s5524_s1 + $0x6a0] sm:$0xff] }
  0x46   : > { %1128 = vmatpush2.msra.mxu1 %v660_v51  ;;  %872 = vmatprep.subr.mxu0 %v595_v52  ;;  %v351_v47 = vld [vmem:[%s3806_s12 + $0x188] sm:$0xff]  ;;  %v350_v50 = vld [vmem:[%s3806_s12 + $0x180] sm:$0xff]  ;;  %v352_v51 = vld [vmem:[%s3806_s12 + $0x190] sm:$0xff] }
  0x47   : > { %1129 = vmatprep.subr.mxu1 %v659_v53  ;;  %873 = vmatpush2.msra.mxu0 %v594_v54  ;;  %v705_v52 = vld [vmem:[%s5524_s1 + $0x498] sm:$0xff]  ;;  %v704_v54 = vld [vmem:[%s5524_s1 + $0x490] sm:$0xff] }
  0x48   : > { %1130 = vmatpush2.msra.mxu1 %v658_v55  ;;  %874 = vmatprep.subr.mxu0 %v593_v56  ;;  %v769_v53 = vld [vmem:[%s5524_s1 + $0x698] sm:$0xff]  ;;  %v359_v55 = vld [vmem:[%s3806_s12 + $0x1c8] sm:$0xff] }
  0x49   : > { %1131 = vmatprep.subr.mxu1 %v657_v57  ;;  %875 = vmatpush2.msra.mxu0 %v592_v58  ;;  %v361_v56 = vld [vmem:[%s3806_s12 + $0x1d8] sm:$0xff]  ;;  %v768_v57 = vld [vmem:[%s5524_s1 + $0x690] sm:$0xff]  ;;  %v358_v58 = vld [vmem:[%s3806_s12 + $0x1c0] sm:$0xff] }
  0x4a   : > { %1132 = vmatpush2.msra.mxu1 %v656_v59  ;;  %876 = vmatprep.subr.mxu0 %v591_v60  ;;  %v360_v59 = vld [vmem:[%s3806_s12 + $0x1d0] sm:$0xff]  ;;  %v703_v60 = vld [vmem:[%s5524_s1 + $0x488] sm:$0xff] }
  0x4b   : > { %1133 = vmatprep.subr.mxu1 %v655_v61  ;;  %877 = vmatpush2.msra.mxu0 %v590_v62  ;;  %v767_v61 = vld [vmem:[%s5524_s1 + $0x688] sm:$0xff]  ;;  %v702_v62 = vld [vmem:[%s5524_s1 + $0x480] sm:$0xff] }
  0x4c   : > { %878 = vmatprep.mubr.f32.mxu0 %v303_v63  ;;  %1134 = vmatpush2.msra.mxu1 %v654_v0  ;;  %v367_v63 = vld [vmem:[%s3806_s12 + $0x208] sm:$0xff]  ;;  %v369_v0 = vld [vmem:[%s3806_s12 + $0x218] sm:$0xff] }
  0x4d   : > { %1135 = vmatprep.mubr.f32.mxu1 %v305_v1  ;;  %879 = vmatmul.mubr.f32.vlgmr.msra.gmra.mxu0 %v302_v2  ;;  %v766_v1 = vld [vmem:[%s5524_s1 + $0x680] sm:$0xff] }
  0x4e   : > { %1136 = vmatmul.mubr.f32.vlgmr.msra.gmra.mxu1 %v304_v3  ;;  %1328 = vmatprep.subr.mxu0 %v717_v4  ;;  %v366_v2 = vld [vmem:[%s3806_s12 + $0x200] sm:$0xff]  ;;  %v368_v3 = vld [vmem:[%s3806_s12 + $0x210] sm:$0xff]  ;;  %v701_v4 = vld [vmem:[%s5524_s1 + $0x478] sm:$0xff] }
  0x4f   : > { %1585 = vmatprep.subr.mxu1 %v781_v5  ;;  %1329 = vmatpush1.msra.mxu0 %v716_v6  ;;  %v765_v5 = vld [vmem:[%s5524_s1 + $0x678] sm:$0xff]  ;;  %v700_v6 = vld [vmem:[%s5524_s1 + $0x470] sm:$0xff] }
  0x50   : > { %884 = vmatprep.mubr.f32.mxu0 %v311_v7  ;;  %1141 = vmatprep.mubr.f32.mxu1 %v313_v8  ;;  %v375_v7 = vld [vmem:[%s3806_s12 + $0x248] sm:$0xff]  ;;  %v377_v8 = vld [vmem:[%s3806_s12 + $0x258] sm:$0xff] }
  0x51   : > { %1586 = vmatpush1.msra.mxu1 %v780_v9  ;;  %885 = vmatmul.mubr.f32.gmra.mxu0 %v310_v10  ;;  %v764_v9 = vld [vmem:[%s5524_s1 + $0x670] sm:$0xff]  ;;  %v374_v10 = vld [vmem:[%s3806_s12 + $0x240] sm:$0xff] }
  0x52   : > { %1142 = vmatmul.mubr.f32.gmra.mxu1 %v312_v11  ;;  %1330 = vmatprep.subr.mxu0 %v715_v12  ;;  %v376_v11 = vld [vmem:[%s3806_s12 + $0x250] sm:$0xff]  ;;  %v699_v12 = vld [vmem:[%s5524_s1 + $0x468] sm:$0xff] }
  0x53   : > { %1587 = vmatprep.subr.mxu1 %v779_v13  ;;  %1331 = vmatpush1.msra.mxu0 %v714_v14  ;;  %v763_v13 = vld [vmem:[%s5524_s1 + $0x668] sm:$0xff]  ;;  %v698_v14 = vld [vmem:[%s5524_s1 + $0x460] sm:$0xff] }
  0x54   : > { %890 = vmatprep.mubr.f32.mxu0 %v319_v15  ;;  %1147 = vmatprep.mubr.f32.mxu1 %v321_v16  ;;  %v383_v15 = vld [vmem:[%s3806_s12 + $0x288] sm:$0xff]  ;;  %v385_v16 = vld [vmem:[%s3806_s12 + $0x298] sm:$0xff] }
  0x55   : > { %1588 = vmatpush1.msra.mxu1 %v778_v17  ;;  %891 = vmatmul.mubr.f32.gmra.mxu0 %v318_v18  ;;  %v762_v17 = vld [vmem:[%s5524_s1 + $0x660] sm:$0xff] }
  0x56   : > { %1148 = vmatmul.mubr.f32.gmra.mxu1 %v320_v19  ;;  %1332 = vmatprep.subr.mxu0 %v713_v20  ;;  %v382_v18 = vld [vmem:[%s3806_s12 + $0x280] sm:$0xff]  ;;  %v384_v19 = vld [vmem:[%s3806_s12 + $0x290] sm:$0xff]  ;;  %v697_v20 = vld [vmem:[%s5524_s1 + $0x458] sm:$0xff] }
  0x57   : > { %1589 = vmatprep.subr.mxu1 %v777_v21  ;;  %1333 = vmatpush1.msra.mxu0 %v712_v22  ;;  %v761_v21 = vld [vmem:[%s5524_s1 + $0x658] sm:$0xff]  ;;  %v696_v22 = vld [vmem:[%s5524_s1 + $0x450] sm:$0xff] }
  0x58   : > { %896 = vmatprep.mubr.f32.mxu0 %v327_v23  ;;  %1153 = vmatprep.mubr.f32.mxu1 %v329_v24  ;;  %v391_v23 = vld [vmem:[%s3806_s12 + $0x2c8] sm:$0xff]  ;;  %v393_v24 = vld [vmem:[%s3806_s12 + $0x2d8] sm:$0xff] }
  0x59   : > { %1590 = vmatpush1.msra.mxu1 %v776_v25  ;;  %897 = vmatmul.mubr.f32.gmra.mxu0 %v326_v26  ;;  %v760_v25 = vld [vmem:[%s5524_s1 + $0x650] sm:$0xff]  ;;  %v390_v26 = vld [vmem:[%s3806_s12 + $0x2c0] sm:$0xff] }
  0x5a   : > { %1154 = vmatmul.mubr.f32.gmra.mxu1 %v328_v27  ;;  %1334 = vmatprep.subr.mxu0 %v711_v28  ;;  %v392_v27 = vld [vmem:[%s3806_s12 + $0x2d0] sm:$0xff]  ;;  %v695_v28 = vld [vmem:[%s5524_s1 + $0x448] sm:$0xff] }
  0x5b   : > { %1591 = vmatprep.subr.mxu1 %v775_v29  ;;  %1335 = vmatpush1.msra.mxu0 %v710_v30  ;;  %v759_v29 = vld [vmem:[%s5524_s1 + $0x648] sm:$0xff]  ;;  %v694_v30 = vld [vmem:[%s5524_s1 + $0x440] sm:$0xff] }
  0x5c   : > { %902 = vmatprep.mubr.f32.mxu0 %v335_v31  ;;  %1159 = vmatprep.mubr.f32.mxu1 %v337_v32  ;;  %v399_v31 = vld [vmem:[%s3806_s12 + $0x308] sm:$0xff]  ;;  %v401_v32 = vld [vmem:[%s3806_s12 + $0x318] sm:$0xff] }
  0x5d   : > { %1592 = vmatpush1.msra.mxu1 %v774_v33  ;;  %903 = vmatmul.mubr.f32.gmra.mxu0 %v334_v34  ;;  %v758_v33 = vld [vmem:[%s5524_s1 + $0x640] sm:$0xff] }
  0x5e   : > { %1160 = vmatmul.mubr.f32.gmra.mxu1 %v336_v35  ;;  %1336 = vmatprep.subr.mxu0 %v709_v36  ;;  %v398_v34 = vld [vmem:[%s3806_s12 + $0x300] sm:$0xff]  ;;  %v400_v35 = vld [vmem:[%s3806_s12 + $0x310] sm:$0xff]  ;;  %v693_v36 = vld [vmem:[%s5524_s1 + $0x438] sm:$0xff] }
  0x5f   : > { %1593 = vmatprep.subr.mxu1 %v773_v37  ;;  %1337 = vmatpush1.msra.mxu0 %v708_v38  ;;  %v757_v37 = vld [vmem:[%s5524_s1 + $0x638] sm:$0xff]  ;;  %v692_v38 = vld [vmem:[%s5524_s1 + $0x430] sm:$0xff] }
  0x60   : > { %908 = vmatprep.mubr.f32.mxu0 %v343_v39  ;;  %1165 = vmatprep.mubr.f32.mxu1 %v345_v40  ;;  %v407_v39 = vld [vmem:[%s3806_s12 + $0x348] sm:$0xff]  ;;  %v409_v40 = vld [vmem:[%s3806_s12 + $0x358] sm:$0xff] }
  0x61   : > { %1594 = vmatpush1.msra.mxu1 %v772_v41  ;;  %909 = vmatmul.mubr.f32.gmra.mxu0 %v342_v42  ;;  %v756_v41 = vld [vmem:[%s5524_s1 + $0x630] sm:$0xff]  ;;  %v406_v42 = vld [vmem:[%s3806_s12 + $0x340] sm:$0xff] }
  0x62   : > { %1166 = vmatmul.mubr.f32.gmra.mxu1 %v344_v43  ;;  %1338 = vmatprep.subr.mxu0 %v707_v44  ;;  %v408_v43 = vld [vmem:[%s3806_s12 + $0x350] sm:$0xff]  ;;  %v691_v44 = vld [vmem:[%s5524_s1 + $0x428] sm:$0xff] }
  0x63   : > { %1595 = vmatprep.subr.mxu1 %v771_v45  ;;  %1339 = vmatpush1.msra.mxu0 %v706_v46  ;;  %v755_v45 = vld [vmem:[%s5524_s1 + $0x628] sm:$0xff]  ;;  %v690_v46 = vld [vmem:[%s5524_s1 + $0x420] sm:$0xff] }
  0x64   : > { %914 = vmatprep.mubr.f32.mxu0 %v351_v47  ;;  %1171 = vmatprep.mubr.f32.mxu1 %v353_v48  ;;  %v415_v47 = vld [vmem:[%s3806_s12 + $0x388] sm:$0xff]  ;;  %v417_v48 = vld [vmem:[%s3806_s12 + $0x398] sm:$0xff] }
  0x65   : > { %1596 = vmatpush1.msra.mxu1 %v770_v49  ;;  %915 = vmatmul.mubr.f32.gmra.mxu0 %v350_v50  ;;  %v754_v49 = vld [vmem:[%s5524_s1 + $0x620] sm:$0xff] }
  0x66   : > { %1172 = vmatmul.mubr.f32.gmra.mxu1 %v352_v51  ;;  %1340 = vmatprep.subr.mxu0 %v705_v52  ;;  %v414_v50 = vld [vmem:[%s3806_s12 + $0x380] sm:$0xff]  ;;  %v416_v51 = vld [vmem:[%s3806_s12 + $0x390] sm:$0xff]  ;;  %v689_v52 = vld [vmem:[%s5524_s1 + $0x418] sm:$0xff] }
  0x67   : > { %1597 = vmatprep.subr.mxu1 %v769_v53  ;;  %1341 = vmatpush1.msra.mxu0 %v704_v54  ;;  %v753_v53 = vld [vmem:[%s5524_s1 + $0x618] sm:$0xff]  ;;  %v688_v54 = vld [vmem:[%s5524_s1 + $0x410] sm:$0xff] }
  0x68   : > { %920 = vmatprep.mubr.f32.mxu0 %v359_v55  ;;  %1177 = vmatprep.mubr.f32.mxu1 %v361_v56  ;;  %v423_v55 = vld [vmem:[%s3806_s12 + $0x3c8] sm:$0xff]  ;;  %v425_v56 = vld [vmem:[%s3806_s12 + $0x3d8] sm:$0xff] }
  0x69   : > { %1598 = vmatpush1.msra.mxu1 %v768_v57  ;;  %921 = vmatmul.mubr.f32.gmra.mxu0 %v358_v58  ;;  %v752_v57 = vld [vmem:[%s5524_s1 + $0x610] sm:$0xff]  ;;  %v422_v58 = vld [vmem:[%s3806_s12 + $0x3c0] sm:$0xff] }
  0x6a   : > { %1178 = vmatmul.mubr.f32.gmra.mxu1 %v360_v59  ;;  %1342 = vmatprep.subr.mxu0 %v703_v60  ;;  %v424_v59 = vld [vmem:[%s3806_s12 + $0x3d0] sm:$0xff]  ;;  %v687_v60 = vld [vmem:[%s5524_s1 + $0x408] sm:$0xff] }
  0x6b   : > { %1599 = vmatprep.subr.mxu1 %v767_v61  ;;  %1343 = vmatpush1.msra.mxu0 %v702_v62  ;;  %v751_v61 = vld [vmem:[%s5524_s1 + $0x608] sm:$0xff]  ;;  %v686_v62 = vld [vmem:[%s5524_s1 + $0x400] sm:$0xff] }
  0x6c   : > { %926 = vmatprep.mubr.f32.mxu0 %v367_v63  ;;  %1183 = vmatprep.mubr.f32.mxu1 %v369_v0  ;;  %v431_v63 = vld [vmem:[%s3806_s12 + $0x408] sm:$0xff]  ;;  %v433_v0 = vld [vmem:[%s3806_s12 + $0x418] sm:$0xff] }
  0x6d   : > { %1600 = vmatpush1.msra.mxu1 %v766_v1  ;;  %927 = vmatmul.mubr.f32.gmra.mxu0 %v366_v2  ;;  %v750_v1 = vld [vmem:[%s5524_s1 + $0x600] sm:$0xff] }
  0x6e   : > { %1184 = vmatmul.mubr.f32.gmra.mxu1 %v368_v3  ;;  %1344 = vmatprep.subr.mxu0 %v701_v4  ;;  %v430_v2 = vld [vmem:[%s3806_s12 + $0x400] sm:$0xff]  ;;  %v432_v3 = vld [vmem:[%s3806_s12 + $0x410] sm:$0xff]  ;;  %v749_v4 = vld [vmem:[%s5524_s1 + $0x5f8] sm:$0xff] }
  0x6f   : > { %1601 = vmatprep.subr.mxu1 %v765_v5  ;;  %1345 = vmatpush1.msra.mxu0 %v700_v6  ;;  %v813_v5 = vld [vmem:[%s5524_s1 + $0x7f8] sm:$0xff]  ;;  %v748_v6 = vld [vmem:[%s5524_s1 + $0x5f0] sm:$0xff] }
  0x70   : > { %932 = vmatprep.mubr.f32.mxu0 %v375_v7  ;;  %1189 = vmatprep.mubr.f32.mxu1 %v377_v8  ;;  %v439_v7 = vld [vmem:[%s3806_s12 + $0x448] sm:$0xff]  ;;  %v441_v8 = vld [vmem:[%s3806_s12 + $0x458] sm:$0xff] }
  0x71   : > { %1602 = vmatpush1.msra.mxu1 %v764_v9  ;;  %933 = vmatmul.mubr.f32.gmra.mxu0 %v374_v10  ;;  %v812_v9 = vld [vmem:[%s5524_s1 + $0x7f0] sm:$0xff]  ;;  %v438_v10 = vld [vmem:[%s3806_s12 + $0x440] sm:$0xff] }
  0x72   : > { %1190 = vmatmul.mubr.f32.gmra.mxu1 %v376_v11  ;;  %1346 = vmatprep.subr.mxu0 %v699_v12  ;;  %v440_v11 = vld [vmem:[%s3806_s12 + $0x450] sm:$0xff]  ;;  %v747_v12 = vld [vmem:[%s5524_s1 + $0x5e8] sm:$0xff] }
  0x73   : > { %1603 = vmatprep.subr.mxu1 %v763_v13  ;;  %1347 = vmatpush1.msra.mxu0 %v698_v14  ;;  %v811_v13 = vld [vmem:[%s5524_s1 + $0x7e8] sm:$0xff]  ;;  %v746_v14 = vld [vmem:[%s5524_s1 + $0x5e0] sm:$0xff] }
  0x74   : > { %938 = vmatprep.mubr.f32.mxu0 %v383_v15  ;;  %1195 = vmatprep.mubr.f32.mxu1 %v385_v16  ;;  %v447_v15 = vld [vmem:[%s3806_s12 + $0x488] sm:$0xff]  ;;  %v449_v16 = vld [vmem:[%s3806_s12 + $0x498] sm:$0xff] }
  0x75   : > { %1604 = vmatpush1.msra.mxu1 %v762_v17  ;;  %939 = vmatmul.mubr.f32.gmra.mxu0 %v382_v18  ;;  %v810_v17 = vld [vmem:[%s5524_s1 + $0x7e0] sm:$0xff] }
  0x76   : > { %1196 = vmatmul.mubr.f32.gmra.mxu1 %v384_v19  ;;  %1348 = vmatprep.subr.mxu0 %v697_v20  ;;  %v446_v18 = vld [vmem:[%s3806_s12 + $0x480] sm:$0xff]  ;;  %v448_v19 = vld [vmem:[%s3806_s12 + $0x490] sm:$0xff]  ;;  %v745_v20 = vld [vmem:[%s5524_s1 + $0x5d8] sm:$0xff] }
  0x77   : > { %1605 = vmatprep.subr.mxu1 %v761_v21  ;;  %1349 = vmatpush1.msra.mxu0 %v696_v22  ;;  %v809_v21 = vld [vmem:[%s5524_s1 + $0x7d8] sm:$0xff]  ;;  %v744_v22 = vld [vmem:[%s5524_s1 + $0x5d0] sm:$0xff] }
  0x78   : > { %944 = vmatprep.mubr.f32.mxu0 %v391_v23  ;;  %1201 = vmatprep.mubr.f32.mxu1 %v393_v24  ;;  %v455_v23 = vld [vmem:[%s3806_s12 + $0x4c8] sm:$0xff]  ;;  %v457_v24 = vld [vmem:[%s3806_s12 + $0x4d8] sm:$0xff] }
  0x79   : > { %1606 = vmatpush1.msra.mxu1 %v760_v25  ;;  %945 = vmatmul.mubr.f32.gmra.mxu0 %v390_v26  ;;  %v808_v25 = vld [vmem:[%s5524_s1 + $0x7d0] sm:$0xff]  ;;  %v454_v26 = vld [vmem:[%s3806_s12 + $0x4c0] sm:$0xff] }
  0x7a   : > { %1202 = vmatmul.mubr.f32.gmra.mxu1 %v392_v27  ;;  %1350 = vmatprep.subr.mxu0 %v695_v28  ;;  %v456_v27 = vld [vmem:[%s3806_s12 + $0x4d0] sm:$0xff]  ;;  %v743_v28 = vld [vmem:[%s5524_s1 + $0x5c8] sm:$0xff] }
  0x7b   : > { %1607 = vmatprep.subr.mxu1 %v759_v29  ;;  %1351 = vmatpush1.msra.mxu0 %v694_v30  ;;  %v807_v29 = vld [vmem:[%s5524_s1 + $0x7c8] sm:$0xff]  ;;  %v742_v30 = vld [vmem:[%s5524_s1 + $0x5c0] sm:$0xff] }
  0x7c   : > { %950 = vmatprep.mubr.f32.mxu0 %v399_v31  ;;  %1207 = vmatprep.mubr.f32.mxu1 %v401_v32  ;;  %v463_v31 = vld [vmem:[%s3806_s12 + $0x508] sm:$0xff]  ;;  %v465_v32 = vld [vmem:[%s3806_s12 + $0x518] sm:$0xff] }
  0x7d   : > { %1608 = vmatpush1.msra.mxu1 %v758_v33  ;;  %951 = vmatmul.mubr.f32.gmra.mxu0 %v398_v34  ;;  %v806_v33 = vld [vmem:[%s5524_s1 + $0x7c0] sm:$0xff] }
  0x7e   : > { %1208 = vmatmul.mubr.f32.gmra.mxu1 %v400_v35  ;;  %1352 = vmatprep.subr.mxu0 %v693_v36  ;;  %v462_v34 = vld [vmem:[%s3806_s12 + $0x500] sm:$0xff]  ;;  %v464_v35 = vld [vmem:[%s3806_s12 + $0x510] sm:$0xff]  ;;  %v741_v36 = vld [vmem:[%s5524_s1 + $0x5b8] sm:$0xff] }
  0x7f   : > { %1609 = vmatprep.subr.mxu1 %v757_v37  ;;  %1353 = vmatpush1.msra.mxu0 %v692_v38  ;;  %v805_v37 = vld [vmem:[%s5524_s1 + $0x7b8] sm:$0xff]  ;;  %v740_v38 = vld [vmem:[%s5524_s1 + $0x5b0] sm:$0xff] }
  0x80   : > { %956 = vmatprep.mubr.f32.mxu0 %v407_v39  ;;  %1213 = vmatprep.mubr.f32.mxu1 %v409_v40  ;;  %v471_v39 = vld [vmem:[%s3806_s12 + $0x548] sm:$0xff]  ;;  %v473_v40 = vld [vmem:[%s3806_s12 + $0x558] sm:$0xff] }
  0x81   : > { %1610 = vmatpush1.msra.mxu1 %v756_v41  ;;  %957 = vmatmul.mubr.f32.gmra.mxu0 %v406_v42  ;;  %v804_v41 = vld [vmem:[%s5524_s1 + $0x7b0] sm:$0xff]  ;;  %v470_v42 = vld [vmem:[%s3806_s12 + $0x540] sm:$0xff] }
  0x82   : > { %1214 = vmatmul.mubr.f32.gmra.mxu1 %v408_v43  ;;  %1354 = vmatprep.subr.mxu0 %v691_v44  ;;  %v472_v43 = vld [vmem:[%s3806_s12 + $0x550] sm:$0xff]  ;;  %v739_v44 = vld [vmem:[%s5524_s1 + $0x5a8] sm:$0xff] }
  0x83   : > { %1611 = vmatprep.subr.mxu1 %v755_v45  ;;  %1355 = vmatpush1.msra.mxu0 %v690_v46  ;;  %v803_v45 = vld [vmem:[%s5524_s1 + $0x7a8] sm:$0xff]  ;;  %v738_v46 = vld [vmem:[%s5524_s1 + $0x5a0] sm:$0xff] }
  0x84   : > { %962 = vmatprep.mubr.f32.mxu0 %v415_v47  ;;  %1219 = vmatprep.mubr.f32.mxu1 %v417_v48  ;;  %v479_v47 = vld [vmem:[%s3806_s12 + $0x588] sm:$0xff]  ;;  %v481_v48 = vld [vmem:[%s3806_s12 + $0x598] sm:$0xff] }
  0x85   : > { %1612 = vmatpush1.msra.mxu1 %v754_v49  ;;  %963 = vmatmul.mubr.f32.gmra.mxu0 %v414_v50  ;;  %v802_v49 = vld [vmem:[%s5524_s1 + $0x7a0] sm:$0xff] }
  0x86   : > { %1220 = vmatmul.mubr.f32.gmra.mxu1 %v416_v51  ;;  %1356 = vmatprep.subr.mxu0 %v689_v52  ;;  %v478_v50 = vld [vmem:[%s3806_s12 + $0x580] sm:$0xff]  ;;  %v480_v51 = vld [vmem:[%s3806_s12 + $0x590] sm:$0xff]  ;;  %v737_v52 = vld [vmem:[%s5524_s1 + $0x598] sm:$0xff] }
  0x87   : > { %1613 = vmatprep.subr.mxu1 %v753_v53  ;;  %1357 = vmatpush1.msra.mxu0 %v688_v54  ;;  %v801_v53 = vld [vmem:[%s5524_s1 + $0x798] sm:$0xff]  ;;  %v736_v54 = vld [vmem:[%s5524_s1 + $0x590] sm:$0xff] }
  0x88   : > { %968 = vmatprep.mubr.f32.mxu0 %v423_v55  ;;  %1225 = vmatprep.mubr.f32.mxu1 %v425_v56  ;;  %v487_v55 = vld [vmem:[%s3806_s12 + $0x5c8] sm:$0xff]  ;;  %v489_v56 = vld [vmem:[%s3806_s12 + $0x5d8] sm:$0xff] }
  0x89   : > { %1614 = vmatpush1.msra.mxu1 %v752_v57  ;;  %969 = vmatmul.mubr.f32.gmra.mxu0 %v422_v58  ;;  %v800_v57 = vld [vmem:[%s5524_s1 + $0x790] sm:$0xff]  ;;  %v486_v58 = vld [vmem:[%s3806_s12 + $0x5c0] sm:$0xff] }
  0x8a   : > { %1226 = vmatmul.mubr.f32.gmra.mxu1 %v424_v59  ;;  %1358 = vmatprep.subr.mxu0 %v687_v60  ;;  %v488_v59 = vld [vmem:[%s3806_s12 + $0x5d0] sm:$0xff]  ;;  %v735_v60 = vld [vmem:[%s5524_s1 + $0x588] sm:$0xff] }
  0x8b   : > { %1615 = vmatprep.subr.mxu1 %v751_v61  ;;  %1359 = vmatpush1.msra.mxu0 %v686_v62  ;;  %v799_v61 = vld [vmem:[%s5524_s1 + $0x788] sm:$0xff]  ;;  %v734_v62 = vld [vmem:[%s5524_s1 + $0x580] sm:$0xff] }
  0x8c   : > { %974 = vmatprep.mubr.f32.mxu0 %v431_v63  ;;  %1231 = vmatprep.mubr.f32.mxu1 %v433_v0  ;;  %v495_v63 = vld [vmem:[%s3806_s12 + $0x608] sm:$0xff]  ;;  %v497_v0 = vld [vmem:[%s3806_s12 + $0x618] sm:$0xff] }
  0x8d   : > { %1616 = vmatpush1.msra.mxu1 %v750_v1  ;;  %975 = vmatmul.mubr.f32.gmra.mxu0 %v430_v2  ;;  %v798_v1 = vld [vmem:[%s5524_s1 + $0x780] sm:$0xff] }
  0x8e   : > { %1232 = vmatmul.mubr.f32.gmra.mxu1 %v432_v3  ;;  %1360 = vmatprep.subr.mxu0 %v749_v4  ;;  %v494_v2 = vld [vmem:[%s3806_s12 + $0x600] sm:$0xff]  ;;  %v496_v3 = vld [vmem:[%s3806_s12 + $0x610] sm:$0xff]  ;;  %v733_v4 = vld [vmem:[%s5524_s1 + $0x578] sm:$0xff] }
  0x8f   : > { %1617 = vmatprep.subr.mxu1 %v813_v5  ;;  %1361 = vmatpush2.msra.mxu0 %v748_v6  ;;  %v797_v5 = vld [vmem:[%s5524_s1 + $0x778] sm:$0xff]  ;;  %v732_v6 = vld [vmem:[%s5524_s1 + $0x570] sm:$0xff] }
  0x90   : > { %980 = vmatprep.mubr.f32.mxu0 %v439_v7  ;;  %1237 = vmatprep.mubr.f32.mxu1 %v441_v8  ;;  %v503_v7 = vld [vmem:[%s3806_s12 + $0x648] sm:$0xff]  ;;  %v505_v8 = vld [vmem:[%s3806_s12 + $0x658] sm:$0xff] }
  0x91   : > { %1618 = vmatpush2.msra.mxu1 %v812_v9  ;;  %981 = vmatmul.mubr.f32.gmra.mxu0 %v438_v10  ;;  %v796_v9 = vld [vmem:[%s5524_s1 + $0x770] sm:$0xff]  ;;  %v502_v10 = vld [vmem:[%s3806_s12 + $0x640] sm:$0xff] }
  0x92   : > { %1238 = vmatmul.mubr.f32.gmra.mxu1 %v440_v11  ;;  %1362 = vmatprep.subr.mxu0 %v747_v12  ;;  %v504_v11 = vld [vmem:[%s3806_s12 + $0x650] sm:$0xff]  ;;  %v731_v12 = vld [vmem:[%s5524_s1 + $0x568] sm:$0xff] }
  0x93   : > { %1619 = vmatprep.subr.mxu1 %v811_v13  ;;  %1363 = vmatpush2.msra.mxu0 %v746_v14  ;;  %v795_v13 = vld [vmem:[%s5524_s1 + $0x768] sm:$0xff]  ;;  %v730_v14 = vld [vmem:[%s5524_s1 + $0x560] sm:$0xff] }
  0x94   : > { %986 = vmatprep.mubr.f32.mxu0 %v447_v15  ;;  %1243 = vmatprep.mubr.f32.mxu1 %v449_v16  ;;  %v511_v15 = vld [vmem:[%s3806_s12 + $0x688] sm:$0xff]  ;;  %v513_v16 = vld [vmem:[%s3806_s12 + $0x698] sm:$0xff] }
  0x95   : > { %1620 = vmatpush2.msra.mxu1 %v810_v17  ;;  %987 = vmatmul.mubr.f32.gmra.mxu0 %v446_v18  ;;  %v794_v17 = vld [vmem:[%s5524_s1 + $0x760] sm:$0xff] }
  0x96   : > { %1244 = vmatmul.mubr.f32.gmra.mxu1 %v448_v19  ;;  %1364 = vmatprep.subr.mxu0 %v745_v20  ;;  %v510_v18 = vld [vmem:[%s3806_s12 + $0x680] sm:$0xff]  ;;  %v512_v19 = vld [vmem:[%s3806_s12 + $0x690] sm:$0xff]  ;;  %v729_v20 = vld [vmem:[%s5524_s1 + $0x558] sm:$0xff] }
  0x97   : > { %1621 = vmatprep.subr.mxu1 %v809_v21  ;;  %1365 = vmatpush2.msra.mxu0 %v744_v22  ;;  %v793_v21 = vld [vmem:[%s5524_s1 + $0x758] sm:$0xff]  ;;  %v728_v22 = vld [vmem:[%s5524_s1 + $0x550] sm:$0xff] }
  0x98   : > { %992 = vmatprep.mubr.f32.mxu0 %v455_v23  ;;  %1249 = vmatprep.mubr.f32.mxu1 %v457_v24  ;;  %v519_v23 = vld [vmem:[%s3806_s12 + $0x6c8] sm:$0xff]  ;;  %v521_v24 = vld [vmem:[%s3806_s12 + $0x6d8] sm:$0xff] }
  0x99   : > { %1622 = vmatpush2.msra.mxu1 %v808_v25  ;;  %993 = vmatmul.mubr.f32.gmra.mxu0 %v454_v26  ;;  %v792_v25 = vld [vmem:[%s5524_s1 + $0x750] sm:$0xff]  ;;  %v518_v26 = vld [vmem:[%s3806_s12 + $0x6c0] sm:$0xff] }
  0x9a   : > { %1250 = vmatmul.mubr.f32.gmra.mxu1 %v456_v27  ;;  %1366 = vmatprep.subr.mxu0 %v743_v28  ;;  %v520_v27 = vld [vmem:[%s3806_s12 + $0x6d0] sm:$0xff]  ;;  %v727_v28 = vld [vmem:[%s5524_s1 + $0x548] sm:$0xff] }
  0x9b   : > { %1623 = vmatprep.subr.mxu1 %v807_v29  ;;  %1367 = vmatpush2.msra.mxu0 %v742_v30  ;;  %v791_v29 = vld [vmem:[%s5524_s1 + $0x748] sm:$0xff]  ;;  %v726_v30 = vld [vmem:[%s5524_s1 + $0x540] sm:$0xff] }
  0x9c   : > { %998 = vmatprep.mubr.f32.mxu0 %v463_v31  ;;  %1255 = vmatprep.mubr.f32.mxu1 %v465_v32  ;;  %v527_v31 = vld [vmem:[%s3806_s12 + $0x708] sm:$0xff]  ;;  %v529_v32 = vld [vmem:[%s3806_s12 + $0x718] sm:$0xff] }
  0x9d   : > { %1624 = vmatpush2.msra.mxu1 %v806_v33  ;;  %999 = vmatmul.mubr.f32.gmra.mxu0 %v462_v34  ;;  %v790_v33 = vld [vmem:[%s5524_s1 + $0x740] sm:$0xff] }
  0x9e   : > { %1256 = vmatmul.mubr.f32.gmra.mxu1 %v464_v35  ;;  %1368 = vmatprep.subr.mxu0 %v741_v36  ;;  %v526_v34 = vld [vmem:[%s3806_s12 + $0x700] sm:$0xff]  ;;  %v528_v35 = vld [vmem:[%s3806_s12 + $0x710] sm:$0xff]  ;;  %v725_v36 = vld [vmem:[%s5524_s1 + $0x538] sm:$0xff] }
  0x9f   : > { %1625 = vmatprep.subr.mxu1 %v805_v37  ;;  %1369 = vmatpush2.msra.mxu0 %v740_v38  ;;  %v789_v37 = vld [vmem:[%s5524_s1 + $0x738] sm:$0xff]  ;;  %v724_v38 = vld [vmem:[%s5524_s1 + $0x530] sm:$0xff] }
  0xa0   : > { %1004 = vmatprep.mubr.f32.mxu0 %v471_v39  ;;  %1261 = vmatprep.mubr.f32.mxu1 %v473_v40  ;;  %v535_v39 = vld [vmem:[%s3806_s12 + $0x748] sm:$0xff]  ;;  %v537_v40 = vld [vmem:[%s3806_s12 + $0x758] sm:$0xff] }
  0xa1   : > { %1626 = vmatpush2.msra.mxu1 %v804_v41  ;;  %1005 = vmatmul.mubr.f32.gmra.mxu0 %v470_v42  ;;  %v788_v41 = vld [vmem:[%s5524_s1 + $0x730] sm:$0xff]  ;;  %v534_v42 = vld [vmem:[%s3806_s12 + $0x740] sm:$0xff] }
  0xa2   : > { %1262 = vmatmul.mubr.f32.gmra.mxu1 %v472_v43  ;;  %1370 = vmatprep.subr.mxu0 %v739_v44  ;;  %v536_v43 = vld [vmem:[%s3806_s12 + $0x750] sm:$0xff]  ;;  %v723_v44 = vld [vmem:[%s5524_s1 + $0x528] sm:$0xff] }
  0xa3   : > { %1627 = vmatprep.subr.mxu1 %v803_v45  ;;  %1371 = vmatpush2.msra.mxu0 %v738_v46  ;;  %v787_v45 = vld [vmem:[%s5524_s1 + $0x728] sm:$0xff]  ;;  %v722_v46 = vld [vmem:[%s5524_s1 + $0x520] sm:$0xff] }
  0xa4   : > { %1010 = vmatprep.mubr.f32.mxu0 %v479_v47  ;;  %1267 = vmatprep.mubr.f32.mxu1 %v481_v48  ;;  %v543_v47 = vld [vmem:[%s3806_s12 + $0x788] sm:$0xff]  ;;  %v545_v48 = vld [vmem:[%s3806_s12 + $0x798] sm:$0xff] }
  0xa5   : > { %1628 = vmatpush2.msra.mxu1 %v802_v49  ;;  %1011 = vmatmul.mubr.f32.gmra.mxu0 %v478_v50  ;;  %v786_v49 = vld [vmem:[%s5524_s1 + $0x720] sm:$0xff] }
  0xa6   : > { %1268 = vmatmul.mubr.f32.gmra.mxu1 %v480_v51  ;;  %1372 = vmatprep.subr.mxu0 %v737_v52  ;;  %v542_v50 = vld [vmem:[%s3806_s12 + $0x780] sm:$0xff]  ;;  %v544_v51 = vld [vmem:[%s3806_s12 + $0x790] sm:$0xff]  ;;  %v721_v52 = vld [vmem:[%s5524_s1 + $0x518] sm:$0xff] }
  0xa7   : > { %1629 = vmatprep.subr.mxu1 %v801_v53  ;;  %1373 = vmatpush2.msra.mxu0 %v736_v54  ;;  %v785_v53 = vld [vmem:[%s5524_s1 + $0x718] sm:$0xff]  ;;  %v720_v54 = vld [vmem:[%s5524_s1 + $0x510] sm:$0xff] }
  0xa8   : > { %1016 = vmatprep.mubr.f32.mxu0 %v487_v55  ;;  %1273 = vmatprep.mubr.f32.mxu1 %v489_v56  ;;  %v551_v55 = vld [vmem:[%s3806_s12 + $0x7c8] sm:$0xff]  ;;  %v553_v56 = vld [vmem:[%s3806_s12 + $0x7d8] sm:$0xff] }
  0xa9   : > { %1630 = vmatpush2.msra.mxu1 %v800_v57  ;;  %1017 = vmatmul.mubr.f32.gmra.mxu0 %v486_v58  ;;  %v784_v57 = vld [vmem:[%s5524_s1 + $0x710] sm:$0xff]  ;;  %v550_v58 = vld [vmem:[%s3806_s12 + $0x7c0] sm:$0xff] }
  0xaa   : > { %1274 = vmatmul.mubr.f32.gmra.mxu1 %v488_v59  ;;  %1374 = vmatprep.subr.mxu0 %v735_v60  ;;  %v552_v59 = vld [vmem:[%s3806_s12 + $0x7d0] sm:$0xff]  ;;  %v719_v60 = vld [vmem:[%s5524_s1 + $0x508] sm:$0xff] }
  0xab   : > { %1631 = vmatprep.subr.mxu1 %v799_v61  ;;  %1375 = vmatpush2.msra.mxu0 %v734_v62  ;;  %v783_v61 = vld [vmem:[%s5524_s1 + $0x708] sm:$0xff]  ;;  %v718_v62 = vld [vmem:[%s5524_s1 + $0x500] sm:$0xff] }
  0xac   : > { %1022 = vmatprep.mubr.f32.mxu0 %v495_v63  ;;  %1279 = vmatprep.mubr.f32.mxu1 %v497_v0  ;;  %v307_v63 = vld [vmem:[%s3806_s12 + $0x28] sm:$0xff]  ;;  %v782_v0 = vld [vmem:[%s5524_s1 + $0x700] sm:$0xff] }
  0xad   : > { %1632 = vmatpush2.msra.mxu1 %v798_v1  ;;  %1023 = vmatmul.mubr.f32.gmra.mxu0 %v494_v2  ;;  %v309_v1 = vld [vmem:[%s3806_s12 + $0x38] sm:$0xff]  ;;  %v306_v2 = vld [vmem:[%s3806_s12 + $0x20] sm:$0xff] }
  0xae   : > { %1280 = vmatmul.mubr.f32.gmra.mxu1 %v496_v3  ;;  %1376 = vmatprep.subr.mxu0 %v733_v4  ;;  %v308_v3 = vld [vmem:[%s3806_s12 + $0x30] sm:$0xff]  ;;  %v315_v4 = vld [vmem:[%s3806_s12 + $0x68] sm:$0xff] }
  0xaf   : > { %1633 = vmatprep.subr.mxu1 %v797_v5  ;;  %1377 = vmatpush2.msra.mxu0 %v732_v6  ;;  %v317_v5 = vld [vmem:[%s3806_s12 + $0x78] sm:$0xff]  ;;  %v314_v6 = vld [vmem:[%s3806_s12 + $0x60] sm:$0xff] }
  0xb0   : > { %1028 = vmatprep.mubr.f32.mxu0 %v503_v7  ;;  %1285 = vmatprep.mubr.f32.mxu1 %v505_v8  ;;  %v316_v7 = vld [vmem:[%s3806_s12 + $0x70] sm:$0xff]  ;;  %v323_v8 = vld [vmem:[%s3806_s12 + $0xa8] sm:$0xff] }
  0xb1   : > { %1634 = vmatpush2.msra.mxu1 %v796_v9  ;;  %1029 = vmatmul.mubr.f32.gmra.mxu0 %v502_v10  ;;  %v325_v9 = vld [vmem:[%s3806_s12 + $0xb8] sm:$0xff]  ;;  %v322_v10 = vld [vmem:[%s3806_s12 + $0xa0] sm:$0xff] }
  0xb2   : > { %1286 = vmatmul.mubr.f32.gmra.mxu1 %v504_v11  ;;  %1378 = vmatprep.subr.mxu0 %v731_v12  ;;  %v324_v11 = vld [vmem:[%s3806_s12 + $0xb0] sm:$0xff]  ;;  %v331_v12 = vld [vmem:[%s3806_s12 + $0xe8] sm:$0xff] }
  0xb3   : > { %1635 = vmatprep.subr.mxu1 %v795_v13  ;;  %1379 = vmatpush2.msra.mxu0 %v730_v14  ;;  %v333_v13 = vld [vmem:[%s3806_s12 + $0xf8] sm:$0xff]  ;;  %v330_v14 = vld [vmem:[%s3806_s12 + $0xe0] sm:$0xff] }
  0xb4   : > { %1034 = vmatprep.mubr.f32.mxu0 %v511_v15  ;;  %1291 = vmatprep.mubr.f32.mxu1 %v513_v16  ;;  %v332_v15 = vld [vmem:[%s3806_s12 + $0xf0] sm:$0xff]  ;;  %v339_v16 = vld [vmem:[%s3806_s12 + $0x128] sm:$0xff] }
  0xb5   : > { %1636 = vmatpush2.msra.mxu1 %v794_v17  ;;  %1035 = vmatmul.mubr.f32.gmra.mxu0 %v510_v18  ;;  %v341_v17 = vld [vmem:[%s3806_s12 + $0x138] sm:$0xff]  ;;  %v338_v18 = vld [vmem:[%s3806_s12 + $0x120] sm:$0xff] }
  0xb6   : > { %1292 = vmatmul.mubr.f32.gmra.mxu1 %v512_v19  ;;  %1380 = vmatprep.subr.mxu0 %v729_v20  ;;  %v340_v19 = vld [vmem:[%s3806_s12 + $0x130] sm:$0xff]  ;;  %v347_v20 = vld [vmem:[%s3806_s12 + $0x168] sm:$0xff] }
  0xb7   : > { %1637 = vmatprep.subr.mxu1 %v793_v21  ;;  %1381 = vmatpush2.msra.mxu0 %v728_v22  ;;  %v349_v21 = vld [vmem:[%s3806_s12 + $0x178] sm:$0xff]  ;;  %v346_v22 = vld [vmem:[%s3806_s12 + $0x160] sm:$0xff] }
  0xb8   : > { %1040 = vmatprep.mubr.f32.mxu0 %v519_v23  ;;  %1297 = vmatprep.mubr.f32.mxu1 %v521_v24  ;;  %v348_v23 = vld [vmem:[%s3806_s12 + $0x170] sm:$0xff]  ;;  %v355_v24 = vld [vmem:[%s3806_s12 + $0x1a8] sm:$0xff] }
  0xb9   : > { %1638 = vmatpush2.msra.mxu1 %v792_v25  ;;  %1041 = vmatmul.mubr.f32.gmra.mxu0 %v518_v26  ;;  %v357_v25 = vld [vmem:[%s3806_s12 + $0x1b8] sm:$0xff]  ;;  %v354_v26 = vld [vmem:[%s3806_s12 + $0x1a0] sm:$0xff] }
  0xba   : > { %1298 = vmatmul.mubr.f32.gmra.mxu1 %v520_v27  ;;  %1382 = vmatprep.subr.mxu0 %v727_v28  ;;  %v356_v27 = vld [vmem:[%s3806_s12 + $0x1b0] sm:$0xff]  ;;  %v363_v28 = vld [vmem:[%s3806_s12 + $0x1e8] sm:$0xff] }
  0xbb   : > { %1639 = vmatprep.subr.mxu1 %v791_v29  ;;  %1383 = vmatpush2.msra.mxu0 %v726_v30  ;;  %v365_v29 = vld [vmem:[%s3806_s12 + $0x1f8] sm:$0xff]  ;;  %v362_v30 = vld [vmem:[%s3806_s12 + $0x1e0] sm:$0xff] }
  0xbc   : > { %1046 = vmatprep.mubr.f32.mxu0 %v527_v31  ;;  %1303 = vmatprep.mubr.f32.mxu1 %v529_v32  ;;  %v364_v31 = vld [vmem:[%s3806_s12 + $0x1f0] sm:$0xff]  ;;  %v371_v32 = vld [vmem:[%s3806_s12 + $0x228] sm:$0xff] }
  0xbd   : > { %1640 = vmatpush2.msra.mxu1 %v790_v33  ;;  %1047 = vmatmul.mubr.f32.gmra.mxu0 %v526_v34  ;;  %v373_v33 = vld [vmem:[%s3806_s12 + $0x238] sm:$0xff]  ;;  %v370_v34 = vld [vmem:[%s3806_s12 + $0x220] sm:$0xff] }
  0xbe   : > { %1304 = vmatmul.mubr.f32.gmra.mxu1 %v528_v35  ;;  %1384 = vmatprep.subr.mxu0 %v725_v36  ;;  %v372_v35 = vld [vmem:[%s3806_s12 + $0x230] sm:$0xff]  ;;  %v379_v36 = vld [vmem:[%s3806_s12 + $0x268] sm:$0xff] }
  0xbf   : > { %1641 = vmatprep.subr.mxu1 %v789_v37  ;;  %1385 = vmatpush2.msra.mxu0 %v724_v38  ;;  %v381_v37 = vld [vmem:[%s3806_s12 + $0x278] sm:$0xff]  ;;  %v378_v38 = vld [vmem:[%s3806_s12 + $0x260] sm:$0xff] }
  0xc0   : > { %1052 = vmatprep.mubr.f32.mxu0 %v535_v39  ;;  %1309 = vmatprep.mubr.f32.mxu1 %v537_v40  ;;  %v380_v39 = vld [vmem:[%s3806_s12 + $0x270] sm:$0xff]  ;;  %v387_v40 = vld [vmem:[%s3806_s12 + $0x2a8] sm:$0xff] }
  0xc1   : > { %1642 = vmatpush2.msra.mxu1 %v788_v41  ;;  %1053 = vmatmul.mubr.f32.gmra.mxu0 %v534_v42  ;;  %v389_v41 = vld [vmem:[%s3806_s12 + $0x2b8] sm:$0xff]  ;;  %v386_v42 = vld [vmem:[%s3806_s12 + $0x2a0] sm:$0xff] }
  0xc2   : > { %1310 = vmatmul.mubr.f32.gmra.mxu1 %v536_v43  ;;  %1386 = vmatprep.subr.mxu0 %v723_v44  ;;  %v388_v43 = vld [vmem:[%s3806_s12 + $0x2b0] sm:$0xff]  ;;  %v395_v44 = vld [vmem:[%s3806_s12 + $0x2e8] sm:$0xff] }
  0xc3   : > { %1643 = vmatprep.subr.mxu1 %v787_v45  ;;  %1387 = vmatpush2.msra.mxu0 %v722_v46  ;;  %v397_v45 = vld [vmem:[%s3806_s12 + $0x2f8] sm:$0xff]  ;;  %v394_v46 = vld [vmem:[%s3806_s12 + $0x2e0] sm:$0xff] }
  0xc4   : > { %1058 = vmatprep.mubr.f32.mxu0 %v543_v47  ;;  %1315 = vmatprep.mubr.f32.mxu1 %v545_v48  ;;  %v396_v47 = vld [vmem:[%s3806_s12 + $0x2f0] sm:$0xff]  ;;  %v403_v48 = vld [vmem:[%s3806_s12 + $0x328] sm:$0xff] }
  0xc5   : > { %1644 = vmatpush2.msra.mxu1 %v786_v49  ;;  %1059 = vmatmul.mubr.f32.gmra.mxu0 %v542_v50  ;;  %v405_v49 = vld [vmem:[%s3806_s12 + $0x338] sm:$0xff]  ;;  %v402_v50 = vld [vmem:[%s3806_s12 + $0x320] sm:$0xff] }
  0xc6   : > { %1316 = vmatmul.mubr.f32.gmra.mxu1 %v544_v51  ;;  %1388 = vmatprep.subr.mxu0 %v721_v52  ;;  %v404_v51 = vld [vmem:[%s3806_s12 + $0x330] sm:$0xff]  ;;  %v411_v52 = vld [vmem:[%s3806_s12 + $0x368] sm:$0xff] }
  0xc7   : > { %1645 = vmatprep.subr.mxu1 %v785_v53  ;;  %1389 = vmatpush2.msra.mxu0 %v720_v54  ;;  %v413_v53 = vld [vmem:[%s3806_s12 + $0x378] sm:$0xff]  ;;  %v410_v54 = vld [vmem:[%s3806_s12 + $0x360] sm:$0xff] }
  0xc8   : > { %1064 = vmatprep.mubr.f32.mxu0 %v551_v55  ;;  %1321 = vmatprep.mubr.f32.mxu1 %v553_v56  ;;  %v412_v55 = vld [vmem:[%s3806_s12 + $0x370] sm:$0xff]  ;;  %v419_v56 = vld [vmem:[%s3806_s12 + $0x3a8] sm:$0xff] }
  0xc9   : > { %1646 = vmatpush2.msra.mxu1 %v784_v57  ;;  %1065 = vmatmul.mubr.f32.gmra.mxu0 %v550_v58  ;;  %v421_v57 = vld [vmem:[%s3806_s12 + $0x3b8] sm:$0xff]  ;;  %v418_v58 = vld [vmem:[%s3806_s12 + $0x3a0] sm:$0xff] }
  0xca   : > { %1322 = vmatmul.mubr.f32.gmra.mxu1 %v552_v59  ;;  %1390 = vmatprep.subr.mxu0 %v719_v60  ;;  %v420_v59 = vld [vmem:[%s3806_s12 + $0x3b0] sm:$0xff]  ;;  %v427_v60 = vld [vmem:[%s3806_s12 + $0x3e8] sm:$0xff] }
  0xcb   : > { %1647 = vmatprep.subr.mxu1 %v783_v61  ;;  %1391 = vmatpush2.msra.mxu0 %v718_v62  ;;  %v429_v61 = vld [vmem:[%s3806_s12 + $0x3f8] sm:$0xff]  ;;  %v426_v62 = vld [vmem:[%s3806_s12 + $0x3e0] sm:$0xff] }
  0xcc   : > { %1392 = vmatprep.mubr.f32.mxu0 %v307_v63  ;;  %1648 = vmatpush2.msra.mxu1 %v782_v0  ;;  %v428_v63 = vld [vmem:[%s3806_s12 + $0x3f0] sm:$0xff]  ;;  %v435_v0 = vld [vmem:[%s3806_s12 + $0x428] sm:$0xff] }
  0xcd   : > { %1649 = vmatprep.mubr.f32.mxu1 %v309_v1  ;;  %1393 = vmatmul.mubr.f32.vlgmr.msra.gmra.mxu0 %v306_v2  ;;  %v437_v1 = vld [vmem:[%s3806_s12 + $0x438] sm:$0xff]  ;;  %v434_v2 = vld [vmem:[%s3806_s12 + $0x420] sm:$0xff] }
  0xce   : > { %1650 = vmatmul.mubr.f32.vlgmr.msra.gmra.mxu1 %v308_v3  ;;  %1398 = vmatprep.mubr.f32.mxu0 %v315_v4  ;;  %v436_v3 = vld [vmem:[%s3806_s12 + $0x430] sm:$0xff]  ;;  %v443_v4 = vld [vmem:[%s3806_s12 + $0x468] sm:$0xff] }
  0xcf   : > { %1655 = vmatprep.mubr.f32.mxu1 %v317_v5  ;;  %v445_v5 = vld [vmem:[%s3806_s12 + $0x478] sm:$0xff] }
  0xd1   : > { %1399 = vmatmul.mubr.f32.gmra.mxu0 %v314_v6 }
  0xd2   : > { %1656 = vmatmul.mubr.f32.gmra.mxu1 %v316_v7  ;;  %1404 = vmatprep.mubr.f32.mxu0 %v323_v8 }
  0xd3   : > { %1661 = vmatprep.mubr.f32.mxu1 %v325_v9  ;;  %v442_v9 = vld [vmem:[%s3806_s12 + $0x460] sm:$0xff] }
  0xd5   : > { %1405 = vmatmul.mubr.f32.gmra.mxu0 %v322_v10  ;;  %v444_v10 = vld [vmem:[%s3806_s12 + $0x470] sm:$0xff] }
  0xd6   : > { %1662 = vmatmul.mubr.f32.gmra.mxu1 %v324_v11  ;;  %1410 = vmatprep.mubr.f32.mxu0 %v331_v12 }
  0xd7   : > { %1667 = vmatprep.mubr.f32.mxu1 %v333_v13  ;;  %v451_v13 = vld [vmem:[%s3806_s12 + $0x4a8] sm:$0xff] }
  0xd9   : > { %1411 = vmatmul.mubr.f32.gmra.mxu0 %v330_v14  ;;  %v453_v14 = vld [vmem:[%s3806_s12 + $0x4b8] sm:$0xff] }
  0xda   : > { %1668 = vmatmul.mubr.f32.gmra.mxu1 %v332_v15  ;;  %1416 = vmatprep.mubr.f32.mxu0 %v339_v16 }
  0xdb   : > { %1673 = vmatprep.mubr.f32.mxu1 %v341_v17 }
  0xdd   : > { %1417 = vmatmul.mubr.f32.gmra.mxu0 %v338_v18 }
  0xde   : > { %1674 = vmatmul.mubr.f32.gmra.mxu1 %v340_v19  ;;  %1422 = vmatprep.mubr.f32.mxu0 %v347_v20  ;;  %v450_v19 = vld [vmem:[%s3806_s12 + $0x4a0] sm:$0xff]  ;;  %v452_v20 = vld [vmem:[%s3806_s12 + $0x4b0] sm:$0xff] }
  0xdf   : > { %1679 = vmatprep.mubr.f32.mxu1 %v349_v21 }
  0xe1   : > { %1423 = vmatmul.mubr.f32.gmra.mxu0 %v346_v22 }
  0xe2   : > { %1680 = vmatmul.mubr.f32.gmra.mxu1 %v348_v23  ;;  %1428 = vmatprep.mubr.f32.mxu0 %v355_v24  ;;  %v459_v23 = vld [vmem:[%s3806_s12 + $0x4e8] sm:$0xff]  ;;  %v461_v24 = vld [vmem:[%s3806_s12 + $0x4f8] sm:$0xff] }
  0xe3   : > { %1685 = vmatprep.mubr.f32.mxu1 %v357_v25 }
  0xe5   : > { %1429 = vmatmul.mubr.f32.gmra.mxu0 %v354_v26 }
  0xe6   : > { %1686 = vmatmul.mubr.f32.gmra.mxu1 %v356_v27  ;;  %1434 = vmatprep.mubr.f32.mxu0 %v363_v28 }
  0xe7   : > { %1691 = vmatprep.mubr.f32.mxu1 %v365_v29  ;;  %v458_v29 = vld [vmem:[%s3806_s12 + $0x4e0] sm:$0xff] }
  0xe9   : > { %1435 = vmatmul.mubr.f32.gmra.mxu0 %v362_v30  ;;  %v460_v30 = vld [vmem:[%s3806_s12 + $0x4f0] sm:$0xff] }
  0xea   : > { %1692 = vmatmul.mubr.f32.gmra.mxu1 %v364_v31  ;;  %1440 = vmatprep.mubr.f32.mxu0 %v371_v32 }
  0xeb   : > { %1697 = vmatprep.mubr.f32.mxu1 %v373_v33  ;;  %v467_v33 = vld [vmem:[%s3806_s12 + $0x528] sm:$0xff] }
  0xed   : > { %1441 = vmatmul.mubr.f32.gmra.mxu0 %v370_v34  ;;  %v469_v34 = vld [vmem:[%s3806_s12 + $0x538] sm:$0xff] }
  0xee   : > { %1698 = vmatmul.mubr.f32.gmra.mxu1 %v372_v35  ;;  %1446 = vmatprep.mubr.f32.mxu0 %v379_v36 }
  0xef   : > { %1703 = vmatprep.mubr.f32.mxu1 %v381_v37 }
  0xf1   : > { %1447 = vmatmul.mubr.f32.gmra.mxu0 %v378_v38 }
  0xf2   : > { %1704 = vmatmul.mubr.f32.gmra.mxu1 %v380_v39  ;;  %1452 = vmatprep.mubr.f32.mxu0 %v387_v40  ;;  %v466_v39 = vld [vmem:[%s3806_s12 + $0x520] sm:$0xff]  ;;  %v468_v40 = vld [vmem:[%s3806_s12 + $0x530] sm:$0xff] }
  0xf3   : > { %1709 = vmatprep.mubr.f32.mxu1 %v389_v41 }
  0xf5   : > { %1453 = vmatmul.mubr.f32.gmra.mxu0 %v386_v42 }
  0xf6   : > { %1710 = vmatmul.mubr.f32.gmra.mxu1 %v388_v43  ;;  %1458 = vmatprep.mubr.f32.mxu0 %v395_v44  ;;  %v475_v43 = vld [vmem:[%s3806_s12 + $0x568] sm:$0xff]  ;;  %v477_v44 = vld [vmem:[%s3806_s12 + $0x578] sm:$0xff] }
  0xf7   : > { %1715 = vmatprep.mubr.f32.mxu1 %v397_v45 }
  0xf9   : > { %1459 = vmatmul.mubr.f32.gmra.mxu0 %v394_v46 }
  0xfa   : > { %1716 = vmatmul.mubr.f32.gmra.mxu1 %v396_v47  ;;  %1464 = vmatprep.mubr.f32.mxu0 %v403_v48 }
  0xfb   : > { %1721 = vmatprep.mubr.f32.mxu1 %v405_v49  ;;  %v474_v49 = vld [vmem:[%s3806_s12 + $0x560] sm:$0xff] }
  0xfd   : > { %1465 = vmatmul.mubr.f32.gmra.mxu0 %v402_v50  ;;  %v476_v50 = vld [vmem:[%s3806_s12 + $0x570] sm:$0xff] }
  0xfe   : > { %1722 = vmatmul.mubr.f32.gmra.mxu1 %v404_v51  ;;  %1470 = vmatprep.mubr.f32.mxu0 %v411_v52 }
  0xff   : > { %1727 = vmatprep.mubr.f32.mxu1 %v413_v53  ;;  %v483_v53 = vld [vmem:[%s3806_s12 + $0x5a8] sm:$0xff] }
 0x101   : > { %1471 = vmatmul.mubr.f32.gmra.mxu0 %v410_v54  ;;  %v485_v54 = vld [vmem:[%s3806_s12 + $0x5b8] sm:$0xff] }
 0x102   : > { %1728 = vmatmul.mubr.f32.gmra.mxu1 %v412_v55  ;;  %1476 = vmatprep.mubr.f32.mxu0 %v419_v56 }
 0x103   : > { %1733 = vmatprep.mubr.f32.mxu1 %v421_v57 }
 0x105   : > { %1477 = vmatmul.mubr.f32.gmra.mxu0 %v418_v58 }
 0x106   : > { %1734 = vmatmul.mubr.f32.gmra.mxu1 %v420_v59  ;;  %1482 = vmatprep.mubr.f32.mxu0 %v427_v60  ;;  %v482_v59 = vld [vmem:[%s3806_s12 + $0x5a0] sm:$0xff]  ;;  %v484_v60 = vld [vmem:[%s3806_s12 + $0x5b0] sm:$0xff] }
 0x107   : > { %1739 = vmatprep.mubr.f32.mxu1 %v429_v61 }
 0x109   : > { %1483 = vmatmul.mubr.f32.gmra.mxu0 %v426_v62 }
 0x10a   : > { %1740 = vmatmul.mubr.f32.gmra.mxu1 %v428_v63  ;;  %1488 = vmatprep.mubr.f32.mxu0 %v435_v0  ;;  %v491_v63 = vld [vmem:[%s3806_s12 + $0x5e8] sm:$0xff]  ;;  %v493_v0 = vld [vmem:[%s3806_s12 + $0x5f8] sm:$0xff] }
 0x10b   : > { %1745 = vmatprep.mubr.f32.mxu1 %v437_v1 }
 0x10d   : > { %v880_v6 = vpop.f32.mrf.mxu0  ;;  %1489 = vmatmul.mubr.f32.gmra.mxu0 %v434_v2 }
 0x10e   : > { %v1137_v7 = vpop.f32.mrf.mxu1  ;;  %1746 = vmatmul.mubr.f32.gmra.mxu1 %v436_v3  ;;  %1494 = vmatprep.mubr.f32.mxu0 %v443_v4 }
 0x10f   : > { %v4408_v8 = vadd.f32 %v1137_v7, %v880_v6  ;;  %1751 = vmatprep.mubr.f32.mxu1 %v445_v5  ;;  %v882_v11 = vpop.f32.mrf.mxu0  ;;  %v490_v5 = vld [vmem:[%s3806_s12 + $0x5e0] sm:$0xff]  ;;  %v492_v6 = vld [vmem:[%s3806_s12 + $0x5f0] sm:$0xff] }
 0x110   : > { %v1139_v12 = vpop.f32.mrf.mxu1 }
 0x111   : > { %v4414_v15 = vadd.f32 %v1139_v12, %v882_v11  ;;  %v886_v16 = vpop.f32.mrf.mxu0  ;;  %1495 = vmatmul.mubr.f32.gmra.mxu0 %v442_v9  ;;  %v501_v11 = vld [vmem:[%s3806_s12 + $0x638] sm:$0xff] }
 0x112   : > { %v1143_v17 = vpop.f32.mrf.mxu1  ;;  %1752 = vmatmul.mubr.f32.gmra.mxu1 %v444_v10  ;;  %1500 = vmatprep.mubr.f32.mxu0 %v451_v13  ;;  %v499_v10 = vld [vmem:[%s3806_s12 + $0x628] sm:$0xff] }
 0x113   : > { %v4416_v18 = vadd.f32 %v1143_v17, %v886_v16  ;;  %1757 = vmatprep.mubr.f32.mxu1 %v453_v14  ;;  %v888_v21 = vpop.f32.mrf.mxu0  ;;  %v498_v17 = vld [vmem:[%s3806_s12 + $0x620] sm:$0xff] }
 0x114   : > { %v1145_v22 = vpop.f32.mrf.mxu1 }
 0x115   : > { %v4422_v25 = vadd.f32 %v1145_v22, %v888_v21  ;;  %v892_v26 = vpop.f32.mrf.mxu0  ;;  %1501 = vmatmul.mubr.f32.gmra.mxu0 %v450_v19  ;;  %v500_v19 = vld [vmem:[%s3806_s12 + $0x630] sm:$0xff]  ;;  %v507_v22 = vld [vmem:[%s3806_s12 + $0x668] sm:$0xff] }
 0x116   : > { %v1149_v27 = vpop.f32.mrf.mxu1  ;;  %1758 = vmatmul.mubr.f32.gmra.mxu1 %v452_v20  ;;  %1506 = vmatprep.mubr.f32.mxu0 %v459_v23  ;;  %v509_v23 = vld [vmem:[%s3806_s12 + $0x678] sm:$0xff] }
 0x117   : > { %v4424_v28 = vadd.f32 %v1149_v27, %v892_v26  ;;  %1763 = vmatprep.mubr.f32.mxu1 %v461_v24  ;;  %v894_v31 = vpop.f32.mrf.mxu0 }
 0x118   : > { %v1151_v32 = vpop.f32.mrf.mxu1 }
 0x119   : > { %v4430_v35 = vadd.f32 %v1151_v32, %v894_v31  ;;  %v898_v36 = vpop.f32.mrf.mxu0  ;;  %1507 = vmatmul.mubr.f32.gmra.mxu0 %v458_v29  ;;  %v508_v31 = vld [vmem:[%s3806_s12 + $0x670] sm:$0xff] }
 0x11a   : > { %v1155_v37 = vpop.f32.mrf.mxu1  ;;  %1764 = vmatmul.mubr.f32.gmra.mxu1 %v460_v30  ;;  %1512 = vmatprep.mubr.f32.mxu0 %v467_v33  ;;  %v506_v30 = vld [vmem:[%s3806_s12 + $0x660] sm:$0xff] }
 0x11b   : > { %v4432_v38 = vadd.f32 %v1155_v37, %v898_v36  ;;  %1769 = vmatprep.mubr.f32.mxu1 %v469_v34  ;;  %v900_v41 = vpop.f32.mrf.mxu0  ;;  %v515_v34 = vld [vmem:[%s3806_s12 + $0x6a8] sm:$0xff]  ;;  %v517_v36 = vld [vmem:[%s3806_s12 + $0x6b8] sm:$0xff] }
 0x11c   : > { %v1157_v42 = vpop.f32.mrf.mxu1 }
 0x11d   : > { %v4438_v45 = vadd.f32 %v1157_v42, %v900_v41  ;;  %v904_v46 = vpop.f32.mrf.mxu0  ;;  %1513 = vmatmul.mubr.f32.gmra.mxu0 %v466_v39  ;;  %v514_v42 = vld [vmem:[%s3806_s12 + $0x6a0] sm:$0xff] }
 0x11e   : > { %v1161_v47 = vpop.f32.mrf.mxu1  ;;  %1770 = vmatmul.mubr.f32.gmra.mxu1 %v468_v40  ;;  %1518 = vmatprep.mubr.f32.mxu0 %v475_v43  ;;  %v516_v43 = vld [vmem:[%s3806_s12 + $0x6b0] sm:$0xff] }
 0x11f   : > { %v4440_v48 = vadd.f32 %v1161_v47, %v904_v46  ;;  %1775 = vmatprep.mubr.f32.mxu1 %v477_v44  ;;  %v906_v51 = vpop.f32.mrf.mxu0  ;;  %v523_v47 = vld [vmem:[%s3806_s12 + $0x6e8] sm:$0xff] }
 0x120   : > { %v1163_v52 = vpop.f32.mrf.mxu1 }
 0x121   : > { %v4446_v55 = vadd.f32 %v1163_v52, %v906_v51  ;;  %v910_v56 = vpop.f32.mrf.mxu0  ;;  %1519 = vmatmul.mubr.f32.gmra.mxu0 %v474_v49  ;;  %v525_v49 = vld [vmem:[%s3806_s12 + $0x6f8] sm:$0xff] }
 0x122   : > { %v1167_v57 = vpop.f32.mrf.mxu1  ;;  %1776 = vmatmul.mubr.f32.gmra.mxu1 %v476_v50  ;;  %1524 = vmatprep.mubr.f32.mxu0 %v483_v53 }
 0x123   : > { %v4448_v58 = vadd.f32 %v1167_v57, %v910_v56  ;;  %1781 = vmatprep.mubr.f32.mxu1 %v485_v54  ;;  %v912_v61 = vpop.f32.mrf.mxu0  ;;  %v522_v54 = vld [vmem:[%s3806_s12 + $0x6e0] sm:$0xff]  ;;  %v524_v56 = vld [vmem:[%s3806_s12 + $0x6f0] sm:$0xff] }
 0x124   : > { %v1169_v62 = vpop.f32.mrf.mxu1 }
 0x125   : > { %v4454_v1 = vadd.f32 %v1169_v62, %v912_v61  ;;  %v916_v2 = vpop.f32.mrf.mxu0  ;;  %1525 = vmatmul.mubr.f32.gmra.mxu0 %v482_v59  ;;  %v533_v61 = vld [vmem:[%s3806_s12 + $0x738] sm:$0xff] }
 0x126   : > { %v1173_v3 = vpop.f32.mrf.mxu1  ;;  %1782 = vmatmul.mubr.f32.gmra.mxu1 %v484_v60  ;;  %1530 = vmatprep.mubr.f32.mxu0 %v491_v63  ;;  %v531_v60 = vld [vmem:[%s3806_s12 + $0x728] sm:$0xff] }
 0x127   : > { %v4456_v4 = vadd.f32 %v1173_v3, %v916_v2  ;;  %1787 = vmatprep.mubr.f32.mxu1 %v493_v0  ;;  %v918_v7 = vpop.f32.mrf.mxu0  ;;  %v530_v3 = vld [vmem:[%s3806_s12 + $0x720] sm:$0xff] }
 0x128   : > { %v1175_v9 = vpop.f32.mrf.mxu1 }
 0x129   : > { %v4462_v12 = vadd.f32 %v1175_v9, %v918_v7  ;;  %v922_v13 = vpop.f32.mrf.mxu0  ;;  %1531 = vmatmul.mubr.f32.gmra.mxu0 %v490_v5  ;;  %v532_v5 = vld [vmem:[%s3806_s12 + $0x730] sm:$0xff]  ;;  %v539_v9 = vld [vmem:[%s3806_s12 + $0x768] sm:$0xff] }
 0x12a   : > { %v1179_v14 = vpop.f32.mrf.mxu1  ;;  %1788 = vmatmul.mubr.f32.gmra.mxu1 %v492_v6  ;;  %1536 = vmatprep.mubr.f32.mxu0 %v499_v10  ;;  %v541_v10 = vld [vmem:[%s3806_s12 + $0x778] sm:$0xff] }
 0x12b   : > { %v4464_v16 = vadd.f32 %v1179_v14, %v922_v13  ;;  %1793 = vmatprep.mubr.f32.mxu1 %v501_v11  ;;  %v924_v20 = vpop.f32.mrf.mxu0 }
 0x12c   : > { %v1181_v21 = vpop.f32.mrf.mxu1 }
 0x12d   : > { %v4470_v24 = vadd.f32 %v1181_v21, %v924_v20  ;;  %v928_v26 = vpop.f32.mrf.mxu0  ;;  %1537 = vmatmul.mubr.f32.gmra.mxu0 %v498_v17  ;;  %v540_v20 = vld [vmem:[%s3806_s12 + $0x770] sm:$0xff] }
 0x12e   : > { %v1185_v27 = vpop.f32.mrf.mxu1  ;;  %1794 = vmatmul.mubr.f32.gmra.mxu1 %v500_v19  ;;  %1542 = vmatprep.mubr.f32.mxu0 %v507_v22  ;;  %v538_v19 = vld [vmem:[%s3806_s12 + $0x760] sm:$0xff] }
 0x12f   : > { %v4472_v29 = vadd.f32 %v1185_v27, %v928_v26  ;;  %1799 = vmatprep.mubr.f32.mxu1 %v509_v23  ;;  %v930_v32 = vpop.f32.mrf.mxu0  ;;  %v547_v23 = vld [vmem:[%s3806_s12 + $0x7a8] sm:$0xff]  ;;  %v549_v26 = vld [vmem:[%s3806_s12 + $0x7b8] sm:$0xff] }
 0x130   : > { %v1187_v33 = vpop.f32.mrf.mxu1 }
 0x131   : > { %v4478_v37 = vadd.f32 %v1187_v33, %v930_v32  ;;  %v934_v39 = vpop.f32.mrf.mxu0  ;;  %1543 = vmatmul.mubr.f32.gmra.mxu0 %v506_v30  ;;  %v546_v33 = vld [vmem:[%s3806_s12 + $0x7a0] sm:$0xff] }
 0x132   : > { %v1191_v40 = vpop.f32.mrf.mxu1  ;;  %1800 = vmatmul.mubr.f32.gmra.mxu1 %v508_v31  ;;  %1548 = vmatprep.mubr.f32.mxu0 %v515_v34  ;;  %v548_v34 = vld [vmem:[%s3806_s12 + $0x7b0] sm:$0xff] }
 0x133   : > { %v4480_v41 = vadd.f32 %v1191_v40, %v934_v39  ;;  %1805 = vmatprep.mubr.f32.mxu1 %v517_v36  ;;  %v936_v44 = vpop.f32.mrf.mxu0  ;;  %v555_v40 = vld [vmem:[%s3806_s12 + $0x7e8] sm:$0xff] }
 0x134   : > { %v1193_v46 = vpop.f32.mrf.mxu1 }
 0x135   : > { %v4486_v50 = vadd.f32 %v1193_v46, %v936_v44  ;;  %v940_v51 = vpop.f32.mrf.mxu0  ;;  %1549 = vmatmul.mubr.f32.gmra.mxu0 %v514_v42  ;;  %v557_v42 = vld [vmem:[%s3806_s12 + $0x7f8] sm:$0xff] }
 0x136   : > { %v1197_v52 = vpop.f32.mrf.mxu1  ;;  %1806 = vmatmul.mubr.f32.gmra.mxu1 %v516_v43  ;;  %1554 = vmatprep.mubr.f32.mxu0 %v523_v47 }
 0x137   : > { %v4488_v53 = vadd.f32 %v1197_v52, %v940_v51  ;;  %1811 = vmatprep.mubr.f32.mxu1 %v525_v49  ;;  %v942_v57 = vpop.f32.mrf.mxu0  ;;  %v554_v49 = vld [vmem:[%s3806_s12 + $0x7e0] sm:$0xff]  ;;  %v556_v51 = vld [vmem:[%s3806_s12 + $0x7f0] sm:$0xff]  ;;  %s3293_s12 = sshll.u32 %s5665_s24, 3 }
 0x138   : > { %v1199_v59 = vpop.f32.mrf.mxu1  ;;  %s5066_s21 = scalar_lea.vmem %s5526_s3, %s3293_s12  ;;  %s5085_s25 = scalar_lea.vmem %s5527_s4, %s3293_s12 }
 0x139   : > { %v4494_v62 = vadd.f32 %v1199_v59, %v942_v57  ;;  %v946_v63 = vpop.f32.mrf.mxu0  ;;  %1555 = vmatmul.mubr.f32.gmra.mxu0 %v522_v54 }
 0x13a   : > { %v1203_v0 = vpop.f32.mrf.mxu1  ;;  %1812 = vmatmul.mubr.f32.gmra.mxu1 %v524_v56  ;;  %1560 = vmatprep.mubr.f32.mxu0 %v531_v60 }
 0x13b   : > { %v4496_v2 = vadd.f32 %v1203_v0, %v946_v63  ;;  %1817 = vmatprep.mubr.f32.mxu1 %v533_v61  ;;  %v948_v6 = vpop.f32.mrf.mxu0 }
 0x13c   : > { %v1205_v7 = vpop.f32.mrf.mxu1 }
 0x13d   : > { %v4502_v11 = vadd.f32 %v1205_v7, %v948_v6  ;;  %v952_v13 = vpop.f32.mrf.mxu0  ;;  %1561 = vmatmul.mubr.f32.gmra.mxu0 %v530_v3 }
 0x13e   : > { %v1209_v14 = vpop.f32.mrf.mxu1  ;;  %1818 = vmatmul.mubr.f32.gmra.mxu1 %v532_v5  ;;  %1566 = vmatprep.mubr.f32.mxu0 %v539_v9 }
 0x13f   : > { %v4504_v17 = vadd.f32 %v1209_v14, %v952_v13  ;;  %1823 = vmatprep.mubr.f32.mxu1 %v541_v10  ;;  %v954_v21 = vpop.f32.mrf.mxu0 }
 0x140   : > { %v1211_v22 = vpop.f32.mrf.mxu1 }
 0x141   : > { %v4510_v27 = vadd.f32 %v1211_v22, %v954_v21  ;;  %v958_v30 = vpop.f32.mrf.mxu0  ;;  %1567 = vmatmul.mubr.f32.gmra.mxu0 %v538_v19 }
 0x142   : > { %v1215_v31 = vpop.f32.mrf.mxu1  ;;  %1824 = vmatmul.mubr.f32.gmra.mxu1 %v540_v20  ;;  %1572 = vmatprep.mubr.f32.mxu0 %v547_v23 }
 0x143   : > { %v4512_v32 = vadd.f32 %v1215_v31, %v958_v30  ;;  %1829 = vmatprep.mubr.f32.mxu1 %v549_v26  ;;  %v960_v36 = vpop.f32.mrf.mxu0 }
 0x144   : > { %v1217_v39 = vpop.f32.mrf.mxu1 }
 0x145   : > { %v4518_v43 = vadd.f32 %v1217_v39, %v960_v36  ;;  %v964_v44 = vpop.f32.mrf.mxu0  ;;  %1573 = vmatmul.mubr.f32.gmra.mxu0 %v546_v33 }
 0x146   : > { %v1221_v46 = vpop.f32.mrf.mxu1  ;;  %1830 = vmatmul.mubr.f32.gmra.mxu1 %v548_v34  ;;  %1578 = vmatprep.mubr.f32.mxu0 %v555_v40 }
 0x147   : > { %v4520_v47 = vadd.f32 %v1221_v46, %v964_v44  ;;  %1835 = vmatprep.mubr.f32.mxu1 %v557_v42  ;;  %v966_v52 = vpop.f32.mrf.mxu0 }
 0x148   : > { %v1223_v54 = vpop.f32.mrf.mxu1 }
 0x149   : > { %v4524_v56 = vadd.f32 %v1223_v54, %v966_v52  ;;  %v970_v57 = vpop.f32.mrf.mxu0  ;;  %1579 = vmatmul.mubr.f32.gmra.mxu0 %v554_v49 }
 0x14a   : > { %v1227_v59 = vpop.f32.mrf.mxu1  ;;  %1836 = vmatmul.mubr.f32.gmra.mxu1 %v556_v51 }
 0x14b   : > { %v4526_v60 = vadd.f32 %v1227_v59, %v970_v57  ;;  %v972_v61 = vpop.f32.mrf.mxu0 }
 0x14c   : > { %v1229_v63 = vpop.f32.mrf.mxu1 }
 0x14d   : > { %v4528_v0 = vadd.f32 %v1229_v63, %v972_v61  ;;  %v976_v3 = vpop.f32.mrf.mxu0 }
 0x14e   : > { %v1233_v5 = vpop.f32.mrf.mxu1 }
 0x14f   : > { %v4530_v6 = vadd.f32 %v1233_v5, %v976_v3  ;;  %v978_v7 = vpop.f32.mrf.mxu0 }
 0x150   : > { %v1235_v9 = vpop.f32.mrf.mxu1 }
 0x151   : > { %v4532_v10 = vadd.f32 %v1235_v9, %v978_v7  ;;  %v982_v13 = vpop.f32.mrf.mxu0 }
 0x152   : > { %v1239_v14 = vpop.f32.mrf.mxu1 }
 0x153   : > { %v4534_v19 = vadd.f32 %v1239_v14, %v982_v13  ;;  %v984_v20 = vpop.f32.mrf.mxu0 }
 0x154   : > { %v1241_v21 = vpop.f32.mrf.mxu1 }
 0x155   : > { %v4536_v22 = vadd.f32 %v1241_v21, %v984_v20  ;;  %v988_v23 = vpop.f32.mrf.mxu0 }
 0x156   : > { %v1245_v26 = vpop.f32.mrf.mxu1 }
 0x157   : > { %v4538_v30 = vadd.f32 %v1245_v26, %v988_v23  ;;  %v990_v31 = vpop.f32.mrf.mxu0 }
 0x158   : > { %v1247_v33 = vpop.f32.mrf.mxu1 }
 0x159   : > { %v4540_v34 = vadd.f32 %v1247_v33, %v990_v31  ;;  %v994_v36 = vpop.f32.mrf.mxu0 }
 0x15a   : > { %v1251_v39 = vpop.f32.mrf.mxu1 }
 0x15b   : > { %v4542_v40 = vadd.f32 %v1251_v39, %v994_v36  ;;  %v996_v42 = vpop.f32.mrf.mxu0 }
 0x15c   : > { %v1253_v44 = vpop.f32.mrf.mxu1 }
 0x15d   : > { %v4544_v46 = vadd.f32 %v1253_v44, %v996_v42  ;;  %v1000_v49 = vpop.f32.mrf.mxu0 }
 0x15e   : > { %v1257_v51 = vpop.f32.mrf.mxu1 }
 0x15f   : > { %v4546_v52 = vadd.f32 %v1257_v51, %v1000_v49  ;;  %v1002_v54 = vpop.f32.mrf.mxu0 }
 0x160   : > { %v1259_v57 = vpop.f32.mrf.mxu1 }
 0x161   : > { %v4548_v59 = vadd.f32 %v1259_v57, %v1002_v54  ;;  %v1006_v61 = vpop.f32.mrf.mxu0 }
 0x162   : > { %v1263_v63 = vpop.f32.mrf.mxu1 }
 0x163   : > { %v4550_v3 = vadd.f32 %v1263_v63, %v1006_v61  ;;  %v1008_v5 = vpop.f32.mrf.mxu0 }
 0x164   : > { %v1265_v7 = vpop.f32.mrf.mxu1 }
 0x165   : > { %v4552_v9 = vadd.f32 %v1265_v7, %v1008_v5  ;;  %v1012_v13 = vpop.f32.mrf.mxu0 }
 0x166   : > { %v1269_v14 = vpop.f32.mrf.mxu1 }
 0x167   : > { %v4554_v20 = vadd.f32 %v1269_v14, %v1012_v13  ;;  %v1014_v21 = vpop.f32.mrf.mxu0 }
 0x168   : > { %v1271_v23 = vpop.f32.mrf.mxu1 }
 0x169   : > { %v4556_v26 = vadd.f32 %v1271_v23, %v1014_v21  ;;  %v1018_v31 = vpop.f32.mrf.mxu0 }
 0x16a   : > { %v1275_v33 = vpop.f32.mrf.mxu1 }
 0x16b   : > { %v4558_v36 = vadd.f32 %v1275_v33, %v1018_v31  ;;  %v1020_v39 = vpop.f32.mrf.mxu0 }
 0x16c   : > { %v1277_v42 = vpop.f32.mrf.mxu1 }
 0x16d   : > { %5564 = vst [vmem:[#allocation2_spill] sm:$0xff] %v4558_v36  ;;  %v4560_v44 = vadd.f32 %v1277_v42, %v1020_v39  ;;  %v1024_v49 = vpop.f32.mrf.mxu0 }
 0x16e   : > { %v1281_v51 = vpop.f32.mrf.mxu1 }
 0x16f   : > { %v4562_v54 = vadd.f32 %v1281_v51, %v1024_v49  ;;  %v1026_v57 = vpop.f32.mrf.mxu0 }
 0x170   : > { %v1283_v61 = vpop.f32.mrf.mxu1 }
 0x171   : > { %5565 = vst [vmem:[#allocation3_spill] sm:$0xff] %v4562_v54  ;;  %v4564_v63 = vadd.f32 %v1283_v61, %v1026_v57  ;;  %v1030_v5 = vpop.f32.mrf.mxu0 }
 0x172   : > { %v1287_v7 = vpop.f32.mrf.mxu1 }
 0x173   : > { %5566 = vst [vmem:[#allocation4_spill] sm:$0xff] %v4564_v63  ;;  %v4566_v13 = vadd.f32 %v1287_v7, %v1030_v5  ;;  %v1032_v14 = vpop.f32.mrf.mxu0 }
 0x174   : > { %v1289_v21 = vpop.f32.mrf.mxu1 }
 0x175   : > { %5567 = vst [vmem:[#allocation5_spill] sm:$0xff] %v4566_v13  ;;  %v4568_v23 = vadd.f32 %v1289_v21, %v1032_v14  ;;  %v1036_v31 = vpop.f32.mrf.mxu0 }
 0x176   : > { %v1293_v33 = vpop.f32.mrf.mxu1 }
 0x177   : > { %5568 = vst [vmem:[#allocation6_spill] sm:$0xff] %v4568_v23  ;;  %v4570_v39 = vadd.f32 %v1293_v33, %v1036_v31  ;;  %v1038_v42 = vpop.f32.mrf.mxu0 }
 0x178   : > { %v1295_v36 = vpop.f32.mrf.mxu1 }
 0x179   : > { %5569 = vst [vmem:[#allocation7_spill] sm:$0xff] %v4570_v39  ;;  %v4572_v49 = vadd.f32 %v1295_v36, %v1038_v42  ;;  %v1042_v51 = vpop.f32.mrf.mxu0 }
 0x17a   : > { %v1299_v54 = vpop.f32.mrf.mxu1 }
 0x17b   : > { %5570 = vst [vmem:[#allocation8_spill] sm:$0xff] %v4572_v49  ;;  %v4574_v57 = vadd.f32 %v1299_v54, %v1042_v51  ;;  %v1044_v61 = vpop.f32.mrf.mxu0 }
 0x17c   : > { %v1301_v63 = vpop.f32.mrf.mxu1 }
 0x17d   : > { %5571 = vst [vmem:[#allocation9_spill] sm:$0xff] %v4574_v57  ;;  %v4576_v5 = vadd.f32 %v1301_v63, %v1044_v61  ;;  %v1048_v7 = vpop.f32.mrf.mxu0 }
 0x17e   : > { %v1305_v13 = vpop.f32.mrf.mxu1 }
 0x17f   : > { %5572 = vst [vmem:[#allocation10_spill] sm:$0xff] %v4576_v5  ;;  %v4578_v14 = vadd.f32 %v1305_v13, %v1048_v7  ;;  %v1050_v21 = vpop.f32.mrf.mxu0 }
 0x180   : > { %v1307_v23 = vpop.f32.mrf.mxu1 }
 0x181   : > { %5573 = vst [vmem:[#allocation11_spill] sm:$0xff] %v4578_v14  ;;  %v4580_v31 = vadd.f32 %v1307_v23, %v1050_v21  ;;  %v1054_v33 = vpop.f32.mrf.mxu0 }
 0x182   : > { %v1311_v39 = vpop.f32.mrf.mxu1 }
 0x183   : > { %5574 = vst [vmem:[#allocation12_spill] sm:$0xff] %v4580_v31  ;;  %v4582_v36 = vadd.f32 %v1311_v39, %v1054_v33  ;;  %v1056_v42 = vpop.f32.mrf.mxu0 }
 0x184   : > { %v1313_v49 = vpop.f32.mrf.mxu1 }
 0x185   : > { %5575 = vst [vmem:[#allocation13_spill] sm:$0xff] %v4582_v36  ;;  %v4584_v54 = vadd.f32 %v1313_v49, %v1056_v42  ;;  %v1060_v51 = vpop.f32.mrf.mxu0 }
 0x186   : > { %v1317_v57 = vpop.f32.mrf.mxu1 }
 0x187   : > { %5576 = vst [vmem:[#allocation14_spill] sm:$0xff] %v4584_v54  ;;  %v4586_v63 = vadd.f32 %v1317_v57, %v1060_v51  ;;  %v1062_v61 = vpop.f32.mrf.mxu0 }
 0x188   : > { %v1319_v5 = vpop.f32.mrf.mxu1 }
 0x189   : > { %5577 = vst [vmem:[#allocation15_spill] sm:$0xff] %v4586_v63  ;;  %v4588_v13 = vadd.f32 %v1319_v5, %v1062_v61  ;;  %v1066_v7 = vpop.f32.mrf.mxu0 }
 0x18a   : > { %v1323_v14 = vpop.f32.mrf.mxu1 }
 0x18b   : > { %v4590_v23 = vadd.f32 %v1323_v14, %v1066_v7  ;;  %v1068_v21 = vpop.f32.mrf.mxu0 }
 0x18c   : > { %v1325_v31 = vpop.f32.mrf.mxu1 }
 0x18d   : > { %5578 = vst [vmem:[#allocation16_spill] sm:$0xff] %v4590_v23  ;;  %v4592_v39 = vadd.f32 %v1325_v31, %v1068_v21  ;;  %v1394_v33 = vpop.f32.mrf.mxu0 }
 0x18e   : > { %v1651_v36 = vpop.f32.mrf.mxu1  ;;  %v1395_v49 = vadd.f32 %v1394_v33, %v4408_v8 }
 0x18f   : > { %v1396_v42 = vpop.f32.mrf.mxu0 }
 0x190   : > { %v1653_v54 = vpop.f32.mrf.mxu1  ;;  %v1397_v57 = vadd.f32 %v1396_v42, %v4414_v15  ;;  %v4599_v61 = vadd.f32 %v1651_v36, %v1395_v49 }
 0x191   : > { %v1400_v51 = vpop.f32.mrf.mxu0 }
 0x192   : > { %v1657_v63 = vpop.f32.mrf.mxu1  ;;  %v4596_v5 = vadd.f32 %v1653_v54, %v1397_v57  ;;  %v1401_v14 = vadd.f32 %v1400_v51, %v4416_v18  ;;  %5580 = vst [vmem:[#allocation18_spill] sm:$0xff] %v4599_v61  ;;  %v1971_v51 = vmul.f32 %v4599_v61, %v4599_v61 }
 0x193   : > { %v1402_v7 = vpop.f32.mrf.mxu0 }
 0x194   : > { %5579 = vst [vmem:[#allocation17_spill] sm:$0xff] %v4596_v5  ;;  %v1659_v31 = vpop.f32.mrf.mxu1  ;;  %v1403_v21 = vadd.f32 %v1402_v7, %v4422_v25  ;;  %v1843_v8 = vsel %vm1842_vm0, %v4596_v5, 0.0  ;;  %v1972_v33 = vmul.f32 %v4596_v5, %v4596_v5  ;;  %v4606_v15 = vadd.f32 %v1657_v63, %v1401_v14 }
 0x195   : > { %v1406_v42 = vpop.f32.mrf.mxu0  ;;  %v1844_v54 = vadd.f32 %v1843_v8, %v4599_v61 }
 0x196   : > { %v1663_v23 = vpop.f32.mrf.mxu1  ;;  %v4609_v57 = vadd.f32 %v1659_v31, %v1403_v21  ;;  %v2035_v18 = vsel %vm1842_vm0, %v1972_v33, 0.0  ;;  %v1407_v36 = vadd.f32 %v1406_v42, %v4424_v28  ;;  %v1973_v31 = vmul.f32 %v4606_v15, %v4606_v15 }
 0x197   : > { %v1408_v49 = vpop.f32.mrf.mxu0  ;;  %1845 = vadd.xlane.f32.xlu0 %v1844_v54  ;;  %v2036_v8 = vadd.f32 %v2035_v18, %v1971_v51 }
 0x198   : > { %v1665_v25 = vpop.f32.mrf.mxu1  ;;  %v1409_v7 = vadd.f32 %v1408_v49, %v4430_v35  ;;  %v1974_v63 = vmul.f32 %v4609_v57, %v4609_v57  ;;  %v1847_v33 = vsel %vm1842_vm0, %v4609_v57, 0.0  ;;  %v4625_v42 = vadd.f32 %v1663_v23, %v1407_v36 }
 0x199   : > { %v1412_v14 = vpop.f32.mrf.mxu0  ;;  %v1848_v23 = vadd.f32 %v1847_v33, %v4606_v15 }
 0x19a   : > { %v1669_v5 = vpop.f32.mrf.mxu1  ;;  %v4620_v21 = vadd.f32 %v1665_v25, %v1409_v7  ;;  %v2039_v28 = vsel %vm1842_vm0, %v1974_v63, 0.0  ;;  %5582 = vst [vmem:[#allocation20_spill] sm:$0xff] %v4625_v42  ;;  %v1413_v51 = vadd.f32 %v1412_v14, %v4432_v38 }
 0x19b   : > { %v1414_v54 = vpop.f32.mrf.mxu0  ;;  %2037 = vadd.xlane.f32.xlu0 %v2036_v8  ;;  %v2040_v49 = vadd.f32 %v2039_v28, %v1973_v31 }
 0x19c   : > { %5581 = vst [vmem:[#allocation19_spill] sm:$0xff] %v4620_v21  ;;  %v1671_v35 = vpop.f32.mrf.mxu1  ;;  %v1415_v61 = vadd.f32 %v1414_v54, %v4438_v45  ;;  %v1851_v18 = vsel %vm1842_vm0, %v4620_v21, 0.0  ;;  %v1976_v25 = vmul.f32 %v4620_v21, %v4620_v21  ;;  %v1975_v21 = vmul.f32 %v4625_v42, %v4625_v42 }
 0x19d   : > { %v1418_v7 = vpop.f32.mrf.mxu0  ;;  %2041 = vadd.xlane.f32.xlu1 %v2040_v49  ;;  %v1852_v54 = vadd.f32 %v1851_v18, %v4625_v42  ;;  %v4646_v33 = vadd.f32 %v1669_v5, %v1413_v51 }
 0x19e   : > { %v1675_v63 = vpop.f32.mrf.mxu1  ;;  %v4634_v36 = vadd.f32 %v1671_v35, %v1415_v61  ;;  %v2043_v8 = vsel %vm1842_vm0, %v1976_v25, 0.0  ;;  %v1419_v31 = vadd.f32 %v1418_v7, %v4440_v48 }
 0x19f   : > { %v1420_v45 = vpop.f32.mrf.mxu0  ;;  %1849 = vadd.xlane.f32.xlu0 %v1848_v23  ;;  %v2044_v49 = vadd.f32 %v2043_v8, %v1975_v21 }
 0x1a0   : > { %v1677_v28 = vpop.f32.mrf.mxu1  ;;  %v1421_v38 = vadd.f32 %v1420_v45, %v4446_v55  ;;  %v1855_v14 = vsel %vm1842_vm0, %v4634_v36, 0.0  ;;  %v1978_v61 = vmul.f32 %v4634_v36, %v4634_v36  ;;  %v4650_v18 = vadd.f32 %v1675_v63, %v1419_v31 }
 0x1a1   : > { %v1424_v35 = vpop.f32.mrf.mxu0  ;;  %1853 = vadd.xlane.f32.xlu1 %v1852_v54  ;;  %v1856_v55 = vadd.f32 %v1855_v14, %v4646_v33 }
 0x1a2   : > { %v1681_v48 = vpop.f32.mrf.mxu1  ;;  %v4648_v25 = vadd.f32 %v1677_v28, %v1421_v38  ;;  %v2047_v5 = vsel %vm1842_vm0, %v1978_v61, 0.0  ;;  %v1425_v21 = vadd.f32 %v1424_v35, %v4448_v58  ;;  %v1977_v28 = vmul.f32 %v4646_v33, %v4646_v33 }
 0x1a3   : > { %v1426_v7 = vpop.f32.mrf.mxu0  ;;  %2045 = vadd.xlane.f32.xlu0 %v2044_v49  ;;  %v1979_v58 = vmul.f32 %v4650_v18, %v4650_v18 }
 0x1a4   : > { %v1683_v23 = vpop.f32.mrf.mxu1  ;;  %v1427_v45 = vadd.f32 %v1426_v7, %v4454_v1  ;;  %v1859_v42 = vsel %vm1842_vm0, %v4648_v25, 0.0  ;;  %v1980_v51 = vmul.f32 %v4648_v25, %v4648_v25  ;;  %v2048_v49 = vadd.f32 %v2047_v5, %v1977_v28 }
 0x1a5   : > { %v1430_v8 = vpop.f32.mrf.mxu0  ;;  %1857 = vadd.xlane.f32.xlu1 %v1856_v55  ;;  %v1860_v31 = vadd.f32 %v1859_v42, %v4650_v18 }
 0x1a6   : > { %v1687_v63 = vpop.f32.mrf.mxu1  ;;  %v4663_v54 = vadd.f32 %v1683_v23, %v1427_v45  ;;  %v2051_v1 = vsel %vm1842_vm0, %v1980_v51, 0.0  ;;  %v1431_v38 = vadd.f32 %v1430_v8, %v4456_v4  ;;  %v4674_v23 = vadd.f32 %v1681_v48, %v1425_v21 }
 0x1a7   : > { %v1432_v14 = vpop.f32.mrf.mxu0  ;;  %1861 = vadd.xlane.f32.xlu0 %v1860_v31  ;;  %v2052_v45 = vadd.f32 %v2051_v1, %v1979_v58 }
 0x1a8   : > { %v1689_v61 = vpop.f32.mrf.mxu1  ;;  %v1433_v35 = vadd.f32 %v1432_v14, %v4462_v12  ;;  %v1863_v42 = vsel %vm1842_vm0, %v4663_v54, 0.0  ;;  %v1982_v7 = vmul.f32 %v4663_v54, %v4663_v54  ;;  %v4678_v5 = vadd.f32 %v1687_v63, %v1431_v38 }
 0x1a9   : > { %v1436_v55 = vpop.f32.mrf.mxu0  ;;  %2049 = vadd.xlane.f32.xlu1 %v2048_v49  ;;  %v1864_v12 = vadd.f32 %v1863_v42, %v4674_v23  ;;  %v1981_v49 = vmul.f32 %v4674_v23, %v4674_v23 }
 0x1aa   : > { %v1693_v4 = vpop.f32.mrf.mxu1  ;;  %v4676_v51 = vadd.f32 %v1689_v61, %v1433_v35  ;;  %v2055_v48 = vsel %vm1842_vm0, %v1982_v7, 0.0  ;;  %v1437_v1 = vadd.f32 %v1436_v55, %v4464_v16  ;;  %v1983_v16 = vmul.f32 %v4678_v5, %v4678_v5 }
 0x1ab   : > { %v1438_v8 = vpop.f32.mrf.mxu0  ;;  %2053 = vadd.xlane.f32.xlu0 %v2052_v45  ;;  %v2056_v45 = vadd.f32 %v2055_v48, %v1981_v49 }
 0x1ac   : > { %v1695_v31 = vpop.f32.mrf.mxu1  ;;  %v1439_v28 = vadd.f32 %v1438_v8, %v4470_v24  ;;  %v1867_v14 = vsel %vm1842_vm0, %v4676_v51, 0.0  ;;  %v1984_v21 = vmul.f32 %v4676_v51, %v4676_v51 }
 0x1ad   : > { %v1442_v61 = vpop.f32.mrf.mxu0  ;;  %1865 = vadd.xlane.f32.xlu1 %v1864_v12  ;;  %v1868_v38 = vadd.f32 %v1867_v14, %v4678_v5  ;;  %v4702_v12 = vadd.f32 %v1693_v4, %v1437_v1 }
 0x1ae   : > { %v1699_v63 = vpop.f32.mrf.mxu1  ;;  %v4691_v58 = vadd.f32 %v1695_v31, %v1439_v28  ;;  %v2059_v24 = vsel %vm1842_vm0, %v1984_v21, 0.0  ;;  %v1443_v35 = vadd.f32 %v1442_v61, %v4472_v29 }
 0x1af   : > { %v1444_v42 = vpop.f32.mrf.mxu0  ;;  %1869 = vadd.xlane.f32.xlu0 %v1868_v38  ;;  %v2060_v14 = vadd.f32 %v2059_v24, %v1983_v16 }
 0x1b0   : > { %v1701_v7 = vpop.f32.mrf.mxu1  ;;  %v1445_v55 = vadd.f32 %v1444_v42, %v4478_v37  ;;  %v1871_v8 = vsel %vm1842_vm0, %v4691_v58, 0.0  ;;  %v1986_v31 = vmul.f32 %v4691_v58, %v4691_v58  ;;  %v4706_v48 = vadd.f32 %v1699_v63, %v1443_v35 }
 0x1b1   : > { %v1448_v28 = vpop.f32.mrf.mxu0  ;;  %2057 = vadd.xlane.f32.xlu1 %v2056_v45  ;;  %v1872_v37 = vadd.f32 %v1871_v8, %v4702_v12  ;;  %v1985_v45 = vmul.f32 %v4702_v12, %v4702_v12 }
 0x1b2   : > { %v1705_v29 = vpop.f32.mrf.mxu1  ;;  %v4704_v21 = vadd.f32 %v1701_v7, %v1445_v55  ;;  %v2063_v4 = vsel %vm1842_vm0, %v1986_v31, 0.0  ;;  %v1449_v24 = vadd.f32 %v1448_v28, %v4480_v41  ;;  %v1987_v41 = vmul.f32 %v4706_v48, %v4706_v48 }
 0x1b3   : > { %v1450_v61 = vpop.f32.mrf.mxu0  ;;  %2061 = vadd.xlane.f32.xlu0 %v2060_v14  ;;  %v2064_v14 = vadd.f32 %v2063_v4, %v1985_v45 }
 0x1b4   : > { %v1707_v38 = vpop.f32.mrf.mxu1  ;;  %v1451_v49 = vadd.f32 %v1450_v61, %v4486_v50  ;;  %v1875_v42 = vsel %vm1842_vm0, %v4704_v21, 0.0  ;;  %v1988_v1 = vmul.f32 %v4704_v21, %v4704_v21 }
 0x1b5   : > { %v1454_v7 = vpop.f32.mrf.mxu0  ;;  %1873 = vadd.xlane.f32.xlu1 %v1872_v37  ;;  %v1876_v35 = vadd.f32 %v1875_v42, %v4706_v48  ;;  %v4730_v37 = vadd.f32 %v1705_v29, %v1449_v24 }
 0x1b6   : > { %v1711_v63 = vpop.f32.mrf.mxu1  ;;  %v4719_v16 = vadd.f32 %v1707_v38, %v1451_v49  ;;  %v2067_v50 = vsel %vm1842_vm0, %v1988_v1, 0.0  ;;  %v1455_v55 = vadd.f32 %v1454_v7, %v4488_v53 }
 0x1b7   : > { %v1456_v8 = vpop.f32.mrf.mxu0  ;;  %1877 = vadd.xlane.f32.xlu0 %v1876_v35  ;;  %v2068_v42 = vadd.f32 %v2067_v50, %v1987_v41  ;;  %v3387_v50 = vmov 0  }
 0x1b8   : > { %v1713_v31 = vpop.f32.mrf.mxu1  ;;  %v1457_v28 = vadd.f32 %v1456_v8, %v4494_v62  ;;  %v1879_v61 = vsel %vm1842_vm0, %v4719_v16, 0.0  ;;  %v1990_v38 = vmul.f32 %v4719_v16, %v4719_v16  ;;  %v4734_v4 = vadd.f32 %v1711_v63, %v1455_v55  ;;  %3313 = vset.pattern.permute.xlu0 %v3387_v50  ;;  %3314 = vset.pattern.permute.xlu1 %v3387_v50 }
 0x1b9   : > { %v1460_v49 = vpop.f32.mrf.mxu0  ;;  %2065 = vadd.xlane.f32.xlu1 %v2064_v14  ;;  %v1880_v62 = vadd.f32 %v1879_v61, %v4730_v37 }
 0x1ba   : > { %v1717_v53 = vpop.f32.mrf.mxu1  ;;  %v4732_v1 = vadd.f32 %v1713_v31, %v1457_v28  ;;  %v2071_v29 = vsel %vm1842_vm0, %v1990_v38, 0.0  ;;  %v1461_v63 = vadd.f32 %v1460_v49, %v4496_v2  ;;  %v1991_v2 = vmul.f32 %v4734_v4, %v4734_v4 }
 0x1bb   : > { %v1462_v7 = vpop.f32.mrf.mxu0  ;;  %2069 = vadd.xlane.f32.xlu0 %v2068_v42 }
 0x1bc   : > { %v1719_v35 = vpop.f32.mrf.mxu1  ;;  %v1463_v45 = vadd.f32 %v1462_v7, %v4502_v11  ;;  %v1883_v8 = vsel %vm1842_vm0, %v4732_v1, 0.0  ;;  %v1992_v24 = vmul.f32 %v4732_v1, %v4732_v1  ;;  %v1989_v11 = vmul.f32 %v4730_v37, %v4730_v37 }
 0x1bd   : > { %v1466_v55 = vpop.f32.mrf.mxu0  ;;  %1881 = vadd.xlane.f32.xlu1 %v1880_v62  ;;  %v1884_v14 = vadd.f32 %v1883_v8, %v4734_v4 }
 0x1be   : > { %v1723_v31 = vpop.f32.mrf.mxu1  ;;  %v4747_v41 = vadd.f32 %v1719_v35, %v1463_v45  ;;  %v2075_v28 = vsel %vm1842_vm0, %v1992_v24, 0.0  ;;  %v1467_v61 = vadd.f32 %v1466_v55, %v4504_v17  ;;  %v2072_v7 = vadd.f32 %v2071_v29, %v1989_v11 }
 0x1bf   : > { %v1468_v38 = vpop.f32.mrf.mxu0  ;;  %1885 = vadd.xlane.f32.xlu0 %v1884_v14  ;;  %v4758_v45 = vadd.f32 %v1717_v53, %v1461_v63  ;;  %v2076_v24 = vadd.f32 %v2075_v28, %v1991_v2 }
 0x1c0   : > { %v1725_v42 = vpop.f32.mrf.mxu1  ;;  %v1469_v49 = vadd.f32 %v1468_v38, %v4510_v27  ;;  %v1887_v62 = vsel %vm1842_vm0, %v4747_v41, 0.0  ;;  %v1994_v35 = vmul.f32 %v4747_v41, %v4747_v41  ;;  %v4762_v29 = vadd.f32 %v1723_v31, %v1467_v61 }
 0x1c1   : > { %v1472_v8 = vpop.f32.mrf.mxu0  ;;  %2073 = vadd.xlane.f32.xlu1 %v2072_v7  ;;  %v1888_v27 = vadd.f32 %v1887_v62, %v4758_v45  ;;  %v1993_v7 = vmul.f32 %v4758_v45, %v4758_v45 }
 0x1c2   : > { %v1729_v17 = vpop.f32.mrf.mxu1  ;;  %v4760_v50 = vadd.f32 %v1725_v42, %v1469_v49  ;;  %v2079_v53 = vsel %vm1842_vm0, %v1994_v35, 0.0  ;;  %v1473_v28 = vadd.f32 %v1472_v8, %v4512_v32  ;;  %v1995_v32 = vmul.f32 %v4762_v29, %v4762_v29 }
 0x1c3   : > { %v1474_v55 = vpop.f32.mrf.mxu0  ;;  %2077 = vadd.xlane.f32.xlu0 %v2076_v24  ;;  %v2080_v24 = vadd.f32 %v2079_v53, %v1993_v7 }
 0x1c4   : > { %v1731_v14 = vpop.f32.mrf.mxu1  ;;  %v1475_v11 = vadd.f32 %v1474_v55, %v4518_v43  ;;  %v1891_v38 = vsel %vm1842_vm0, %v4760_v50, 0.0  ;;  %v1996_v63 = vmul.f32 %v4760_v50, %v4760_v50 }
 0x1c5   : > { %v1478_v42 = vpop.f32.mrf.mxu0  ;;  %1889 = vadd.xlane.f32.xlu1 %v1888_v27  ;;  %v1892_v61 = vadd.f32 %v1891_v38, %v4762_v29  ;;  %v4786_v27 = vadd.f32 %v1729_v17, %v1473_v28 }
 0x1c6   : > { %v1735_v31 = vpop.f32.mrf.mxu1  ;;  %v4775_v2 = vadd.f32 %v1731_v14, %v1475_v11  ;;  %v2083_v43 = vsel %vm1842_vm0, %v1996_v63, 0.0  ;;  %v1479_v49 = vadd.f32 %v1478_v42, %v4520_v47 }
 0x1c7   : > { %v1480_v62 = vpop.f32.mrf.mxu0  ;;  %1893 = vadd.xlane.f32.xlu0 %v1892_v61  ;;  %v2084_v38 = vadd.f32 %v2083_v43, %v1995_v32 }
 0x1c8   : > { %v1737_v35 = vpop.f32.mrf.mxu1  ;;  %v1481_v8 = vadd.f32 %v1480_v62, %v4524_v56  ;;  %v1895_v55 = vsel %vm1842_vm0, %v4775_v2, 0.0  ;;  %v1998_v14 = vmul.f32 %v4775_v2, %v4775_v2  ;;  %v4790_v53 = vadd.f32 %v1735_v31, %v1479_v49 }
 0x1c9   : > { %v1484_v11 = vpop.f32.mrf.mxu0  ;;  %2081 = vadd.xlane.f32.xlu1 %v2080_v24  ;;  %v1896_v56 = vadd.f32 %v1895_v55, %v4786_v27  ;;  %v1997_v24 = vmul.f32 %v4786_v27, %v4786_v27 }
 0x1ca   : > { %v1741_v47 = vpop.f32.mrf.mxu1  ;;  %v4788_v63 = vadd.f32 %v1737_v35, %v1481_v8  ;;  %v2087_v17 = vsel %vm1842_vm0, %v1998_v14, 0.0  ;;  %v1485_v43 = vadd.f32 %v1484_v11, %v4526_v60  ;;  %v1999_v60 = vmul.f32 %v4790_v53, %v4790_v53 }
 0x1cb   : > { %v1486_v42 = vpop.f32.mrf.mxu0  ;;  %2085 = vadd.xlane.f32.xlu0 %v2084_v38  ;;  %v2088_v38 = vadd.f32 %v2087_v17, %v1997_v24 }
 0x1cc   : > { %5583 = vst [vmem:[#allocation21_spill] sm:$0xff] %v4788_v63  ;;  %v1743_v61 = vpop.f32.mrf.mxu1  ;;  %v1487_v7 = vadd.f32 %v1486_v42, %v4528_v0  ;;  %v1899_v62 = vsel %vm1842_vm0, %v4788_v63, 0.0  ;;  %v2000_v28 = vmul.f32 %v4788_v63, %v4788_v63 }
 0x1cd   : > { %v1490_v35 = vpop.f32.mrf.mxu0  ;;  %1897 = vadd.xlane.f32.xlu1 %v1896_v56  ;;  %v1900_v49 = vadd.f32 %v1899_v62, %v4790_v53  ;;  %v4814_v56 = vadd.f32 %v1741_v47, %v1485_v43 }
 0x1ce   : > { %v1747_v31 = vpop.f32.mrf.mxu1  ;;  %v4803_v32 = vadd.f32 %v1743_v61, %v1487_v7  ;;  %v2091_v0 = vsel %vm1842_vm0, %v2000_v28, 0.0  ;;  %v1491_v8 = vadd.f32 %v1490_v35, %v4530_v6 }
 0x1cf   : > { %v1492_v55 = vpop.f32.mrf.mxu0  ;;  %1901 = vadd.xlane.f32.xlu0 %v1900_v49  ;;  %v2092_v62 = vadd.f32 %v2091_v0, %v1999_v60 }
 0x1d0   : > { %v1749_v14 = vpop.f32.mrf.mxu1  ;;  %v1493_v11 = vadd.f32 %v1492_v55, %v4532_v10  ;;  %v1903_v42 = vsel %vm1842_vm0, %v4803_v32, 0.0  ;;  %v2002_v61 = vmul.f32 %v4803_v32, %v4803_v32  ;;  %v4818_v17 = vadd.f32 %v1747_v31, %v1491_v8 }
 0x1d1   : > { %v1496_v7 = vpop.f32.mrf.mxu0  ;;  %2089 = vadd.xlane.f32.xlu1 %v2088_v38  ;;  %v1904_v10 = vadd.f32 %v1903_v42, %v4814_v56  ;;  %v2001_v38 = vmul.f32 %v4814_v56, %v4814_v56 }
 0x1d2   : > { %v1753_v6 = vpop.f32.mrf.mxu1  ;;  %v4816_v28 = vadd.f32 %v1749_v14, %v1493_v11  ;;  %5585 = vst [vmem:[#allocation23_spill] sm:$0xff] %v4818_v17  ;;  %v2095_v47 = vsel %vm1842_vm0, %v2002_v61, 0.0  ;;  %v1497_v0 = vadd.f32 %v1496_v7, %v4534_v19  ;;  %v2003_v19 = vmul.f32 %v4818_v17, %v4818_v17 }
 0x1d3   : > { %v1498_v35 = vpop.f32.mrf.mxu0  ;;  %2093 = vadd.xlane.f32.xlu0 %v2092_v62  ;;  %v2096_v62 = vadd.f32 %v2095_v47, %v2001_v38 }
 0x1d4   : > { %5584 = vst [vmem:[#allocation22_spill] sm:$0xff] %v4816_v28  ;;  %v1755_v49 = vpop.f32.mrf.mxu1  ;;  %v1499_v24 = vadd.f32 %v1498_v35, %v4536_v22  ;;  %v1907_v55 = vsel %vm1842_vm0, %v4816_v28, 0.0  ;;  %v2004_v43 = vmul.f32 %v4816_v28, %v4816_v28 }
 0x1d5   : > { %v1502_v14 = vpop.f32.mrf.mxu0  ;;  %1905 = vadd.xlane.f32.xlu1 %v1904_v10  ;;  %v1908_v8 = vadd.f32 %v1907_v55, %v4818_v17  ;;  %v4842_v10 = vadd.f32 %v1753_v6, %v1497_v0  ;;  %v2330_v17 = vld [vmem:[%s5066_s21 + $0x38] sm:$0xff] }
 0x1d6   : > { %v1759_v31 = vpop.f32.mrf.mxu1  ;;  %v4831_v60 = vadd.f32 %v1755_v49, %v1499_v24  ;;  %v2099_v22 = vsel %vm1842_vm0, %v2004_v43, 0.0  ;;  %v1503_v11 = vadd.f32 %v1502_v14, %v4538_v30 }
 0x1d7   : > { %v1504_v42 = vpop.f32.mrf.mxu0  ;;  %1909 = vadd.xlane.f32.xlu0 %v1908_v8  ;;  %v2100_v55 = vadd.f32 %v2099_v22, %v2003_v19 }
 0x1d8   : > { %v1761_v61 = vpop.f32.mrf.mxu1  ;;  %v1505_v7 = vadd.f32 %v1504_v42, %v4540_v34  ;;  %v1911_v35 = vsel %vm1842_vm0, %v4831_v60, 0.0  ;;  %v2006_v49 = vmul.f32 %v4831_v60, %v4831_v60  ;;  %v4846_v47 = vadd.f32 %v1759_v31, %v1503_v11 }
 0x1d9   : > { %v1508_v24 = vpop.f32.mrf.mxu0  ;;  %2097 = vadd.xlane.f32.xlu1 %v2096_v62  ;;  %v1912_v34 = vadd.f32 %v1911_v35, %v4842_v10  ;;  %v2005_v62 = vmul.f32 %v4842_v10, %v4842_v10 }
 0x1da   : > { %v1765_v30 = vpop.f32.mrf.mxu1  ;;  %v4844_v43 = vadd.f32 %v1761_v61, %v1505_v7  ;;  %5587 = vst [vmem:[#allocation25_spill] sm:$0xff] %v4846_v47  ;;  %v2103_v6 = vsel %vm1842_vm0, %v2006_v49, 0.0  ;;  %v1509_v22 = vadd.f32 %v1508_v24, %v4542_v40  ;;  %v2007_v40 = vmul.f32 %v4846_v47, %v4846_v47 }
 0x1db   : > { %v1510_v14 = vpop.f32.mrf.mxu0  ;;  %2101 = vadd.xlane.f32.xlu0 %v2100_v55  ;;  %v2104_v55 = vadd.f32 %v2103_v6, %v2005_v62 }
 0x1dc   : > { %5586 = vst [vmem:[#allocation24_spill] sm:$0xff] %v4844_v43  ;;  %v1767_v8 = vpop.f32.mrf.mxu1  ;;  %v1511_v38 = vadd.f32 %v1510_v14, %v4544_v46  ;;  %v1915_v42 = vsel %vm1842_vm0, %v4844_v43, 0.0  ;;  %v2008_v0 = vmul.f32 %v4844_v43, %v4844_v43 }
 0x1dd   : > { %v1514_v61 = vpop.f32.mrf.mxu0  ;;  %1913 = vadd.xlane.f32.xlu1 %v1912_v34  ;;  %v1916_v11 = vadd.f32 %v1915_v42, %v4846_v47  ;;  %v4870_v34 = vadd.f32 %v1765_v30, %v1509_v22 }
 0x1de   : > { %v1771_v31 = vpop.f32.mrf.mxu1  ;;  %v4859_v19 = vadd.f32 %v1767_v8, %v1511_v38  ;;  %v2107_v46 = vsel %vm1842_vm0, %v2008_v0, 0.0  ;;  %v1515_v7 = vadd.f32 %v1514_v61, %v4546_v52 }
 0x1df   : > { %v1516_v35 = vpop.f32.mrf.mxu0  ;;  %1917 = vadd.xlane.f32.xlu0 %v1916_v11  ;;  %5589 = vst [vmem:[#allocation27_spill] sm:$0xff] %v4870_v34  ;;  %v2108_v42 = vadd.f32 %v2107_v46, %v2007_v40 }
 0x1e0   : > { %5588 = vst [vmem:[#allocation26_spill] sm:$0xff] %v4859_v19  ;;  %v1773_v49 = vpop.f32.mrf.mxu1  ;;  %v1517_v24 = vadd.f32 %v1516_v35, %v4548_v59  ;;  %v1919_v14 = vsel %vm1842_vm0, %v4859_v19, 0.0  ;;  %v2010_v8 = vmul.f32 %v4859_v19, %v4859_v19  ;;  %v4874_v6 = vadd.f32 %v1771_v31, %v1515_v7 }
 0x1e1   : > { %v1520_v38 = vpop.f32.mrf.mxu0  ;;  %2105 = vadd.xlane.f32.xlu1 %v2104_v55  ;;  %v1920_v59 = vadd.f32 %v1919_v14, %v4870_v34  ;;  %v2009_v55 = vmul.f32 %v4870_v34, %v4870_v34 }
 0x1e2   : > { %v1777_v52 = vpop.f32.mrf.mxu1  ;;  %v4872_v0 = vadd.f32 %v1773_v49, %v1517_v24  ;;  %5591 = vst [vmem:[#allocation29_spill] sm:$0xff] %v4874_v6  ;;  %v2111_v30 = vsel %vm1842_vm0, %v2010_v8, 0.0  ;;  %v1521_v46 = vadd.f32 %v1520_v38, %v4550_v3  ;;  %v2011_v3 = vmul.f32 %v4874_v6, %v4874_v6 }
 0x1e3   : > { %v1522_v61 = vpop.f32.mrf.mxu0  ;;  %2109 = vadd.xlane.f32.xlu0 %v2108_v42  ;;  %v2112_v42 = vadd.f32 %v2111_v30, %v2009_v55 }
 0x1e4   : > { %5590 = vst [vmem:[#allocation28_spill] sm:$0xff] %v4872_v0  ;;  %v1779_v11 = vpop.f32.mrf.mxu1  ;;  %v1523_v62 = vadd.f32 %v1522_v61, %v4552_v9  ;;  %v1923_v35 = vsel %vm1842_vm0, %v4872_v0, 0.0  ;;  %v2012_v22 = vmul.f32 %v4872_v0, %v4872_v0 }
 0x1e5   : > { %v1526_v49 = vpop.f32.mrf.mxu0  ;;  %1921 = vadd.xlane.f32.xlu1 %v1920_v59  ;;  %v1924_v7 = vadd.f32 %v1923_v35, %v4874_v6  ;;  %v4898_v59 = vadd.f32 %v1777_v52, %v1521_v46 }
 0x1e6   : > { %v1783_v31 = vpop.f32.mrf.mxu1  ;;  %v4887_v40 = vadd.f32 %v1779_v11, %v1523_v62  ;;  %v2115_v9 = vsel %vm1842_vm0, %v2012_v22, 0.0  ;;  %v1527_v24 = vadd.f32 %v1526_v49, %v4554_v20 }
 0x1e7   : > { %v1528_v14 = vpop.f32.mrf.mxu0  ;;  %1925 = vadd.xlane.f32.xlu0 %v1924_v7  ;;  %5593 = vst [vmem:[#allocation31_spill] sm:$0xff] %v4898_v59  ;;  %v2116_v35 = vadd.f32 %v2115_v9, %v2011_v3  ;;  %v5596_v9 = vld [vmem:[#allocation2_spill] sm:$0xff]  ;;  %v2013_v3 = vmul.f32 %v4898_v59, %v4898_v59 }
 0x1e8   : > { %5592 = vst [vmem:[#allocation30_spill] sm:$0xff] %v4887_v40  ;;  %v1785_v8 = vpop.f32.mrf.mxu1  ;;  %v1529_v38 = vadd.f32 %v1528_v14, %v4556_v26  ;;  %v1927_v61 = vsel %vm1842_vm0, %v4887_v40, 0.0  ;;  %v2014_v11 = vmul.f32 %v4887_v40, %v4887_v40  ;;  %v4902_v30 = vadd.f32 %v1783_v31, %v1527_v24  ;;  %v2325_v40 = vld [vmem:[%s5066_s21 + $0x10] sm:$0xff] }
 0x1e9   : > { %v1532_v62 = vpop.f32.mrf.mxu0  ;;  %2113 = vadd.xlane.f32.xlu1 %v2112_v42  ;;  %v1928_v26 = vadd.f32 %v1927_v61, %v4898_v59  ;;  %v5598_v61 = vld [vmem:[#allocation3_spill] sm:$0xff] }
 0x1ea   : > { %v1789_v20 = vpop.f32.mrf.mxu1  ;;  %v4900_v22 = vadd.f32 %v1785_v8, %v1529_v38  ;;  %5595 = vst [vmem:[#allocation33_spill] sm:$0xff] %v4902_v30  ;;  %v2119_v52 = vsel %vm1842_vm0, %v2014_v11, 0.0  ;;  %v1533_v8 = vadd.f32 %v1532_v62, %v5596_v9  ;;  %v2015_v62 = vmul.f32 %v4902_v30, %v4902_v30 }
 0x1eb   : > { %v1534_v49 = vpop.f32.mrf.mxu0  ;;  %2117 = vadd.xlane.f32.xlu0 %v2116_v35 }
 0x1ec   : > { %5594 = vst [vmem:[#allocation32_spill] sm:$0xff] %v4900_v22  ;;  %v1791_v7 = vpop.f32.mrf.mxu1  ;;  %v1535_v55 = vadd.f32 %v1534_v49, %v4560_v44  ;;  %v1931_v14 = vsel %vm1842_vm0, %v4900_v22, 0.0  ;;  %v2016_v46 = vmul.f32 %v4900_v22, %v4900_v22  ;;  %v2120_v22 = vadd.f32 %v2119_v52, %v2013_v3 }
 0x1ed   : > { %v1538_v42 = vpop.f32.mrf.mxu0  ;;  %1929 = vadd.xlane.f32.xlu1 %v1928_v26  ;;  %v1932_v24 = vadd.f32 %v1931_v14, %v4902_v30  ;;  %v5599_v26 = vld [vmem:[#allocation4_spill] sm:$0xff] }
 0x1ee   : > { %v1795_v31 = vpop.f32.mrf.mxu1  ;;  %v4915_v38 = vadd.f32 %v1791_v7, %v1535_v55  ;;  %v2123_v44 = vsel %vm1842_vm0, %v2016_v46, 0.0  ;;  %v1539_v35 = vadd.f32 %v1538_v42, %v5598_v61  ;;  %v4926_v55 = vadd.f32 %v1789_v20, %v1533_v8  ;;  %v5604_v8 = vld [vmem:[#allocation5_spill] sm:$0xff] }
 0x1ef   : > { %v1540_v11 = vpop.f32.mrf.mxu0  ;;  %1933 = vadd.xlane.f32.xlu0 %v1932_v24  ;;  %v2124_v61 = vadd.f32 %v2123_v44, %v2015_v62 }
 0x1f0   : > { %5597 = vst [vmem:[#allocation2_spill] sm:$0xff] %v4915_v38  ;;  %v1797_v49 = vpop.f32.mrf.mxu1  ;;  %v1541_v9 = vadd.f32 %v1540_v11, %v5599_v26  ;;  %v1935_v14 = vsel %vm1842_vm0, %v4915_v38, 0.0  ;;  %v2018_v7 = vmul.f32 %v4915_v38, %v4915_v38  ;;  %5600 = vst [vmem:[#allocation3_spill] sm:$0xff] %v4926_v55  ;;  %v4930_v52 = vadd.f32 %v1795_v31, %v1539_v35  ;;  %v5603_v26 = vld [vmem:[#allocation6_spill] sm:$0xff] }
 0x1f1   : > { %v1544_v46 = vpop.f32.mrf.mxu0  ;;  %2121 = vadd.xlane.f32.xlu1 %v2120_v22  ;;  %v1936_v11 = vadd.f32 %v1935_v14, %v4926_v55  ;;  %v2017_v62 = vmul.f32 %v4926_v55, %v4926_v55 }
 0x1f2   : > { %v1801_v42 = vpop.f32.mrf.mxu1  ;;  %v4928_v24 = vadd.f32 %v1797_v49, %v1541_v9  ;;  %5602 = vst [vmem:[#allocation34_spill] sm:$0xff] %v4930_v52  ;;  %v2127_v20 = vsel %vm1842_vm0, %v2018_v7, 0.0  ;;  %v1545_v44 = vadd.f32 %v1544_v46, %v5604_v8  ;;  %v2019_v46 = vmul.f32 %v4930_v52, %v4930_v52 }
 0x1f3   : > { %v1546_v3 = vpop.f32.mrf.mxu0  ;;  %2125 = vadd.xlane.f32.xlu0 %v2124_v61  ;;  %v5606_v61 = vld [vmem:[#allocation7_spill] sm:$0xff] }
 0x1f4   : > { %5601 = vst [vmem:[#allocation4_spill] sm:$0xff] %v4928_v24  ;;  %v1803_v30 = vpop.f32.mrf.mxu1  ;;  %v1547_v0 = vadd.f32 %v1546_v3, %v5603_v26  ;;  %v1939_v6 = vsel %vm1842_vm0, %v4928_v24, 0.0  ;;  %v2020_v22 = vmul.f32 %v4928_v24, %v4928_v24  ;;  %v2128_v24 = vadd.f32 %v2127_v20, %v2017_v62 }
 0x1f5   : > { %v1550_v49 = vpop.f32.mrf.mxu0  ;;  %1937 = vadd.xlane.f32.xlu1 %v1936_v11  ;;  %v1940_v35 = vadd.f32 %v1939_v6, %v4930_v52  ;;  %v5607_v11 = vld [vmem:[#allocation8_spill] sm:$0xff] }
 0x1f6   : > { %v1807_v31 = vpop.f32.mrf.mxu1  ;;  %v4943_v9 = vadd.f32 %v1803_v30, %v1547_v0  ;;  %v2131_v14 = vsel %vm1842_vm0, %v2020_v22, 0.0  ;;  %v1551_v3 = vadd.f32 %v1550_v49, %v5606_v61  ;;  %v4954_v30 = vadd.f32 %v1801_v42, %v1545_v44  ;;  %v5612_v44 = vld [vmem:[#allocation9_spill] sm:$0xff] }
 0x1f7   : > { %v1552_v7 = vpop.f32.mrf.mxu0  ;;  %1941 = vadd.xlane.f32.xlu0 %v1940_v35  ;;  %v2132_v61 = vadd.f32 %v2131_v14, %v2019_v46 }
 0x1f8   : > { %5605 = vst [vmem:[#allocation6_spill] sm:$0xff] %v4943_v9  ;;  %v1809_v26 = vpop.f32.mrf.mxu1  ;;  %v1553_v8 = vadd.f32 %v1552_v7, %v5607_v11  ;;  %v1943_v6 = vsel %vm1842_vm0, %v4943_v9, 0.0  ;;  %v2022_v0 = vmul.f32 %v4943_v9, %v4943_v9  ;;  %5608 = vst [vmem:[#allocation5_spill] sm:$0xff] %v4954_v30  ;;  %v4958_v20 = vadd.f32 %v1807_v31, %v1551_v3  ;;  %v5611_v11 = vld [vmem:[#allocation10_spill] sm:$0xff] }
 0x1f9   : > { %v1556_v22 = vpop.f32.mrf.mxu0  ;;  %2129 = vadd.xlane.f32.xlu1 %v2128_v24  ;;  %v1944_v7 = vadd.f32 %v1943_v6, %v4954_v30  ;;  %v2021_v46 = vmul.f32 %v4954_v30, %v4954_v30 }
 0x1fa   : > { %v1813_v49 = vpop.f32.mrf.mxu1  ;;  %v4956_v35 = vadd.f32 %v1809_v26, %v1553_v8  ;;  %5610 = vst [vmem:[#allocation8_spill] sm:$0xff] %v4958_v20  ;;  %v2135_v42 = vsel %vm1842_vm0, %v2022_v0, 0.0  ;;  %v1557_v14 = vadd.f32 %v1556_v22, %v5612_v44  ;;  %v2023_v22 = vmul.f32 %v4958_v20, %v4958_v20 }
 0x1fb   : > { %v1558_v62 = vpop.f32.mrf.mxu0  ;;  %2133 = vadd.xlane.f32.xlu0 %v2132_v61  ;;  %v5614_v61 = vld [vmem:[#allocation11_spill] sm:$0xff] }
 0x1fc   : > { %5609 = vst [vmem:[#allocation7_spill] sm:$0xff] %v4956_v35  ;;  %v1815_v52 = vpop.f32.mrf.mxu1  ;;  %v1559_v38 = vadd.f32 %v1558_v62, %v5611_v11  ;;  %v1947_v9 = vsel %vm1842_vm0, %v4956_v35, 0.0  ;;  %v2024_v24 = vmul.f32 %v4956_v35, %v4956_v35  ;;  %v2136_v35 = vadd.f32 %v2135_v42, %v2021_v46 }
 0x1fd   : > { %v1562_v26 = vpop.f32.mrf.mxu0  ;;  %1945 = vadd.xlane.f32.xlu1 %v1944_v7  ;;  %v1948_v3 = vadd.f32 %v1947_v9, %v4958_v20  ;;  %v5615_v7 = vld [vmem:[#allocation12_spill] sm:$0xff] }
 0x1fe   : > { %v1819_v31 = vpop.f32.mrf.mxu1  ;;  %v4971_v8 = vadd.f32 %v1815_v52, %v1559_v38  ;;  %v2139_v6 = vsel %vm1842_vm0, %v2024_v24, 0.0  ;;  %v1563_v62 = vadd.f32 %v1562_v26, %v5614_v61  ;;  %v4982_v52 = vadd.f32 %v1813_v49, %v1557_v14  ;;  %v5620_v14 = vld [vmem:[#allocation13_spill] sm:$0xff] }
 0x1ff   : > { %v1564_v0 = vpop.f32.mrf.mxu0  ;;  %1949 = vadd.xlane.f32.xlu0 %v1948_v3  ;;  %v2140_v61 = vadd.f32 %v2139_v6, %v2023_v22 }
 0x200   : > { %5613 = vst [vmem:[#allocation10_spill] sm:$0xff] %v4971_v8  ;;  %v1821_v11 = vpop.f32.mrf.mxu1  ;;  %v1565_v44 = vadd.f32 %v1564_v0, %v5615_v7  ;;  %v1951_v9 = vsel %vm1842_vm0, %v4971_v8, 0.0  ;;  %v2026_v38 = vmul.f32 %v4971_v8, %v4971_v8  ;;  %5616 = vst [vmem:[#allocation9_spill] sm:$0xff] %v4982_v52  ;;  %v4986_v42 = vadd.f32 %v1819_v31, %v1563_v62  ;;  %v5619_v7 = vld [vmem:[#allocation14_spill] sm:$0xff] }
 0x201   : > { %v1568_v24 = vpop.f32.mrf.mxu0  ;;  %2137 = vadd.xlane.f32.xlu1 %v2136_v35  ;;  %v1952_v0 = vadd.f32 %v1951_v9, %v4982_v52  ;;  %v2025_v22 = vmul.f32 %v4982_v52, %v4982_v52 }
 0x202   : > { %v1825_v26 = vpop.f32.mrf.mxu1  ;;  %v4984_v3 = vadd.f32 %v1821_v11, %v1565_v44  ;;  %5618 = vst [vmem:[#allocation12_spill] sm:$0xff] %v4986_v42  ;;  %v2143_v49 = vsel %vm1842_vm0, %v2026_v38, 0.0  ;;  %v1569_v6 = vadd.f32 %v1568_v24, %v5620_v14  ;;  %v2027_v24 = vmul.f32 %v4986_v42, %v4986_v42 }
 0x203   : > { %v1570_v46 = vpop.f32.mrf.mxu0  ;;  %2141 = vadd.xlane.f32.xlu0 %v2140_v61  ;;  %v5622_v61 = vld [vmem:[#allocation15_spill] sm:$0xff] }
 0x204   : > { %5617 = vst [vmem:[#allocation11_spill] sm:$0xff] %v4984_v3  ;;  %v1827_v20 = vpop.f32.mrf.mxu1  ;;  %v1571_v30 = vadd.f32 %v1570_v46, %v5619_v7  ;;  %v1955_v8 = vsel %vm1842_vm0, %v4984_v3, 0.0  ;;  %v2028_v35 = vmul.f32 %v4984_v3, %v4984_v3  ;;  %v2144_v3 = vadd.f32 %v2143_v49, %v2025_v22 }
 0x205   : > { %v1574_v11 = vpop.f32.mrf.mxu0  ;;  %1953 = vadd.xlane.f32.xlu1 %v1952_v0  ;;  %v1956_v62 = vadd.f32 %v1955_v8, %v4986_v42 }
 0x206   : > { %v1831_v31 = vpop.f32.mrf.mxu1  ;;  %v4999_v44 = vadd.f32 %v1827_v20, %v1571_v30  ;;  %v2147_v9 = vsel %vm1842_vm0, %v2028_v35, 0.0  ;;  %v1575_v46 = vadd.f32 %v1574_v11, %v5622_v61  ;;  %v5010_v20 = vadd.f32 %v1825_v26, %v1569_v6  ;;  %v5626_v6 = vld [vmem:[#allocation16_spill] sm:$0xff] }
 0x207   : > { %v1576_v38 = vpop.f32.mrf.mxu0  ;;  %1957 = vadd.xlane.f32.xlu0 %v1956_v62  ;;  %v2148_v11 = vadd.f32 %v2147_v9, %v2027_v24 }
 0x208   : > { %5621 = vst [vmem:[#allocation14_spill] sm:$0xff] %v4999_v44  ;;  %v1833_v7 = vpop.f32.mrf.mxu1  ;;  %v1577_v0 = vadd.f32 %v1576_v38, %v4588_v13  ;;  %v1959_v8 = vsel %vm1842_vm0, %v4999_v44, 0.0  ;;  %v2030_v30 = vmul.f32 %v4999_v44, %v4999_v44  ;;  %5623 = vst [vmem:[#allocation13_spill] sm:$0xff] %v5010_v20  ;;  %v5014_v49 = vadd.f32 %v1831_v31, %v1575_v46 }
 0x209   : > { %v1580_v35 = vpop.f32.mrf.mxu0  ;;  %2145 = vadd.xlane.f32.xlu1 %v2144_v3  ;;  %v1960_v13 = vadd.f32 %v1959_v8, %v5010_v20  ;;  %v2029_v46 = vmul.f32 %v5010_v20, %v5010_v20  ;;  %v2324_v20 = vld [vmem:[%s5066_s21 + $0x8] sm:$0xff] }
 0x20a   : > { %v1837_v14 = vpop.f32.mrf.mxu1  ;;  %v5012_v62 = vadd.f32 %v1833_v7, %v1577_v0  ;;  %5625 = vst [vmem:[#allocation35_spill] sm:$0xff] %v5014_v49  ;;  %v2151_v26 = vsel %vm1842_vm0, %v2030_v30, 0.0  ;;  %v1581_v9 = vadd.f32 %v1580_v35, %v5626_v6  ;;  %v2031_v0 = vmul.f32 %v5014_v49, %v5014_v49 }
 0x20b   : > { %v1582_v22 = vpop.f32.mrf.mxu0  ;;  %2149 = vadd.xlane.f32.xlu0 %v2148_v11  ;;  %v2152_v24 = vadd.f32 %v2151_v26, %v2029_v46 }
 0x20c   : > { %5624 = vst [vmem:[#allocation15_spill] sm:$0xff] %v5012_v62  ;;  %v1839_v61 = vpop.f32.mrf.mxu1  ;;  %v1583_v38 = vadd.f32 %v1582_v22, %v4592_v39  ;;  %v1963_v42 = vsel %vm1842_vm0, %v5012_v62, 0.0  ;;  %v2032_v3 = vmul.f32 %v5012_v62, %v5012_v62  ;;  %v5036_v35 = vadd.f32 %v1837_v14, %v1581_v9 }
 0x20d   : > { %1961 = vadd.xlane.f32.xlu1 %v1960_v13  ;;  %v1964_v31 = vadd.f32 %v1963_v42, %v5014_v49 }
 0x20e   : > { %v5027_v7 = vadd.f32 %v1839_v61, %v1583_v38  ;;  %v2155_v39 = vsel %vm1842_vm0, %v2032_v3, 0.0  ;;  %5628 = vst [vmem:[#allocation36_spill] sm:$0xff] %v5036_v35  ;;  %v2033_v61 = vmul.f32 %v5036_v35, %v5036_v35 }
 0x20f   : > { %1965 = vadd.xlane.f32.xlu0 %v1964_v31  ;;  %v2156_v42 = vadd.f32 %v2155_v39, %v2031_v0 }
 0x210   : > { %5627 = vst [vmem:[#allocation16_spill] sm:$0xff] %v5027_v7  ;;  %v1967_v8 = vsel %vm1842_vm0, %v5027_v7, 0.0  ;;  %v2034_v30 = vmul.f32 %v5027_v7, %v5027_v7 }
 0x211   : > { %2153 = vadd.xlane.f32.xlu1 %v2152_v24  ;;  %v1968_v11 = vadd.f32 %v1967_v8, %v5036_v35 }
 0x212   : > { %v2159_v22 = vsel %vm1842_vm0, %v2034_v30, 0.0 }
 0x213   : > { %2157 = vadd.xlane.f32.xlu0 %v2156_v42  ;;  %v2160_v13 = vadd.f32 %v2159_v22, %v2033_v61 }
 0x215   : > { %1969 = vadd.xlane.f32.xlu1 %v1968_v11 }
 0x219   : > { %2161 = vadd.xlane.f32.xlu1 %v2160_v13 }
 0x220   : > { %v1846_v38 = vpop.xlane.xlu0 %1845 }
 0x221   : > { %v5042_v26 = vmul.f32 0.0051020407, %v1846_v38 }
 0x223   : > { %v2227_v14 = vmul.f32 %v5042_v26, %v5042_v26 }
 0x224   : > { %v2038_v3 = vpop.xlane.xlu0 %2037 }
 0x225   : > { %v2195_v6 = vmul.f32 0.0051020407, %v2038_v3 }
 0x226   : > { %v2042_v9 = vpop.xlane.xlu1 %2041 }
 0x227   : > { %v2259_v31 = vsub.f32 %v2195_v6, %v2227_v14  ;;  %v2196_v30 = vmul.f32 0.0051020407, %v2042_v9 }
 0x228   : > { %v1850_v46 = vpop.xlane.xlu0 %1849 }
 0x229   : > { %v2291_v39 = vmax.f32 %v2259_v31, 0.0  ;;  %v5046_v24 = vmul.f32 0.0051020407, %v1850_v46 }
 0x22a   : > { %v1854_v0 = vpop.xlane.xlu1 %1853 }
 0x22b   : > { %v2355_v8 = vadd.f32 1e-05, %v2291_v39  ;;  %v2228_v42 = vmul.f32 %v5046_v24, %v5046_v24  ;;  %v5050_v11 = vmul.f32 0.0051020407, %v1854_v0 }
 0x22c   : > { %v2046_v22 = vpop.xlane.xlu0 %2045 }
 0x22d   : > { %3315 = vrsqrt.f32 %v2355_v8  ;;  %v2260_v61 = vsub.f32 %v2196_v30, %v2228_v42  ;;  %v2229_v13 = vmul.f32 %v5050_v11, %v5050_v11  ;;  %v2197_v38 = vmul.f32 0.0051020407, %v2046_v22 }
 0x22e   : > { %v1858_v3 = vpop.xlane.xlu1 %1857 }
 0x22f   : > { %v2292_v14 = vmax.f32 %v2260_v61, 0.0  ;;  %v2261_v6 = vsub.f32 %v2197_v38, %v2229_v13  ;;  %v5054_v31 = vmul.f32 0.0051020407, %v1858_v3 }
 0x230   : > { %v1862_v9 = vpop.xlane.xlu0 %1861 }
 0x231   : > { %v2356_v46 = vadd.f32 1e-05, %v2292_v14  ;;  %v2293_v39 = vmax.f32 %v2261_v6, 0.0  ;;  %v2230_v0 = vmul.f32 %v5054_v31, %v5054_v31  ;;  %v5059_v8 = vmul.f32 0.0051020407, %v1862_v9 }
 0x232   : > { %v2050_v62 = vpop.xlane.xlu1 %2049 }
 0x233   : > { %3317 = vrsqrt.f32 %v2356_v46  ;;  %v2198_v30 = vmul.f32 0.0051020407, %v2050_v62  ;;  %v2357_v22 = vadd.f32 1e-05, %v2293_v39  ;;  %v2231_v38 = vmul.f32 %v5059_v8, %v5059_v8  ;;  %v2323_v46 = vld [vmem:[%s5066_s21] sm:$0xff] }
 0x234   : > { %v2054_v42 = vpop.xlane.xlu0 %2053 }
 0x235   : > { %v2262_v49 = vsub.f32 %v2198_v30, %v2230_v0  ;;  %v2199_v61 = vmul.f32 0.0051020407, %v2054_v42  ;;  %3319 = vrsqrt.f32 %v2357_v22 }
 0x236   : > { %v1866_v13 = vpop.xlane.xlu1 %1865 }
 0x237   : > { %v2294_v3 = vmax.f32 %v2262_v49, 0.0  ;;  %v5070_v14 = vmul.f32 0.0051020407, %v1866_v13  ;;  %v2263_v9 = vsub.f32 %v2199_v61, %v2231_v38 }
 0x238   : > { %v1870_v62 = vpop.xlane.xlu0 %1869 }
 0x239   : > { %v2358_v6 = vadd.f32 1e-05, %v2294_v3  ;;  %v2232_v30 = vmul.f32 %v5070_v14, %v5070_v14  ;;  %v2295_v44 = vmax.f32 %v2263_v9, 0.0  ;;  %v5076_v13 = vmul.f32 0.0051020407, %v1870_v62 }
 0x23a   : > { %v3316_v39 = vpop.eup %3315  ;;  %v2058_v0 = vpop.xlane.xlu1 %2057 }
 0x23b   : > { %3321 = vrsqrt.f32 %v2358_v6  ;;  %v2200_v42 = vmul.f32 0.0051020407, %v2058_v0  ;;  %v2419_v35 = vmul.f32 %v3316_v39, %v2323_v46  ;;  %v2359_v39 = vadd.f32 1e-05, %v2295_v44 }
 0x23c   : > { %v2062_v7 = vpop.xlane.xlu0 %2061 }
 0x23d   : > { %v2264_v49 = vsub.f32 %v2200_v42, %v2232_v30  ;;  %2549 = vperm.xlu0 %3313, %v2419_v35   ;;  %v2201_v6 = vmul.f32 0.0051020407, %v2062_v7  ;;  %v2483_v0 = vmul.f32 %v2419_v35, %v5042_v26  ;;  %v2233_v30 = vmul.f32 %v5076_v13, %v5076_v13 }
 0x23e   : > { %v1874_v22 = vpop.xlane.xlu1 %1873 }
 0x23f   : > { %v2296_v3 = vmax.f32 %v2264_v49, 0.0  ;;  %v5078_v61 = vmul.f32 0.0051020407, %v1874_v22  ;;  %v2452_v49 = vld [vmem:[%s5085_s25 + $0x8] sm:$0xff]  ;;  %v2451_v22 = vld [vmem:[%s5085_s25] sm:$0xff]  ;;  %v2265_v44 = vsub.f32 %v2201_v6, %v2233_v30 }
 0x240   : > { %v3318_v38 = vpop.eup %3317  ;;  %v1878_v9 = vpop.xlane.xlu0 %1877 }
 0x241   : > { %v2420_v46 = vmul.f32 %v3318_v38, %v2324_v20  ;;  %v2360_v62 = vadd.f32 1e-05, %v2296_v3  ;;  %v2234_v55 = vmul.f32 %v5078_v61, %v5078_v61  ;;  %v2515_v3 = vsub.f32 %v2451_v22, %v2483_v0  ;;  %v2454_v22 = vld [vmem:[%s5085_s25 + $0x18] sm:$0xff] }
 0x242   : > { %v2066_v42 = vpop.xlane.xlu1 %2065  ;;  %v3320_v38 = vpop.eup %3319  ;;  %v5095_v43 = vmul.f32 0.0051020407, %v1878_v9 }
 0x243   : > { %v2484_v52 = vmul.f32 %v2420_v46, %v5046_v24  ;;  %3323 = vrsqrt.f32 %v2360_v62  ;;  %v2202_v7 = vmul.f32 0.0051020407, %v2066_v42  ;;  %2554 = vperm.xlu1 %3314, %v2420_v46   ;;  %v2326_v62 = vld [vmem:[%s5066_s21 + $0x18] sm:$0xff]  ;;  %v2297_v46 = vmax.f32 %v2265_v44, 0.0 }
 0x244   : > { %v2070_v20 = vpop.xlane.xlu0 %2069  ;;  %3325 = vrsqrt.f32 %v2359_v39 }
 0x245   : > { %v2266_v35 = vsub.f32 %v2202_v7, %v2234_v55  ;;  %v2516_v26 = vsub.f32 %v2452_v49, %v2484_v52  ;;  %v2203_v6 = vmul.f32 0.0051020407, %v2070_v20  ;;  %v2421_v55 = vmul.f32 %v3320_v38, %v2325_v40  ;;  %v2453_v38 = vld [vmem:[%s5085_s25 + $0x10] sm:$0xff] }
 0x246   : > { %v1882_v47 = vpop.xlane.xlu1 %1881  ;;  %v2235_v52 = vmul.f32 %v5095_v43, %v5095_v43  ;;  %v2361_v7 = vadd.f32 1e-05, %v2297_v46 }
 0x247   : > { %v2298_v59 = vmax.f32 %v2266_v35, 0.0  ;;  %v5098_v24 = vmul.f32 0.0051020407, %v1882_v47  ;;  %2778 = vperm.xlu0 %3313, %v2516_v26   ;;  %2773 = vperm.xlu1 %3314, %v2515_v3   ;;  %v2485_v35 = vmul.f32 %v2421_v55, %v5050_v11 }
 0x248   : > { %v3322_v42 = vpop.eup %3321  ;;  %v1886_v30 = vpop.xlane.xlu0 %1885  ;;  %v2267_v44 = vsub.f32 %v2203_v6, %v2235_v52 }
 0x249   : > { %v2362_v39 = vadd.f32 1e-05, %v2298_v59  ;;  %v2422_v0 = vmul.f32 %v3322_v42, %v2326_v62  ;;  %v2236_v47 = vmul.f32 %v5098_v24, %v5098_v24  ;;  %v5109_v62 = vmul.f32 0.0051020407, %v1886_v30  ;;  %v2327_v30 = vld [vmem:[%s5066_s21 + $0x20] sm:$0xff] }
 0x24a   : > { %v2074_v9 = vpop.xlane.xlu1 %2073  ;;  %v2299_v46 = vmax.f32 %v2267_v44, 0.0  ;;  %v2517_v11 = vsub.f32 %v2453_v38, %v2485_v35  ;;  %v2456_v44 = vld [vmem:[%s5085_s25 + $0x28] sm:$0xff] }
 0x24b   : > { %3327 = vrsqrt.f32 %v2362_v39  ;;  %v2204_v49 = vmul.f32 0.0051020407, %v2074_v9  ;;  %2559 = vperm.xlu1 %3314, %v2421_v55   ;;  %v2486_v59 = vmul.f32 %v2422_v0, %v5054_v31  ;;  %v2328_v9 = vld [vmem:[%s5066_s21 + $0x28] sm:$0xff] }
 0x24c   : > { %v2078_v20 = vpop.xlane.xlu0 %2077  ;;  %3329 = vrsqrt.f32 %v2361_v7 }
 0x24d   : > { %v2268_v40 = vsub.f32 %v2204_v49, %v2236_v47  ;;  %v2518_v3 = vsub.f32 %v2454_v22, %v2486_v59  ;;  %v2205_v52 = vmul.f32 0.0051020407, %v2078_v20  ;;  %v2237_v22 = vmul.f32 %v5109_v62, %v5109_v62 }
 0x24e   : > { %v1890_v26 = vpop.xlane.xlu1 %1889  ;;  %v2363_v59 = vadd.f32 1e-05, %v2299_v46 }
 0x24f   : > { %v2300_v42 = vmax.f32 %v2268_v40, 0.0  ;;  %v5111_v39 = vmul.f32 0.0051020407, %v1890_v26  ;;  %2564 = vperm.xlu1 %3314, %v2422_v0   ;;  %2788 = vperm.xlu0 %3313, %v2518_v3   ;;  %v2269_v35 = vsub.f32 %v2205_v52, %v2237_v22 }
 0x250   : > { %v3324_v28 = vpop.eup %3323  ;;  %v1894_v31 = vpop.xlane.xlu0 %1893 }
 0x251   : > { %v2364_v6 = vadd.f32 1e-05, %v2300_v42  ;;  %v3326_v55 = vpop.eup %3325  ;;  %v2424_v49 = vmul.f32 %v3324_v28, %v2328_v9  ;;  %v2238_v0 = vmul.f32 %v5111_v39, %v5111_v39  ;;  %v5121_v42 = vmul.f32 0.0051020407, %v1894_v31  ;;  %v2455_v31 = vld [vmem:[%s5085_s25 + $0x20] sm:$0xff] }
 0x252   : > { %v2082_v47 = vpop.xlane.xlu1 %2081  ;;  %v2423_v3 = vmul.f32 %v3326_v55, %v2327_v30 }
 0x253   : > { %3331 = vrsqrt.f32 %v2364_v6  ;;  %v2206_v7 = vmul.f32 0.0051020407, %v2082_v47  ;;  %2783 = vperm.xlu1 %3314, %v2517_v11   ;;  %v2488_v20 = vmul.f32 %v2424_v49, %v5070_v14  ;;  %v2301_v11 = vmax.f32 %v2269_v35, 0.0 }
 0x254   : > { %v2086_v40 = vpop.xlane.xlu0 %2085  ;;  %3333 = vrsqrt.f32 %v2363_v59  ;;  %v2487_v55 = vmul.f32 %v2423_v3, %v5059_v8  ;;  %v2458_v59 = vld [vmem:[%s5085_s25 + $0x38] sm:$0xff] }
 0x255   : > { %v2270_v26 = vsub.f32 %v2206_v7, %v2238_v0  ;;  %v2520_v38 = vsub.f32 %v2456_v44, %v2488_v20  ;;  %v2207_v52 = vmul.f32 0.0051020407, %v2086_v40  ;;  %v2239_v0 = vmul.f32 %v5121_v42, %v5121_v42 }
 0x256   : > { %v1898_v28 = vpop.xlane.xlu1 %1897  ;;  %v2365_v8 = vadd.f32 1e-05, %v2301_v11 }
 0x257   : > { %v2302_v9 = vmax.f32 %v2270_v26, 0.0  ;;  %v5123_v6 = vmul.f32 0.0051020407, %v1898_v28  ;;  %2569 = vperm.xlu1 %3314, %v2423_v3   ;;  %2798 = vperm.xlu0 %3313, %v2520_v38   ;;  %v2271_v26 = vsub.f32 %v2207_v52, %v2239_v0  ;;  %v2329_v28 = vld [vmem:[%s5066_s21 + $0x30] sm:$0xff] }
 0x258   : > { %v3328_v47 = vpop.eup %3327  ;;  %v1902_v46 = vpop.xlane.xlu0 %1901 }
 0x259   : > { %v2366_v14 = vadd.f32 1e-05, %v2302_v9  ;;  %v2426_v22 = vmul.f32 %v3328_v47, %v2330_v17  ;;  %v2240_v7 = vmul.f32 %v5123_v6, %v5123_v6  ;;  %v3330_v35 = vpop.eup %3329  ;;  %v2519_v17 = vsub.f32 %v2455_v31, %v2487_v55 }
 0x25a   : > { %v2090_v30 = vpop.xlane.xlu1 %2089  ;;  %v5135_v47 = vmul.f32 0.0051020407, %v1902_v46  ;;  %v2303_v11 = vmax.f32 %v2271_v26, 0.0 }
 0x25b   : > { %3335 = vrsqrt.f32 %v2366_v14  ;;  %v2208_v44 = vmul.f32 0.0051020407, %v2090_v30  ;;  %2574 = vperm.xlu1 %3314, %v2424_v49   ;;  %v2490_v40 = vmul.f32 %v2426_v22, %v5078_v61  ;;  %v2332_v49 = vld [vmem:[%s5066_s21 + $0x48] sm:$0xff]  ;;  %v2425_v61 = vmul.f32 %v3330_v35, %v2329_v28  ;;  %v2457_v28 = vld [vmem:[%s5085_s25 + $0x30] sm:$0xff] }
 0x25c   : > { %v2094_v20 = vpop.xlane.xlu0 %2093  ;;  %3337 = vrsqrt.f32 %v2365_v8  ;;  %v2241_v46 = vmul.f32 %v5135_v47, %v5135_v47  ;;  %v2367_v26 = vadd.f32 1e-05, %v2303_v11 }
 0x25d   : > { %v2272_v3 = vsub.f32 %v2208_v44, %v2240_v7  ;;  %v2522_v9 = vsub.f32 %v2458_v59, %v2490_v40  ;;  %v2209_v0 = vmul.f32 0.0051020407, %v2094_v20  ;;  %v2460_v59 = vld [vmem:[%s5085_s25 + $0x48] sm:$0xff]  ;;  %v2489_v20 = vmul.f32 %v2425_v61, %v5076_v13 }
 0x25e   : > { %v1906_v38 = vpop.xlane.xlu1 %1905 }
 0x25f   : > { %v2304_v14 = vmax.f32 %v2272_v3, 0.0  ;;  %v5137_v19 = vmul.f32 0.0051020407, %v1906_v38  ;;  %2793 = vperm.xlu1 %3314, %v2519_v17   ;;  %2808 = vperm.xlu0 %3313, %v2522_v9   ;;  %v2273_v3 = vsub.f32 %v2209_v0, %v2241_v46 }
 0x260   : > { %v3332_v30 = vpop.eup %3331  ;;  %v1910_v34 = vpop.xlane.xlu0 %1909 }
 0x261   : > { %v2368_v52 = vadd.f32 1e-05, %v2304_v14  ;;  %v2428_v31 = vmul.f32 %v3332_v30, %v2332_v49  ;;  %v2242_v7 = vmul.f32 %v5137_v19, %v5137_v19  ;;  %v3334_v8 = vpop.eup %3333  ;;  %v5148_v38 = vmul.f32 0.0051020407, %v1910_v34  ;;  %v2331_v49 = vld [vmem:[%s5066_s21 + $0x40] sm:$0xff] }
 0x262   : > { %v2098_v55 = vpop.xlane.xlu1 %2097  ;;  %v2305_v11 = vmax.f32 %v2273_v3, 0.0 }
 0x263   : > { %3339 = vrsqrt.f32 %v2368_v52  ;;  %v2210_v44 = vmul.f32 0.0051020407, %v2098_v55  ;;  %2579 = vperm.xlu1 %3314, %v2425_v61   ;;  %2594 = vperm.xlu0 %3313, %v2428_v31   ;;  %v2492_v35 = vmul.f32 %v2428_v31, %v5098_v24  ;;  %v2334_v55 = vld [vmem:[%s5066_s21 + $0x58] sm:$0xff]  ;;  %v2521_v61 = vsub.f32 %v2457_v28, %v2489_v20 }
 0x264   : > { %v2102_v40 = vpop.xlane.xlu0 %2101  ;;  %3341 = vrsqrt.f32 %v2367_v26  ;;  %v2427_v31 = vmul.f32 %v3334_v8, %v2331_v49  ;;  %v2243_v34 = vmul.f32 %v5148_v38, %v5148_v38  ;;  %v2369_v8 = vadd.f32 1e-05, %v2305_v11  ;;  %v2333_v49 = vld [vmem:[%s5066_s21 + $0x50] sm:$0xff] }
 0x265   : > { %v2274_v17 = vsub.f32 %v2210_v44, %v2242_v7  ;;  %v2524_v14 = vsub.f32 %v2460_v59, %v2492_v35  ;;  %v2211_v24 = vmul.f32 0.0051020407, %v2102_v40  ;;  %v2462_v59 = vld [vmem:[%s5085_s25 + $0x58] sm:$0xff] }
 0x266   : > { %v1914_v9 = vpop.xlane.xlu1 %1913  ;;  %v2491_v3 = vmul.f32 %v2427_v31, %v5095_v43 }
 0x267   : > { %v2306_v30 = vmax.f32 %v2274_v17, 0.0  ;;  %v5151_v52 = vmul.f32 0.0051020407, %v1914_v9  ;;  %2584 = vperm.xlu1 %3314, %v2426_v22   ;;  %2818 = vperm.xlu0 %3313, %v2524_v14   ;;  %v2275_v40 = vsub.f32 %v2211_v24, %v2243_v34  ;;  %v2459_v14 = vld [vmem:[%s5085_s25 + $0x40] sm:$0xff]  ;;  %v2336_v24 = vld [vmem:[%s5066_s21 + $0x68] sm:$0xff] }
 0x268   : > { %v3336_v63 = vpop.eup %3335  ;;  %v1918_v13 = vpop.xlane.xlu0 %1917  ;;  %v2523_v34 = vsub.f32 %v2459_v14, %v2491_v3 }
 0x269   : > { %v2370_v0 = vadd.f32 1e-05, %v2306_v30  ;;  %v2430_v7 = vmul.f32 %v3336_v63, %v2334_v55  ;;  %v2244_v22 = vmul.f32 %v5151_v52, %v5151_v52  ;;  %v3338_v63 = vpop.eup %3337  ;;  %v5161_v17 = vmul.f32 0.0051020407, %v1918_v13 }
 0x26a   : > { %v2106_v46 = vpop.xlane.xlu1 %2105  ;;  %v2429_v13 = vmul.f32 %v3338_v63, %v2333_v49  ;;  %v2461_v49 = vld [vmem:[%s5085_s25 + $0x50] sm:$0xff] }
 0x26b   : > { %3343 = vrsqrt.f32 %v2370_v0  ;;  %v2212_v44 = vmul.f32 0.0051020407, %v2106_v46  ;;  %2803 = vperm.xlu1 %3314, %v2521_v61   ;;  %2604 = vperm.xlu0 %3313, %v2430_v7   ;;  %v2494_v20 = vmul.f32 %v2430_v7, %v5111_v39  ;;  %v2307_v0 = vmax.f32 %v2275_v40, 0.0 }
 0x26c   : > { %v2110_v35 = vpop.xlane.xlu0 %2109  ;;  %3345 = vrsqrt.f32 %v2369_v8  ;;  %v2245_v46 = vmul.f32 %v5161_v17, %v5161_v17  ;;  %v2493_v3 = vmul.f32 %v2429_v13, %v5109_v62 }
 0x26d   : > { %v2276_v26 = vsub.f32 %v2212_v44, %v2244_v22  ;;  %v2526_v9 = vsub.f32 %v2462_v59, %v2494_v20  ;;  %v2213_v39 = vmul.f32 0.0051020407, %v2110_v35  ;;  %v2464_v59 = vld [vmem:[%s5085_s25 + $0x68] sm:$0xff]  ;;  %v2371_v40 = vadd.f32 1e-05, %v2307_v0  ;;  %v2338_v0 = vld [vmem:[%s5066_s21 + $0x78] sm:$0xff] }
 0x26e   : > { %v1922_v28 = vpop.xlane.xlu1 %1921 }
 0x26f   : > { %v2308_v30 = vmax.f32 %v2276_v26, 0.0  ;;  %v5165_v55 = vmul.f32 0.0051020407, %v1922_v28  ;;  %2589 = vperm.xlu1 %3314, %v2427_v31   ;;  %2828 = vperm.xlu0 %3313, %v2526_v9   ;;  %v2277_v35 = vsub.f32 %v2213_v39, %v2245_v46  ;;  %v2525_v46 = vsub.f32 %v2461_v49, %v2493_v3  ;;  %v2463_v49 = vld [vmem:[%s5085_s25 + $0x60] sm:$0xff] }
 0x270   : > { %v3340_v61 = vpop.eup %3339  ;;  %v1926_v11 = vpop.xlane.xlu0 %1925 }
 0x271   : > { %v2372_v43 = vadd.f32 1e-05, %v2308_v30  ;;  %v2432_v22 = vmul.f32 %v3340_v61, %v2336_v24  ;;  %v2246_v31 = vmul.f32 %v5165_v55, %v5165_v55  ;;  %v3342_v63 = vpop.eup %3341  ;;  %v5175_v28 = vmul.f32 0.0051020407, %v1926_v11  ;;  %v2335_v30 = vld [vmem:[%s5066_s21 + $0x60] sm:$0xff] }
 0x272   : > { %v2114_v7 = vpop.xlane.xlu1 %2113  ;;  %v2431_v11 = vmul.f32 %v3342_v63, %v2335_v30  ;;  %v2337_v30 = vld [vmem:[%s5066_s21 + $0x70] sm:$0xff] }
 0x273   : > { %3347 = vrsqrt.f32 %v2372_v43  ;;  %v2214_v44 = vmul.f32 0.0051020407, %v2114_v7  ;;  %2813 = vperm.xlu1 %3314, %v2523_v34   ;;  %2614 = vperm.xlu0 %3313, %v2432_v22   ;;  %v2496_v8 = vmul.f32 %v2432_v22, %v5123_v6  ;;  %v2309_v43 = vmax.f32 %v2277_v35, 0.0 }
 0x274   : > { %v2118_v20 = vpop.xlane.xlu0 %2117  ;;  %3349 = vrsqrt.f32 %v2371_v40  ;;  %v2247_v7 = vmul.f32 %v5175_v28, %v5175_v28  ;;  %v2495_v3 = vmul.f32 %v2431_v11, %v5121_v42 }
 0x275   : > { %v2278_v26 = vsub.f32 %v2214_v44, %v2246_v31  ;;  %v2528_v14 = vsub.f32 %v2464_v59, %v2496_v8  ;;  %v2215_v6 = vmul.f32 0.0051020407, %v2118_v20  ;;  %v2466_v59 = vld [vmem:[%s5085_s25 + $0x78] sm:$0xff]  ;;  %v2373_v40 = vadd.f32 1e-05, %v2309_v43  ;;  %v2340_v43 = vld [vmem:[%s5066_s21 + $0x88] sm:$0xff] }
 0x276   : > { %v1930_v9 = vpop.xlane.xlu1 %1929 }
 0x277   : > { %v2310_v24 = vmax.f32 %v2278_v26, 0.0  ;;  %v5179_v61 = vmul.f32 0.0051020407, %v1930_v9  ;;  %2599 = vperm.xlu1 %3314, %v2429_v13   ;;  %2838 = vperm.xlu0 %3313, %v2528_v14   ;;  %v2279_v35 = vsub.f32 %v2215_v6, %v2247_v7  ;;  %v2527_v7 = vsub.f32 %v2463_v49, %v2495_v3 }
 0x278   : > { %v3344_v39 = vpop.eup %3343  ;;  %v1934_v34 = vpop.xlane.xlu0 %1933 }
 0x279   : > { %v2374_v62 = vadd.f32 1e-05, %v2310_v24  ;;  %v2434_v31 = vmul.f32 %v3344_v39, %v2338_v0  ;;  %v2248_v13 = vmul.f32 %v5179_v61, %v5179_v61  ;;  %v3346_v63 = vpop.eup %3345  ;;  %v5191_v24 = vmul.f32 0.0051020407, %v1934_v34 }
 0x27a   : > { %v2122_v22 = vpop.xlane.xlu1 %2121 }
 0x27b   : > { %3351 = vrsqrt.f32 %v2374_v62  ;;  %v2216_v44 = vmul.f32 0.0051020407, %v2122_v22  ;;  %2823 = vperm.xlu1 %3314, %v2525_v46   ;;  %2624 = vperm.xlu0 %3313, %v2434_v31   ;;  %v2498_v8 = vmul.f32 %v2434_v31, %v5137_v19  ;;  %v2311_v62 = vmax.f32 %v2279_v35, 0.0 }
 0x27c   : > { %v2126_v20 = vpop.xlane.xlu0 %2125  ;;  %3353 = vrsqrt.f32 %v2373_v40  ;;  %v2433_v22 = vmul.f32 %v3346_v63, %v2337_v30  ;;  %v2249_v34 = vmul.f32 %v5191_v24, %v5191_v24  ;;  %v2465_v30 = vld [vmem:[%s5085_s25 + $0x70] sm:$0xff] }
 0x27d   : > { %v2280_v26 = vsub.f32 %v2216_v44, %v2248_v13  ;;  %v2530_v14 = vsub.f32 %v2466_v59, %v2498_v8  ;;  %v2217_v42 = vmul.f32 0.0051020407, %v2126_v20  ;;  %v2468_v59 = vld [vmem:[%s5085_s25 + $0x88] sm:$0xff]  ;;  %v2375_v40 = vadd.f32 1e-05, %v2311_v62  ;;  %v2342_v62 = vld [vmem:[%s5066_s21 + $0x98] sm:$0xff] }
 0x27e   : > { %v1938_v9 = vpop.xlane.xlu1 %1937  ;;  %v2497_v63 = vmul.f32 %v2433_v22, %v5135_v47 }
 0x27f   : > { %v2312_v0 = vmax.f32 %v2280_v26, 0.0  ;;  %v5193_v39 = vmul.f32 0.0051020407, %v1938_v9  ;;  %2609 = vperm.xlu1 %3314, %v2431_v11   ;;  %2848 = vperm.xlu0 %3313, %v2530_v14   ;;  %v2281_v26 = vsub.f32 %v2217_v42, %v2249_v34  ;;  %v2339_v9 = vld [vmem:[%s5066_s21 + $0x80] sm:$0xff] }
 0x280   : > { %v3348_v6 = vpop.eup %3347  ;;  %v1942_v19 = vpop.xlane.xlu0 %1941 }
 0x281   : > { %v2376_v46 = vadd.f32 1e-05, %v2312_v0  ;;  %v2436_v13 = vmul.f32 %v3348_v6, %v2340_v43  ;;  %v2250_v11 = vmul.f32 %v5193_v39, %v5193_v39  ;;  %v3350_v8 = vpop.eup %3349  ;;  %v5205_v0 = vmul.f32 0.0051020407, %v1942_v19 }
 0x282   : > { %v2130_v31 = vpop.xlane.xlu1 %2129  ;;  %v2435_v42 = vmul.f32 %v3350_v8, %v2339_v9  ;;  %v2467_v9 = vld [vmem:[%s5085_s25 + $0x80] sm:$0xff] }
 0x283   : > { %3355 = vrsqrt.f32 %v2376_v46  ;;  %v2218_v44 = vmul.f32 0.0051020407, %v2130_v31  ;;  %2833 = vperm.xlu1 %3314, %v2527_v7   ;;  %2634 = vperm.xlu0 %3313, %v2436_v13   ;;  %v2500_v20 = vmul.f32 %v2436_v13, %v5151_v52  ;;  %v2313_v7 = vmax.f32 %v2281_v26, 0.0 }
 0x284   : > { %v2134_v35 = vpop.xlane.xlu0 %2133  ;;  %3357 = vrsqrt.f32 %v2375_v40  ;;  %v2529_v13 = vsub.f32 %v2465_v30, %v2497_v63  ;;  %v2251_v19 = vmul.f32 %v5205_v0, %v5205_v0 }
 0x285   : > { %v2282_v3 = vsub.f32 %v2218_v44, %v2250_v11  ;;  %v2532_v49 = vsub.f32 %v2468_v59, %v2500_v20  ;;  %v2219_v47 = vmul.f32 0.0051020407, %v2134_v35  ;;  %v2470_v59 = vld [vmem:[%s5085_s25 + $0x98] sm:$0xff]  ;;  %v2499_v20 = vmul.f32 %v2435_v42, %v5148_v38 }
 0x286   : > { %v1946_v14 = vpop.xlane.xlu1 %1945  ;;  %v2377_v26 = vadd.f32 1e-05, %v2313_v7 }
 0x287   : > { %v2314_v43 = vmax.f32 %v2282_v3, 0.0  ;;  %v5207_v6 = vmul.f32 0.0051020407, %v1946_v14  ;;  %2619 = vperm.xlu1 %3314, %v2433_v22   ;;  %2858 = vperm.xlu0 %3313, %v2532_v49   ;;  %v2283_v3 = vsub.f32 %v2219_v47, %v2251_v19  ;;  %v2341_v14 = vld [vmem:[%s5066_s21 + $0x90] sm:$0xff]  ;;  %v2531_v38 = vsub.f32 %v2467_v9, %v2499_v20  ;;  %v2343_v9 = vld [vmem:[%s5066_s21 + $0xa0] sm:$0xff] }
 0x288   : > { %v3352_v46 = vpop.eup %3351  ;;  %v1950_v52 = vpop.xlane.xlu0 %1949 }
 0x289   : > { %v2378_v31 = vadd.f32 1e-05, %v2314_v43  ;;  %v2438_v11 = vmul.f32 %v3352_v46, %v2342_v62  ;;  %v2252_v22 = vmul.f32 %v5207_v6, %v5207_v6  ;;  %v3354_v8 = vpop.eup %3353  ;;  %v5219_v43 = vmul.f32 0.0051020407, %v1950_v52 }
 0x28a   : > { %v2138_v34 = vpop.xlane.xlu1 %2137  ;;  %v2315_v7 = vmax.f32 %v2283_v3, 0.0 }
 0x28b   : > { %3359 = vrsqrt.f32 %v2378_v31  ;;  %v2220_v44 = vmul.f32 0.0051020407, %v2138_v34  ;;  %2843 = vperm.xlu1 %3314, %v2529_v13   ;;  %2644 = vperm.xlu0 %3313, %v2438_v11   ;;  %v2502_v35 = vmul.f32 %v2438_v11, %v5165_v55  ;;  %v2344_v31 = vld [vmem:[%s5066_s21 + $0xa8] sm:$0xff]  ;;  %v2437_v34 = vmul.f32 %v3354_v8, %v2341_v14 }
 0x28c   : > { %v2142_v40 = vpop.xlane.xlu0 %2141  ;;  %3361 = vrsqrt.f32 %v2377_v26  ;;  %v2253_v52 = vmul.f32 %v5219_v43, %v5219_v43  ;;  %v2379_v8 = vadd.f32 1e-05, %v2315_v7 }
 0x28d   : > { %v2284_v63 = vsub.f32 %v2220_v44, %v2252_v22  ;;  %v2534_v30 = vsub.f32 %v2470_v59, %v2502_v35  ;;  %v2221_v11 = vmul.f32 0.0051020407, %v2142_v40  ;;  %v2472_v59 = vld [vmem:[%s5085_s25 + $0xa8] sm:$0xff] }
 0x28e   : > { %v1954_v49 = vpop.xlane.xlu1 %1953 }
 0x28f   : > { %v2316_v62 = vmax.f32 %v2284_v63, 0.0  ;;  %v5221_v46 = vmul.f32 0.0051020407, %v1954_v49  ;;  %2629 = vperm.xlu1 %3314, %v2435_v42   ;;  %2868 = vperm.xlu0 %3313, %v2534_v30   ;;  %v2285_v26 = vsub.f32 %v2221_v11, %v2253_v52  ;;  %v2501_v63 = vmul.f32 %v2437_v34, %v5161_v17 }
 0x290   : > { %v3356_v13 = vpop.eup %3355  ;;  %v1958_v55 = vpop.xlane.xlu0 %1957 }
 0x291   : > { %v2380_v47 = vadd.f32 1e-05, %v2316_v62  ;;  %v2440_v22 = vmul.f32 %v3356_v13, %v2344_v31  ;;  %v2254_v42 = vmul.f32 %v5221_v46, %v5221_v46  ;;  %v3358_v40 = vpop.eup %3357  ;;  %v5232_v14 = vmul.f32 0.0051020407, %v1958_v55  ;;  %v2469_v62 = vld [vmem:[%s5085_s25 + $0x90] sm:$0xff] }
 0x292   : > { %v2146_v19 = vpop.xlane.xlu1 %2145  ;;  %v2439_v11 = vmul.f32 %v3358_v40, %v2343_v9 }
 0x293   : > { %3363 = vrsqrt.f32 %v2380_v47  ;;  %v2222_v44 = vmul.f32 0.0051020407, %v2146_v19  ;;  %2853 = vperm.xlu1 %3314, %v2531_v38   ;;  %2654 = vperm.xlu0 %3313, %v2440_v22   ;;  %v2504_v20 = vmul.f32 %v2440_v22, %v5179_v61  ;;  %v2346_v38 = vld [vmem:[%s5066_s21 + $0xb8] sm:$0xff]  ;;  %v2317_v19 = vmax.f32 %v2285_v26, 0.0 }
 0x294   : > { %v2150_v35 = vpop.xlane.xlu0 %2149  ;;  %3365 = vrsqrt.f32 %v2379_v8  ;;  %v2533_v22 = vsub.f32 %v2469_v62, %v2501_v63  ;;  %v2255_v55 = vmul.f32 %v5232_v14, %v5232_v14  ;;  %v2503_v40 = vmul.f32 %v2439_v11, %v5175_v28  ;;  %v2471_v63 = vld [vmem:[%s5085_s25 + $0xa0] sm:$0xff] }
 0x295   : > { %v2286_v3 = vsub.f32 %v2222_v44, %v2254_v42  ;;  %v2536_v30 = vsub.f32 %v2472_v59, %v2504_v20  ;;  %v2223_v61 = vmul.f32 0.0051020407, %v2150_v35  ;;  %v2474_v59 = vld [vmem:[%s5085_s25 + $0xb8] sm:$0xff]  ;;  %v2381_v8 = vadd.f32 1e-05, %v2317_v19 }
 0x296   : > { %v1962_v49 = vpop.xlane.xlu1 %1961  ;;  %v2535_v28 = vsub.f32 %v2471_v63, %v2503_v40  ;;  %v2350_v63 = vld [vmem:[%s5066_s21 + $0xd8] sm:$0xff] }
 0x297   : > { %v2318_v31 = vmax.f32 %v2286_v3, 0.0  ;;  %v5235_v13 = vmul.f32 0.0051020407, %v1962_v49  ;;  %2639 = vperm.xlu1 %3314, %v2437_v34   ;;  %2878 = vperm.xlu0 %3313, %v2536_v30   ;;  %v2287_v35 = vsub.f32 %v2223_v61, %v2255_v55 }
 0x298   : > { %v3360_v47 = vpop.eup %3359  ;;  %v1966_v7 = vpop.xlane.xlu0 %1965 }
 0x299   : > { %v2382_v17 = vadd.f32 1e-05, %v2318_v31  ;;  %v2442_v42 = vmul.f32 %v3360_v47, %v2346_v38  ;;  %v2256_v34 = vmul.f32 %v5235_v13, %v5235_v13  ;;  %v3362_v9 = vpop.eup %3361  ;;  %v5246_v49 = vmul.f32 0.0051020407, %v1966_v7  ;;  %v2348_v31 = vld [vmem:[%s5066_s21 + $0xc8] sm:$0xff]  ;;  %v2345_v38 = vld [vmem:[%s5066_s21 + $0xb0] sm:$0xff] }
 0x29a   : > { %v2154_v52 = vpop.xlane.xlu1 %2153 }
 0x29b   : > { %3367 = vrsqrt.f32 %v2382_v17  ;;  %v2224_v44 = vmul.f32 0.0051020407, %v2154_v52  ;;  %2863 = vperm.xlu1 %3314, %v2533_v22   ;;  %2664 = vperm.xlu0 %3313, %v2442_v42   ;;  %v2506_v20 = vmul.f32 %v2442_v42, %v5193_v39  ;;  %v2319_v39 = vmax.f32 %v2287_v35, 0.0 }
 0x29c   : > { %v2158_v3 = vpop.xlane.xlu0 %2157  ;;  %3369 = vrsqrt.f32 %v2381_v8  ;;  %v2441_v52 = vmul.f32 %v3362_v9, %v2345_v38  ;;  %v2257_v7 = vmul.f32 %v5246_v49, %v5246_v49  ;;  %v2473_v9 = vld [vmem:[%s5085_s25 + $0xb0] sm:$0xff] }
 0x29d   : > { %v2288_v26 = vsub.f32 %v2224_v44, %v2256_v34  ;;  %v2538_v62 = vsub.f32 %v2474_v59, %v2506_v20  ;;  %v2225_v22 = vmul.f32 0.0051020407, %v2158_v3  ;;  %v2476_v34 = vld [vmem:[%s5085_s25 + $0xc8] sm:$0xff]  ;;  %v2383_v35 = vadd.f32 1e-05, %v2319_v39 }
 0x29e   : > { %v1970_v30 = vpop.xlane.xlu1 %1969 }
 0x29f   : > { %v2320_v47 = vmax.f32 %v2288_v26, 0.0  ;;  %v5250_v17 = vmul.f32 0.0051020407, %v1970_v30  ;;  %2649 = vperm.xlu1 %3314, %v2439_v11   ;;  %2888 = vperm.xlu0 %3313, %v2538_v62   ;;  %v2289_v20 = vsub.f32 %v2225_v22, %v2257_v7  ;;  %v2505_v26 = vmul.f32 %v2441_v52, %v5191_v24  ;;  %v2347_v30 = vld [vmem:[%s5066_s21 + $0xc0] sm:$0xff]  ;;  %v2478_v22 = vld [vmem:[%s5085_s25 + $0xd8] sm:$0xff]  ;;  %v2352_v7 = vld [vmem:[%s5066_s21 + $0xe8] sm:$0xff] }
 0x2a0   : > { %v3364_v61 = vpop.eup %3363 }
 0x2a1   : > { %v2384_v19 = vadd.f32 1e-05, %v2320_v47  ;;  %v2444_v55 = vmul.f32 %v3364_v61, %v2348_v31  ;;  %v2258_v11 = vmul.f32 %v5250_v17, %v5250_v17  ;;  %v3366_v3 = vpop.eup %3365  ;;  %v2321_v38 = vmax.f32 %v2289_v20, 0.0 }
 0x2a2   : > { %v2162_v42 = vpop.xlane.xlu1 %2161  ;;  %v2537_v61 = vsub.f32 %v2473_v9, %v2505_v26  ;;  %v2443_v39 = vmul.f32 %v3366_v3, %v2347_v30  ;;  %v2351_v26 = vld [vmem:[%s5066_s21 + $0xe0] sm:$0xff]  ;;  %v2477_v3 = vld [vmem:[%s5085_s25 + $0xd0] sm:$0xff] }
 0x2a3   : > { %3371 = vrsqrt.f32 %v2384_v19  ;;  %v2226_v44 = vmul.f32 0.0051020407, %v2162_v42  ;;  %2873 = vperm.xlu1 %3314, %v2535_v28   ;;  %v2508_v59 = vmul.f32 %v2444_v55, %v5207_v6  ;;  %2674 = vperm.xlu0 %3313, %v2444_v55   ;;  %v2385_v28 = vadd.f32 1e-05, %v2321_v38  ;;  %v2475_v42 = vld [vmem:[%s5085_s25 + $0xc0] sm:$0xff]  ;;  %v2482_v38 = vld [vmem:[%s5085_s25 + $0xf8] sm:$0xff] }
 0x2a4   : > { %3373 = vrsqrt.f32 %v2383_v35  ;;  %v2507_v55 = vmul.f32 %v2443_v39, %v5205_v0  ;;  %v2480_v35 = vld [vmem:[%s5085_s25 + $0xe8] sm:$0xff] }
 0x2a5   : > { %v2290_v40 = vsub.f32 %v2226_v44, %v2258_v11  ;;  %v2540_v8 = vsub.f32 %v2476_v34, %v2508_v59  ;;  %v2349_v34 = vld [vmem:[%s5066_s21 + $0xd0] sm:$0xff] }
 0x2a6   : > { %v2539_v59 = vsub.f32 %v2475_v42, %v2507_v55  ;;  %v5630_v55 = vld [vmem:[#allocation17_spill] sm:$0xff] }
 0x2a7   : > { %v2322_v62 = vmax.f32 %v2290_v40, 0.0  ;;  %2659 = vperm.xlu1 %3314, %v2441_v52   ;;  %2898 = vperm.xlu0 %3313, %v2540_v8  }
 0x2a8   : > { %v3368_v31 = vpop.eup %3367 }
 0x2a9   : > { %v2386_v6 = vadd.f32 1e-05, %v2322_v62  ;;  %v2446_v47 = vmul.f32 %v3368_v31, %v2350_v63  ;;  %v3370_v52 = vpop.eup %3369  ;;  %v2354_v63 = vld [vmem:[%s5066_s21 + $0xf8] sm:$0xff] }
 0x2ab   : > { %3375 = vrsqrt.f32 %v2386_v6  ;;  %2883 = vperm.xlu1 %3314, %v2537_v61   ;;  %v2510_v24 = vmul.f32 %v2446_v47, %v5221_v46  ;;  %2684 = vperm.xlu0 %3313, %v2446_v47   ;;  %v2445_v46 = vmul.f32 %v3370_v52, %v2349_v34  ;;  %v2479_v61 = vld [vmem:[%s5085_s25 + $0xe0] sm:$0xff]  ;;  %v2997_v34 = vld [vmem:[%s5285_s29 + $0x10] sm:$0xff] }
 0x2ac   : > { %3377 = vrsqrt.f32 %v2385_v28  ;;  %v5629_v28 = vld [vmem:[#allocation18_spill] sm:$0xff] }
 0x2ad   : > { %v2542_v19 = vsub.f32 %v2478_v22, %v2510_v24  ;;  %v2509_v8 = vmul.f32 %v2445_v46, %v5219_v43 }
 0x2af   : > { %2669 = vperm.xlu1 %3314, %v2443_v39   ;;  %2908 = vperm.xlu0 %3313, %v2542_v19   ;;  %v2541_v62 = vsub.f32 %v2477_v3, %v2509_v8  ;;  %v2353_v39 = vld [vmem:[%s5066_s21 + $0xf0] sm:$0xff] }
 0x2b0   : > { %v3372_v11 = vpop.eup %3371 }
 0x2b1   : > { %v2448_v44 = vmul.f32 %v3372_v11, %v2352_v7  ;;  %v3374_v0 = vpop.eup %3373  ;;  %v2998_v11 = vld [vmem:[%s5285_s29 + $0x18] sm:$0xff] }
 0x2b2   : > { %v2447_v30 = vmul.f32 %v3374_v0, %v2351_v26 }
 0x2b3   : > { %2893 = vperm.xlu1 %3314, %v2539_v59   ;;  %v2512_v20 = vmul.f32 %v2448_v44, %v5235_v13  ;;  %2694 = vperm.xlu0 %3313, %v2448_v44   ;;  %v2995_v59 = vld [vmem:[%s5285_s29] sm:$0xff] }
 0x2b4   : > { %v2511_v43 = vmul.f32 %v2447_v30, %v5232_v14 }
 0x2b5   : > { %v2544_v40 = vsub.f32 %v2480_v35, %v2512_v20 }
 0x2b7   : > { %2679 = vperm.xlu1 %3314, %v2445_v46   ;;  %2918 = vperm.xlu0 %3313, %v2544_v40   ;;  %v2996_v46 = vld [vmem:[%s5285_s29 + $0x8] sm:$0xff] }
 0x2b8   : > { %v3376_v9 = vpop.eup %3375  ;;  %v2550_v22 = vpop.permute.xlu0 %2549 }
 0x2b9   : > { %v2450_v31 = vmul.f32 %v3376_v9, %v2354_v63  ;;  %v3378_v6 = vpop.eup %3377  ;;  %v2707_v19 = vmul.f32 %v2550_v22, %v5629_v28  ;;  %v2708_v52 = vmul.f32 %v2550_v22, %v5630_v55  ;;  %v3000_v28 = vld [vmem:[%s5285_s29 + $0x28] sm:$0xff] }
 0x2ba   : > { %v2449_v14 = vmul.f32 %v3378_v6, %v2353_v39  ;;  %v3002_v6 = vld [vmem:[%s5285_s29 + $0x38] sm:$0xff]  ;;  %v5632_v39 = vld [vmem:[#allocation19_spill] sm:$0xff] }
 0x2bb   : > { %2903 = vperm.xlu1 %3314, %v2541_v62   ;;  %v2514_v13 = vmul.f32 %v2450_v31, %v5250_v17  ;;  %2704 = vperm.xlu0 %3313, %v2450_v31   ;;  %v2543_v17 = vsub.f32 %v2479_v61, %v2511_v43  ;;  %v3001_v43 = vld [vmem:[%s5285_s29 + $0x30] sm:$0xff] }
 0x2bd   : > { %v2546_v47 = vsub.f32 %v2482_v38, %v2514_v13 }
 0x2be   : > { %v2555_v24 = vpop.permute.xlu1 %2554 }
 0x2bf   : > { %2689 = vperm.xlu1 %3314, %v2447_v30   ;;  %2928 = vperm.xlu0 %3313, %v2546_v47   ;;  %v2709_v7 = vmul.f32 %v2555_v24, %v4606_v15  ;;  %v2710_v42 = vmul.f32 %v2555_v24, %v4609_v57  ;;  %v2513_v15 = vmul.f32 %v2449_v14, %v5246_v49  ;;  %v2481_v30 = vld [vmem:[%s5085_s25 + $0xf0] sm:$0xff] }
 0x2c0   : > { %v5631_v47 = vld [vmem:[#allocation20_spill] sm:$0xff] }
 0x2c1   : > { %v2545_v62 = vsub.f32 %v2481_v30, %v2513_v15 }
 0x2c2   : > { %v2779_v44 = vpop.permute.xlu0 %2778  ;;  %v2774_v35 = vpop.permute.xlu1 %2773 }
 0x2c3   : > { %v2933_v20 = vadd.f32 %v2779_v44, %v2709_v7  ;;  %v2934_v0 = vadd.f32 %v2779_v44, %v2710_v42  ;;  %v2931_v40 = vadd.f32 %v2774_v35, %v2707_v19  ;;  %v2932_v8 = vadd.f32 %v2774_v35, %v2708_v52  ;;  %2913 = vperm.xlu1 %3314, %v2543_v17   ;;  %v3005_v35 = vld [vmem:[%s5285_s29 + $0x50] sm:$0xff] }
 0x2c5   : > { %v3061_v57 = vadd.f32 %v2997_v34, %v2933_v20  ;;  %v3062_v26 = vadd.f32 %v2998_v11, %v2934_v0  ;;  %v3059_v3 = vadd.f32 %v2995_v59, %v2931_v40  ;;  %v3060_v63 = vadd.f32 %v2996_v46, %v2932_v8  ;;  %v3006_v20 = vld [vmem:[%s5285_s29 + $0x58] sm:$0xff] }
 0x2c6   : > { %v2560_v9 = vpop.permute.xlu1 %2559 }
 0x2c7   : > { %3125 = vst [vmem:[%s5300_s19 + $0x10] sm:$0xff] %v3061_v57  ;;  %3126 = vst.msk [vmem:[%s5300_s19 + $0x18] sm:$0xff] %vm1842_vm0, %v3062_v26  ;;  %2699 = vperm.xlu1 %3314, %v2449_v14   ;;  %v2711_v61 = vmul.f32 %v2560_v9, %v5631_v47  ;;  %v2712_v22 = vmul.f32 %v2560_v9, %v5632_v39  ;;  %v2999_v14 = vld [vmem:[%s5285_s29 + $0x20] sm:$0xff]  ;;  %v3004_v26 = vld [vmem:[%s5285_s29 + $0x48] sm:$0xff] }
 0x2c8   : > { %3123 = vst [vmem:[%s5300_s19] sm:$0xff] %v3059_v3  ;;  %3124 = vst.msk [vmem:[%s5300_s19 + $0x8] sm:$0xff] %vm1842_vm0, %v3060_v63  ;;  %v3003_v57 = vld [vmem:[%s5285_s29 + $0x40] sm:$0xff] }
 0x2ca   : > { %v2565_v31 = vpop.permute.xlu1 %2564  ;;  %v2789_v13 = vpop.permute.xlu0 %2788 }
 0x2cb   : > { %v2713_v49 = vmul.f32 %v2565_v31, %v4646_v33  ;;  %v2714_v38 = vmul.f32 %v2565_v31, %v4634_v36  ;;  %2923 = vperm.xlu1 %3314, %v2545_v62  }
 0x2cd   : > { %v2937_v24 = vadd.f32 %v2789_v13, %v2713_v49  ;;  %v2938_v17 = vadd.f32 %v2789_v13, %v2714_v38 }
 0x2ce   : > { %v2784_v19 = vpop.permute.xlu1 %2783 }
 0x2cf   : > { %v3065_v33 = vadd.f32 %v3001_v43, %v2937_v24  ;;  %v3066_v36 = vadd.f32 %v3002_v6, %v2938_v17  ;;  %v2935_v55 = vadd.f32 %v2784_v19, %v2711_v61  ;;  %v2936_v52 = vadd.f32 %v2784_v19, %v2712_v22  ;;  %v3013_v43 = vld [vmem:[%s5285_s29 + $0x90] sm:$0xff]  ;;  %v3014_v6 = vld [vmem:[%s5285_s29 + $0x98] sm:$0xff] }
 0x2d0   : > { %v3009_v17 = vld [vmem:[%s5285_s29 + $0x70] sm:$0xff] }
 0x2d1   : > { %3129 = vst [vmem:[%s5300_s19 + $0x30] sm:$0xff] %v3065_v33  ;;  %3130 = vst.msk [vmem:[%s5300_s19 + $0x38] sm:$0xff] %vm1842_vm0, %v3066_v36  ;;  %v3063_v7 = vadd.f32 %v2999_v14, %v2935_v55  ;;  %v3064_v42 = vadd.f32 %v3000_v28, %v2936_v52  ;;  %v3010_v14 = vld [vmem:[%s5285_s29 + $0x78] sm:$0xff]  ;;  %v3007_v55 = vld [vmem:[%s5285_s29 + $0x60] sm:$0xff] }
 0x2d2   : > { %v2570_v34 = vpop.permute.xlu1 %2569  ;;  %v2799_v44 = vpop.permute.xlu0 %2798 }
 0x2d3   : > { %3127 = vst [vmem:[%s5300_s19 + $0x20] sm:$0xff] %v3063_v7  ;;  %3128 = vst.msk [vmem:[%s5300_s19 + $0x28] sm:$0xff] %vm1842_vm0, %v3064_v42  ;;  %v2715_v0 = vmul.f32 %v2570_v34, %v4650_v18  ;;  %v2716_v40 = vmul.f32 %v2570_v34, %v4648_v25 }
 0x2d6   : > { %v2575_v11 = vpop.permute.xlu1 %2574 }
 0x2d7   : > { %v2717_v59 = vmul.f32 %v2575_v11, %v4674_v23  ;;  %v2718_v46 = vmul.f32 %v2575_v11, %v4663_v54 }
 0x2d9   : > { %v2941_v8 = vadd.f32 %v2799_v44, %v2717_v59  ;;  %v2942_v15 = vadd.f32 %v2799_v44, %v2718_v46 }
 0x2da   : > { %v2794_v3 = vpop.permute.xlu1 %2793  ;;  %v2809_v9 = vpop.permute.xlu0 %2808 }
 0x2db   : > { %v3069_v63 = vadd.f32 %v3005_v35, %v2941_v8  ;;  %v3070_v23 = vadd.f32 %v3006_v20, %v2942_v15  ;;  %v2939_v54 = vadd.f32 %v2794_v3, %v2715_v0  ;;  %v2940_v30 = vadd.f32 %v2794_v3, %v2716_v40  ;;  %v3017_v35 = vld [vmem:[%s5285_s29 + $0xb0] sm:$0xff]  ;;  %v3018_v20 = vld [vmem:[%s5285_s29 + $0xb8] sm:$0xff]  ;;  %v3012_v3 = vld [vmem:[%s5285_s29 + $0x88] sm:$0xff] }
 0x2dd   : > { %3133 = vst [vmem:[%s5300_s19 + $0x50] sm:$0xff] %v3069_v63  ;;  %3134 = vst.msk [vmem:[%s5300_s19 + $0x58] sm:$0xff] %vm1842_vm0, %v3070_v23  ;;  %v3067_v18 = vadd.f32 %v3003_v57, %v2939_v54  ;;  %v3068_v25 = vadd.f32 %v3004_v26, %v2940_v30 }
 0x2de   : > { %v2580_v62 = vpop.permute.xlu1 %2579  ;;  %v2595_v31 = vpop.permute.xlu0 %2594 }
 0x2df   : > { %3131 = vst [vmem:[%s5300_s19 + $0x40] sm:$0xff] %v3067_v18  ;;  %3132 = vst.msk [vmem:[%s5300_s19 + $0x48] sm:$0xff] %vm1842_vm0, %v3068_v25  ;;  %v2725_v49 = vmul.f32 %v2595_v31, %v4730_v37  ;;  %v2726_v38 = vmul.f32 %v2595_v31, %v4719_v16  ;;  %v2719_v37 = vmul.f32 %v2580_v62, %v4678_v5  ;;  %v3022_v31 = vld [vmem:[%s5285_s29 + $0xd8] sm:$0xff] }
 0x2e0   : > { %v2720_v16 = vmul.f32 %v2580_v62, %v4676_v51  ;;  %v3021_v62 = vld [vmem:[%s5285_s29 + $0xd0] sm:$0xff] }
 0x2e2   : > { %v2585_v13 = vpop.permute.xlu1 %2584  ;;  %v2819_v47 = vpop.permute.xlu0 %2818 }
 0x2e3   : > { %v2721_v61 = vmul.f32 %v2585_v13, %v4702_v12  ;;  %v2722_v39 = vmul.f32 %v2585_v13, %v4691_v58  ;;  %v2949_v22 = vadd.f32 %v2819_v47, %v2725_v49  ;;  %v2950_v24 = vadd.f32 %v2819_v47, %v2726_v38  ;;  %v3008_v12 = vld [vmem:[%s5285_s29 + $0x68] sm:$0xff] }
 0x2e5   : > { %v2945_v28 = vadd.f32 %v2809_v9, %v2721_v61  ;;  %v2946_v19 = vadd.f32 %v2809_v9, %v2722_v39  ;;  %v3077_v33 = vadd.f32 %v3013_v43, %v2949_v22  ;;  %v3078_v36 = vadd.f32 %v3014_v6, %v2950_v24  ;;  %v3016_v61 = vld [vmem:[%s5285_s29 + $0xa8] sm:$0xff] }
 0x2e6   : > { %v2804_v58 = vpop.permute.xlu1 %2803  ;;  %v2605_v42 = vpop.permute.xlu0 %2604 }
 0x2e7   : > { %v3073_v52 = vadd.f32 %v3009_v17, %v2945_v28  ;;  %v3074_v7 = vadd.f32 %v3010_v14, %v2946_v19  ;;  %v2943_v34 = vadd.f32 %v2804_v58, %v2719_v37  ;;  %v2944_v5 = vadd.f32 %v2804_v58, %v2720_v16  ;;  %3141 = vst [vmem:[%s5300_s19 + $0x90] sm:$0xff] %v3077_v33  ;;  %v3025_v28 = vld [vmem:[%s5285_s29 + $0xf0] sm:$0xff]  ;;  %v3026_v19 = vld [vmem:[%s5285_s29 + $0xf8] sm:$0xff] }
 0x2e8   : > { %3142 = vst.msk [vmem:[%s5300_s19 + $0x98] sm:$0xff] %vm1842_vm0, %v3078_v36  ;;  %v2729_v44 = vmul.f32 %v2605_v42, %v4758_v45  ;;  %v2730_v59 = vmul.f32 %v2605_v42, %v4747_v41  ;;  %v3011_v41 = vld [vmem:[%s5285_s29 + $0x80] sm:$0xff] }
 0x2e9   : > { %3137 = vst [vmem:[%s5300_s19 + $0x70] sm:$0xff] %v3073_v52  ;;  %3138 = vst.msk [vmem:[%s5300_s19 + $0x78] sm:$0xff] %vm1842_vm0, %v3074_v7  ;;  %v3071_v51 = vadd.f32 %v3007_v55, %v2943_v34  ;;  %v3072_v11 = vadd.f32 %v3008_v12, %v2944_v5  ;;  %v3020_v7 = vld [vmem:[%s5285_s29 + $0xc8] sm:$0xff] }
 0x2ea   : > { %v2590_v46 = vpop.permute.xlu1 %2589  ;;  %v2829_v0 = vpop.permute.xlu0 %2828 }
 0x2eb   : > { %3135 = vst [vmem:[%s5300_s19 + $0x60] sm:$0xff] %v3071_v51  ;;  %3136 = vst.msk [vmem:[%s5300_s19 + $0x68] sm:$0xff] %vm1842_vm0, %v3072_v11  ;;  %v2953_v40 = vadd.f32 %v2829_v0, %v2729_v44  ;;  %v2954_v8 = vadd.f32 %v2829_v0, %v2730_v59  ;;  %v2723_v15 = vmul.f32 %v2590_v46, %v4706_v48 }
 0x2ec   : > { %v2724_v57 = vmul.f32 %v2590_v46, %v4704_v21  ;;  %v3029_v46 = vld [vmem:[%s5285_s29 + $0x110] sm:$0xff] }
 0x2ed   : > { %v3081_v26 = vadd.f32 %v3017_v35, %v2953_v40  ;;  %v3082_v45 = vadd.f32 %v3018_v20, %v2954_v8  ;;  %v3030_v35 = vld [vmem:[%s5285_s29 + $0x118] sm:$0xff] }
 0x2ee   : > { %v2814_v63 = vpop.permute.xlu1 %2813  ;;  %v2615_v23 = vpop.permute.xlu0 %2614 }
 0x2ef   : > { %v2947_v9 = vadd.f32 %v2814_v63, %v2723_v15  ;;  %v2948_v54 = vadd.f32 %v2814_v63, %v2724_v57  ;;  %3145 = vst [vmem:[%s5300_s19 + $0xb0] sm:$0xff] %v3081_v26  ;;  %3146 = vst.msk [vmem:[%s5300_s19 + $0xb8] sm:$0xff] %vm1842_vm0, %v3082_v45  ;;  %v2733_v21 = vmul.f32 %v2615_v23, %v4786_v27  ;;  %v5633_v15 = vld [vmem:[#allocation21_spill] sm:$0xff]  ;;  %v3024_v45 = vld [vmem:[%s5285_s29 + $0xe8] sm:$0xff] }
 0x2f0   : > { %v2734_v18 = vmul.f32 %v2615_v23, %v4775_v2  ;;  %v3015_v2 = vld [vmem:[%s5285_s29 + $0xa0] sm:$0xff] }
 0x2f1   : > { %v3075_v30 = vadd.f32 %v3011_v41, %v2947_v9  ;;  %v3076_v48 = vadd.f32 %v3012_v3, %v2948_v54  ;;  %v5634_v54 = vld [vmem:[#allocation27_spill] sm:$0xff] }
 0x2f2   : > { %v2600_v25 = vpop.permute.xlu1 %2599  ;;  %v2839_v49 = vpop.permute.xlu0 %2838 }
 0x2f3   : > { %3139 = vst [vmem:[%s5300_s19 + $0x80] sm:$0xff] %v3075_v30  ;;  %3140 = vst.msk [vmem:[%s5300_s19 + $0x88] sm:$0xff] %vm1842_vm0, %v3076_v48  ;;  %v2957_v38 = vadd.f32 %v2839_v49, %v2733_v21  ;;  %v2958_v13 = vadd.f32 %v2839_v49, %v2734_v18  ;;  %v2727_v43 = vmul.f32 %v2600_v25, %v4734_v4  ;;  %v5635_v48 = vld [vmem:[#allocation26_spill] sm:$0xff] }
 0x2f4   : > { %v2728_v6 = vmul.f32 %v2600_v25, %v4732_v1  ;;  %v3033_v25 = vld [vmem:[%s5285_s29 + $0x130] sm:$0xff] }
 0x2f5   : > { %v3085_v47 = vadd.f32 %v3021_v62, %v2957_v38  ;;  %v3086_v27 = vadd.f32 %v3022_v31, %v2958_v13  ;;  %v3034_v62 = vld [vmem:[%s5285_s29 + $0x138] sm:$0xff]  ;;  %v5636_v13 = vld [vmem:[#allocation23_spill] sm:$0xff] }
 0x2f6   : > { %v2824_v39 = vpop.permute.xlu1 %2823  ;;  %v2625_v22 = vpop.permute.xlu0 %2624 }
 0x2f7   : > { %v2951_v24 = vadd.f32 %v2824_v39, %v2727_v43  ;;  %v2952_v17 = vadd.f32 %v2824_v39, %v2728_v6  ;;  %3149 = vst [vmem:[%s5300_s19 + $0xd0] sm:$0xff] %v3085_v47  ;;  %3150 = vst.msk [vmem:[%s5300_s19 + $0xd8] sm:$0xff] %vm1842_vm0, %v3086_v27  ;;  %v2737_v1 = vmul.f32 %v2625_v22, %v4814_v56  ;;  %v5637_v6 = vld [vmem:[#allocation22_spill] sm:$0xff]  ;;  %v3028_v39 = vld [vmem:[%s5285_s29 + $0x108] sm:$0xff] }
 0x2f8   : > { %v2738_v37 = vmul.f32 %v2625_v22, %v4803_v32  ;;  %v3019_v32 = vld [vmem:[%s5285_s29 + $0xc0] sm:$0xff] }
 0x2f9   : > { %v3079_v14 = vadd.f32 %v3015_v2, %v2951_v24  ;;  %v3080_v4 = vadd.f32 %v3016_v61, %v2952_v17  ;;  %v3027_v61 = vld [vmem:[%s5285_s29 + $0x100] sm:$0xff] }
 0x2fa   : > { %v2610_v16 = vpop.permute.xlu1 %2609  ;;  %v2849_v33 = vpop.permute.xlu0 %2848 }
 0x2fb   : > { %3143 = vst [vmem:[%s5300_s19 + $0xa0] sm:$0xff] %v3079_v14  ;;  %3144 = vst.msk [vmem:[%s5300_s19 + $0xa8] sm:$0xff] %vm1842_vm0, %v3080_v4  ;;  %v2961_v36 = vadd.f32 %v2849_v33, %v2737_v1  ;;  %v2962_v55 = vadd.f32 %v2849_v33, %v2738_v37  ;;  %v2731_v12 = vmul.f32 %v2610_v16, %v4762_v29  ;;  %v5638_v37 = vld [vmem:[#allocation31_spill] sm:$0xff] }
 0x2fc   : > { %v2732_v58 = vmul.f32 %v2610_v16, %v4760_v50 }
 0x2fd   : > { %v3089_v52 = vadd.f32 %v3025_v28, %v2961_v36  ;;  %v3090_v56 = vadd.f32 %v3026_v19, %v2962_v55  ;;  %v5639_v28 = vld [vmem:[#allocation30_spill] sm:$0xff]  ;;  %v3037_v36 = vld [vmem:[%s5285_s29 + $0x150] sm:$0xff]  ;;  %v3038_v55 = vld [vmem:[%s5285_s29 + $0x158] sm:$0xff] }
 0x2fe   : > { %v2834_v42 = vpop.permute.xlu1 %2833  ;;  %v2635_v34 = vpop.permute.xlu0 %2634 }
 0x2ff   : > { %v2955_v5 = vadd.f32 %v2834_v42, %v2731_v12  ;;  %v2956_v51 = vadd.f32 %v2834_v42, %v2732_v58  ;;  %3153 = vst [vmem:[%s5300_s19 + $0xf0] sm:$0xff] %v3089_v52  ;;  %3154 = vst.msk [vmem:[%s5300_s19 + $0xf8] sm:$0xff] %vm1842_vm0, %v3090_v56  ;;  %v2741_v50 = vmul.f32 %v2635_v34, %v4842_v10  ;;  %v5640_v56 = vld [vmem:[#allocation25_spill] sm:$0xff] }
 0x300   : > { %v2742_v44 = vmul.f32 %v2635_v34, %v4831_v60  ;;  %v3023_v60 = vld [vmem:[%s5285_s29 + $0xe0] sm:$0xff] }
 0x301   : > { %v3083_v11 = vadd.f32 %v3019_v32, %v2955_v5  ;;  %v3084_v29 = vadd.f32 %v3020_v7, %v2956_v51  ;;  %v5641_v7 = vld [vmem:[#allocation24_spill] sm:$0xff]  ;;  %v3031_v51 = vld [vmem:[%s5285_s29 + $0x120] sm:$0xff] }
 0x302   : > { %v2620_v59 = vpop.permute.xlu1 %2619  ;;  %v2859_v20 = vpop.permute.xlu0 %2858 }
 0x303   : > { %3147 = vst [vmem:[%s5300_s19 + $0xc0] sm:$0xff] %v3083_v11  ;;  %3148 = vst.msk [vmem:[%s5300_s19 + $0xc8] sm:$0xff] %vm1842_vm0, %v3084_v29  ;;  %v2965_v0 = vadd.f32 %v2859_v20, %v2741_v50  ;;  %v2966_v40 = vadd.f32 %v2859_v20, %v2742_v44  ;;  %v2735_v8 = vmul.f32 %v2620_v59, %v4790_v53  ;;  %v3032_v11 = vld [vmem:[%s5285_s29 + $0x128] sm:$0xff] }
 0x304   : > { %v2736_v57 = vmul.f32 %v2620_v59, %v5633_v15  ;;  %v5642_v20 = vld [vmem:[#allocation3_spill] sm:$0xff] }
 0x305   : > { %v3093_v26 = vadd.f32 %v3029_v46, %v2965_v0  ;;  %v3094_v10 = vadd.f32 %v3030_v35, %v2966_v40  ;;  %v5643_v40 = vld [vmem:[#allocation2_spill] sm:$0xff] }
 0x306   : > { %v2844_v41 = vpop.permute.xlu1 %2843  ;;  %v2645_v3 = vpop.permute.xlu0 %2644 }
 0x307   : > { %v2959_v63 = vadd.f32 %v2844_v41, %v2735_v8  ;;  %v2960_v23 = vadd.f32 %v2844_v41, %v2736_v57  ;;  %3157 = vst [vmem:[%s5300_s19 + $0x110] sm:$0xff] %v3093_v26  ;;  %3158 = vst.msk [vmem:[%s5300_s19 + $0x118] sm:$0xff] %vm1842_vm0, %v3094_v10  ;;  %v2745_v30 = vmul.f32 %v2645_v3, %v5634_v54  ;;  %v3041_v57 = vld [vmem:[%s5285_s29 + $0x170] sm:$0xff]  ;;  %v3042_v26 = vld [vmem:[%s5285_s29 + $0x178] sm:$0xff] }
 0x308   : > { %v2746_v21 = vmul.f32 %v2645_v3, %v5635_v48  ;;  %v5644_v41 = vld [vmem:[#allocation29_spill] sm:$0xff]  ;;  %v3035_v54 = vld [vmem:[%s5285_s29 + $0x140] sm:$0xff] }
 0x309   : > { %v3087_v9 = vadd.f32 %v3023_v60, %v2959_v63  ;;  %v3088_v53 = vadd.f32 %v3024_v45, %v2960_v23  ;;  %v5645_v63 = vld [vmem:[#allocation28_spill] sm:$0xff] }
 0x30a   : > { %v2630_v18 = vpop.permute.xlu1 %2629  ;;  %v2869_v31 = vpop.permute.xlu0 %2868 }
 0x30b   : > { %3151 = vst [vmem:[%s5300_s19 + $0xe0] sm:$0xff] %v3087_v9  ;;  %3152 = vst.msk [vmem:[%s5300_s19 + $0xe8] sm:$0xff] %vm1842_vm0, %v3088_v53  ;;  %v2969_v49 = vadd.f32 %v2869_v31, %v2745_v30  ;;  %v2970_v38 = vadd.f32 %v2869_v31, %v2746_v21  ;;  %v2739_v43 = vmul.f32 %v2630_v18, %v5636_v13  ;;  %v3036_v30 = vld [vmem:[%s5285_s29 + $0x148] sm:$0xff]  ;;  %v5647_v13 = vld [vmem:[#allocation6_spill] sm:$0xff] }
 0x30c   : > { %v2740_v47 = vmul.f32 %v2630_v18, %v5637_v6 }
 0x30d   : > { %v3097_v27 = vadd.f32 %v3033_v25, %v2969_v49  ;;  %v3098_v2 = vadd.f32 %v3034_v62, %v2970_v38  ;;  %v5646_v49 = vld [vmem:[#allocation5_spill] sm:$0xff] }
 0x30e   : > { %v2854_v22 = vpop.permute.xlu1 %2853  ;;  %v2655_v24 = vpop.permute.xlu0 %2654 }
 0x30f   : > { %v2963_v17 = vadd.f32 %v2854_v22, %v2739_v43  ;;  %v2964_v14 = vadd.f32 %v2854_v22, %v2740_v47  ;;  %3161 = vst [vmem:[%s5300_s19 + $0x130] sm:$0xff] %v3097_v27  ;;  %3162 = vst.msk [vmem:[%s5300_s19 + $0x138] sm:$0xff] %vm1842_vm0, %v3098_v2  ;;  %v2749_v16 = vmul.f32 %v2655_v24, %v5638_v37  ;;  %v3045_v47 = vld [vmem:[%s5285_s29 + $0x190] sm:$0xff]  ;;  %v3046_v27 = vld [vmem:[%s5285_s29 + $0x198] sm:$0xff] }
 0x310   : > { %v2750_v19 = vmul.f32 %v2655_v24, %v5639_v28  ;;  %v5648_v22 = vld [vmem:[#allocation33_spill] sm:$0xff]  ;;  %v3039_v37 = vld [vmem:[%s5285_s29 + $0x160] sm:$0xff] }
 0x311   : > { %v3091_v4 = vadd.f32 %v3027_v61, %v2963_v17  ;;  %v3092_v1 = vadd.f32 %v3028_v39, %v2964_v14  ;;  %v5649_v17 = vld [vmem:[#allocation32_spill] sm:$0xff] }
 0x312   : > { %v2640_v33 = vpop.permute.xlu1 %2639  ;;  %v2879_v12 = vpop.permute.xlu0 %2878 }
 0x313   : > { %3155 = vst [vmem:[%s5300_s19 + $0x100] sm:$0xff] %v3091_v4  ;;  %3156 = vst.msk [vmem:[%s5300_s19 + $0x108] sm:$0xff] %vm1842_vm0, %v3092_v1  ;;  %v2973_v58 = vadd.f32 %v2879_v12, %v2749_v16  ;;  %v2974_v52 = vadd.f32 %v2879_v12, %v2750_v19  ;;  %v2743_v32 = vmul.f32 %v2640_v33, %v5640_v56  ;;  %v3040_v16 = vld [vmem:[%s5285_s29 + $0x168] sm:$0xff]  ;;  %v5651_v56 = vld [vmem:[#allocation10_spill] sm:$0xff] }
 0x314   : > { %v2744_v42 = vmul.f32 %v2640_v33, %v5641_v7 }
 0x315   : > { %v3101_v34 = vadd.f32 %v3037_v36, %v2973_v58  ;;  %v3102_v5 = vadd.f32 %v3038_v55, %v2974_v52  ;;  %v5650_v58 = vld [vmem:[#allocation9_spill] sm:$0xff] }
 0x316   : > { %v2864_v29 = vpop.permute.xlu1 %2863  ;;  %v2665_v50 = vpop.permute.xlu0 %2664 }
 0x317   : > { %v2967_v44 = vadd.f32 %v2864_v29, %v2743_v32  ;;  %v2968_v59 = vadd.f32 %v2864_v29, %v2744_v42  ;;  %3165 = vst [vmem:[%s5300_s19 + $0x150] sm:$0xff] %v3101_v34  ;;  %3166 = vst.msk [vmem:[%s5300_s19 + $0x158] sm:$0xff] %vm1842_vm0, %v3102_v5  ;;  %v2753_v0 = vmul.f32 %v2665_v50, %v5642_v20  ;;  %v3049_v42 = vld [vmem:[%s5285_s29 + $0x1b0] sm:$0xff]  ;;  %v3050_v34 = vld [vmem:[%s5285_s29 + $0x1b8] sm:$0xff] }
 0x318   : > { %v2754_v8 = vmul.f32 %v2665_v50, %v5643_v40  ;;  %v5652_v29 = vld [vmem:[#allocation34_spill] sm:$0xff] }
 0x319   : > { %v3095_v46 = vadd.f32 %v3031_v51, %v2967_v44  ;;  %v3096_v35 = vadd.f32 %v3032_v11, %v2968_v59  ;;  %v5653_v44 = vld [vmem:[#allocation4_spill] sm:$0xff]  ;;  %v3043_v20 = vld [vmem:[%s5285_s29 + $0x180] sm:$0xff] }
 0x31a   : > { %v2650_v15 = vpop.permute.xlu1 %2649  ;;  %v2889_v10 = vpop.permute.xlu0 %2888 }
 0x31b   : > { %3159 = vst [vmem:[%s5300_s19 + $0x120] sm:$0xff] %v3095_v46  ;;  %3160 = vst.msk [vmem:[%s5300_s19 + $0x128] sm:$0xff] %vm1842_vm0, %v3096_v35  ;;  %v2977_v60 = vadd.f32 %v2889_v10, %v2753_v0  ;;  %v2978_v45 = vadd.f32 %v2889_v10, %v2754_v8  ;;  %v2747_v3 = vmul.f32 %v2650_v15, %v5644_v41  ;;  %v3044_v0 = vld [vmem:[%s5285_s29 + $0x188] sm:$0xff]  ;;  %v5655_v41 = vld [vmem:[#allocation14_spill] sm:$0xff] }
 0x31c   : > { %v2748_v23 = vmul.f32 %v2650_v15, %v5645_v63 }
 0x31d   : > { %v3105_v9 = vadd.f32 %v3041_v57, %v2977_v60  ;;  %v3106_v53 = vadd.f32 %v3042_v26, %v2978_v45  ;;  %v5654_v60 = vld [vmem:[#allocation13_spill] sm:$0xff] }
 0x31e   : > { %v2874_v48 = vpop.permute.xlu1 %2873  ;;  %v2675_v21 = vpop.permute.xlu0 %2674 }
 0x31f   : > { %v2971_v18 = vadd.f32 %v2874_v48, %v2747_v3  ;;  %v2972_v25 = vadd.f32 %v2874_v48, %v2748_v23  ;;  %3169 = vst [vmem:[%s5300_s19 + $0x170] sm:$0xff] %v3105_v9  ;;  %3170 = vst.msk [vmem:[%s5300_s19 + $0x178] sm:$0xff] %vm1842_vm0, %v3106_v53  ;;  %v2757_v38 = vmul.f32 %v2675_v21, %v5646_v49  ;;  %v3053_v23 = vld [vmem:[%s5285_s29 + $0x1d0] sm:$0xff]  ;;  %v3054_v9 = vld [vmem:[%s5285_s29 + $0x1d8] sm:$0xff] }
 0x320   : > { %v2758_v43 = vmul.f32 %v2675_v21, %v5647_v13  ;;  %v5656_v48 = vld [vmem:[#allocation8_spill] sm:$0xff]  ;;  %v3047_v49 = vld [vmem:[%s5285_s29 + $0x1a0] sm:$0xff] }
 0x321   : > { %v3099_v62 = vadd.f32 %v3035_v54, %v2971_v18  ;;  %v3100_v31 = vadd.f32 %v3036_v30, %v2972_v25  ;;  %v5657_v18 = vld [vmem:[#allocation7_spill] sm:$0xff] }
 0x322   : > { %v2660_v6 = vpop.permute.xlu1 %2659  ;;  %v2899_v2 = vpop.permute.xlu0 %2898 }
 0x323   : > { %3163 = vst [vmem:[%s5300_s19 + $0x140] sm:$0xff] %v3099_v62  ;;  %3164 = vst.msk [vmem:[%s5300_s19 + $0x148] sm:$0xff] %vm1842_vm0, %v3100_v31  ;;  %v2981_v61 = vadd.f32 %v2899_v2, %v2757_v38  ;;  %v2982_v39 = vadd.f32 %v2899_v2, %v2758_v43  ;;  %v2751_v24 = vmul.f32 %v2660_v6, %v5648_v22  ;;  %v3048_v38 = vld [vmem:[%s5285_s29 + $0x1a8] sm:$0xff]  ;;  %v5659_v22 = vld [vmem:[#allocation16_spill] sm:$0xff] }
 0x324   : > { %v2752_v14 = vmul.f32 %v2660_v6, %v5649_v17 }
 0x325   : > { %v3109_v4 = vadd.f32 %v3045_v47, %v2981_v61  ;;  %v3110_v1 = vadd.f32 %v3046_v27, %v2982_v39  ;;  %v5658_v61 = vld [vmem:[#allocation36_spill] sm:$0xff] }
 0x326   : > { %v2884_v28 = vpop.permute.xlu1 %2883  ;;  %v2685_v19 = vpop.permute.xlu0 %2684 }
 0x327   : > { %v2975_v33 = vadd.f32 %v2884_v28, %v2751_v24  ;;  %v2976_v36 = vadd.f32 %v2884_v28, %v2752_v14  ;;  %3173 = vst [vmem:[%s5300_s19 + $0x190] sm:$0xff] %v3109_v4  ;;  %3174 = vst.msk [vmem:[%s5300_s19 + $0x198] sm:$0xff] %vm1842_vm0, %v3110_v1  ;;  %v2761_v52 = vmul.f32 %v2685_v19, %v5650_v58  ;;  %v3057_v14 = vld [vmem:[%s5285_s29 + $0x1f0] sm:$0xff]  ;;  %v3058_v4 = vld [vmem:[%s5285_s29 + $0x1f8] sm:$0xff] }
 0x328   : > { %v2762_v32 = vmul.f32 %v2685_v19, %v5651_v56  ;;  %v5660_v28 = vld [vmem:[#allocation12_spill] sm:$0xff]  ;;  %v3051_v58 = vld [vmem:[%s5285_s29 + $0x1c0] sm:$0xff] }
 0x329   : > { %v3103_v55 = vadd.f32 %v3039_v37, %v2975_v33  ;;  %v3104_v12 = vadd.f32 %v3040_v16, %v2976_v36  ;;  %v5661_v33 = vld [vmem:[#allocation11_spill] sm:$0xff] }
 0x32a   : > { %v2670_v7 = vpop.permute.xlu1 %2669  ;;  %v2909_v5 = vpop.permute.xlu0 %2908 }
 0x32b   : > { %3167 = vst [vmem:[%s5300_s19 + $0x160] sm:$0xff] %v3103_v55  ;;  %3168 = vst.msk [vmem:[%s5300_s19 + $0x168] sm:$0xff] %vm1842_vm0, %v3104_v12  ;;  %v2985_v51 = vadd.f32 %v2909_v5, %v2761_v52  ;;  %v2986_v11 = vadd.f32 %v2909_v5, %v2762_v32  ;;  %v2755_v50 = vmul.f32 %v2670_v7, %v5652_v29  ;;  %v3052_v52 = vld [vmem:[%s5285_s29 + $0x1c8] sm:$0xff] }
 0x32c   : > { %v2756_v59 = vmul.f32 %v2670_v7, %v5653_v44  ;;  %v5663_v29 = vld [vmem:[#allocation15_spill] sm:$0xff]  ;;  %v3055_v44 = vld [vmem:[%s5285_s29 + $0x1e0] sm:$0xff] }
 0x32d   : > { %v3113_v46 = vadd.f32 %v3049_v42, %v2985_v51  ;;  %v3114_v35 = vadd.f32 %v3050_v34, %v2986_v11  ;;  %v5662_v51 = vld [vmem:[#allocation35_spill] sm:$0xff] }
 0x32e   : > { %v2894_v40 = vpop.permute.xlu1 %2893  ;;  %v2695_v8 = vpop.permute.xlu0 %2694 }
 0x32f   : > { %v2979_v15 = vadd.f32 %v2894_v40, %v2755_v50  ;;  %v2980_v57 = vadd.f32 %v2894_v40, %v2756_v59  ;;  %3177 = vst [vmem:[%s5300_s19 + $0x1b0] sm:$0xff] %v3113_v46  ;;  %3178 = vst.msk [vmem:[%s5300_s19 + $0x1b8] sm:$0xff] %vm1842_vm0, %v3114_v35  ;;  %v2765_v45 = vmul.f32 %v2695_v8, %v5654_v60  ;;  %v3056_v59 = vld [vmem:[%s5285_s29 + $0x1e8] sm:$0xff] }
 0x330   : > { %v2766_v3 = vmul.f32 %v2695_v8, %v5655_v41 }
 0x331   : > { %v3107_v26 = vadd.f32 %v3043_v20, %v2979_v15  ;;  %v3108_v10 = vadd.f32 %v3044_v0, %v2980_v57 }
 0x332   : > { %v2680_v63 = vpop.permute.xlu1 %2679  ;;  %v2919_v53 = vpop.permute.xlu0 %2918 }
 0x333   : > { %3171 = vst [vmem:[%s5300_s19 + $0x180] sm:$0xff] %v3107_v26  ;;  %3172 = vst.msk [vmem:[%s5300_s19 + $0x188] sm:$0xff] %vm1842_vm0, %v3108_v10  ;;  %v2989_v54 = vadd.f32 %v2919_v53, %v2765_v45  ;;  %v2990_v30 = vadd.f32 %v2919_v53, %v2766_v3  ;;  %v2759_v21 = vmul.f32 %v2680_v63, %v5656_v48 }
 0x334   : > { %v2760_v25 = vmul.f32 %v2680_v63, %v5657_v18 }
 0x335   : > { %v3117_v62 = vadd.f32 %v3053_v23, %v2989_v54  ;;  %v3118_v31 = vadd.f32 %v3054_v9, %v2990_v30 }
 0x336   : > { %v2904_v13 = vpop.permute.xlu1 %2903  ;;  %v2705_v43 = vpop.permute.xlu0 %2704 }
 0x337   : > { %v2983_v6 = vadd.f32 %v2904_v13, %v2759_v21  ;;  %v2984_v47 = vadd.f32 %v2904_v13, %v2760_v25  ;;  %3181 = vst [vmem:[%s5300_s19 + $0x1d0] sm:$0xff] %v3117_v62  ;;  %3182 = vst.msk [vmem:[%s5300_s19 + $0x1d8] sm:$0xff] %vm1842_vm0, %v3118_v31  ;;  %v2769_v39 = vmul.f32 %v2705_v43, %v5658_v61 }
 0x338   : > { %v2770_v24 = vmul.f32 %v2705_v43, %v5659_v22 }
 0x339   : > { %v3111_v27 = vadd.f32 %v3047_v49, %v2983_v6  ;;  %v3112_v2 = vadd.f32 %v3048_v38, %v2984_v47 }
 0x33a   : > { %v2690_v17 = vpop.permute.xlu1 %2689  ;;  %v2929_v1 = vpop.permute.xlu0 %2928 }
 0x33b   : > { %3175 = vst [vmem:[%s5300_s19 + $0x1a0] sm:$0xff] %v3111_v27  ;;  %3176 = vst.msk [vmem:[%s5300_s19 + $0x1a8] sm:$0xff] %vm1842_vm0, %v3112_v2  ;;  %v2993_v37 = vadd.f32 %v2929_v1, %v2769_v39  ;;  %v2994_v16 = vadd.f32 %v2929_v1, %v2770_v24  ;;  %v2763_v19 = vmul.f32 %v2690_v17, %v5660_v28 }
 0x33c   : > { %v2764_v36 = vmul.f32 %v2690_v17, %v5661_v33 }
 0x33d   : > { %v3121_v55 = vadd.f32 %v3057_v14, %v2993_v37  ;;  %v3122_v12 = vadd.f32 %v3058_v4, %v2994_v16 }
 0x33e   : > { %v2914_v56 = vpop.permute.xlu1 %2913 }
 0x33f   : > { %v2987_v32 = vadd.f32 %v2914_v56, %v2763_v19  ;;  %v2988_v7 = vadd.f32 %v2914_v56, %v2764_v36  ;;  %3185 = vst [vmem:[%s5300_s19 + $0x1f0] sm:$0xff] %v3121_v55  ;;  %3186 = vst.msk [vmem:[%s5300_s19 + $0x1f8] sm:$0xff] %vm1842_vm0, %v3122_v12 }
 0x341   : > { %v3115_v42 = vadd.f32 %v3051_v58, %v2987_v32  ;;  %v3116_v34 = vadd.f32 %v3052_v52, %v2988_v7 }
 0x342   : > { %v2700_v5 = vpop.permute.xlu1 %2699 }
 0x343   : > { %3179 = vst [vmem:[%s5300_s19 + $0x1c0] sm:$0xff] %v3115_v42  ;;  %3180 = vst.msk [vmem:[%s5300_s19 + $0x1c8] sm:$0xff] %vm1842_vm0, %v3116_v34  ;;  %v2767_v11 = vmul.f32 %v2700_v5, %v5662_v51  ;;  %v2768_v50 = vmul.f32 %v2700_v5, %v5663_v29 }
 0x346   : > { %v2924_v46 = vpop.permute.xlu1 %2923 }
 0x347   : > { %v2991_v35 = vadd.f32 %v2924_v46, %v2767_v11  ;;  %v2992_v20 = vadd.f32 %v2924_v46, %v2768_v50 }
 0x349   : > { %v3119_v0 = vadd.f32 %v3055_v44, %v2991_v35  ;;  %v3120_v40 = vadd.f32 %v3056_v59, %v2992_v20 }
 0x34b   : > { %3183 = vst [vmem:[%s5300_s19 + $0x1e0] sm:$0xff] %v3119_v0  ;;  %3184 = vst.msk [vmem:[%s5300_s19 + $0x1e8] sm:$0xff] %vm1842_vm0, %v3120_v40 }
 0x34c PF: > { %s15_s18 = sadd.s32 1, %s3385_s18  }
 0x34d   : > { %p12_p4 = scmp.ge.s32.totalorder %s15_s18, 6  }
 0x34f   :  { %14 = sbr.rel (!%p12_p4) target bundleno = 1 (0x1), region = 79 }

</bundles_post_ra>
